<compile_context>
chip_gen: v5e
topology: v5e:2x2
jax: 0.10.0
libtpu: 0.0.40
codegen_flags: <defaults>
</compile_context>

<pallas_src>
import functools

import jax
import jax.numpy as jnp
from jax import lax
from jax.experimental import pallas as pl
from jax.experimental.pallas import tpu as pltpu

VMEM = pltpu.MemorySpace.VMEM


# --------------------------------------------------------------------------
# Fused ESIM forward kernel
# --------------------------------------------------------------------------
def esim_kernel(ids_ref, table_ref,
                win1_ref, whh1_ref, bg1_ref,
                win2_ref, whh2_ref, bg2_ref,
                w1t_ref, b1_ref, w2t_ref, b2_ref,
                out_ref, *, B, L, H):
    f32 = jnp.float32
    Vp, _ = table_ref.shape
    N = 2 * B * L                      # total (sequence, time, batch) rows

    # ---- embedding lookup as one-hot matmul (table resident in VMEM) ------
    ids = ids_ref[...]                                            # (N, 1) i32
    hot = (lax.broadcasted_iota(jnp.int32, (N, Vp), 1) == ids).astype(f32)
    emb = jnp.dot(hot, table_ref[...], preferred_element_type=f32)  # (N, E)
    x1_rows = emb[0:L * B, :]          # seq1, row = t*B + b  (step-major)
    x2_rows = emb[L * B:N, :]          # seq2, row = t*B + b

    # ---- fused bidirectional LSTM ------------------------------------------
    # State is (nb, 2H) = [fwd | rev]; gate lane layout is
    # [i_f, i_r, f_f, f_r, g_f, g_r, o_f, o_r] (H lanes each).
    def bilstm(x_rows, nb, w_in, w_hh, bg):
        # per-step fwd/rev inputs, projected for all steps in a single MXU pass
        x2 = jnp.concatenate(
            [jnp.concatenate([x_rows[s * nb:(s + 1) * nb, :],
                              x_rows[(L - 1 - s) * nb:(L - s) * nb, :]],
                             axis=1)
             for s in range(L)], axis=0)                          # (L*nb, 2*Din)
        g_in = jnp.dot(x2, w_in, preferred_element_type=f32) + bg  # (L*nb, 8H)

        lane = lax.broadcasted_iota(jnp.int32, (nb, 8 * H), 1)
        g_mask = (lane >= 4 * H) & (lane < 6 * H)                 # tanh block

        h = jnp.zeros((nb, 2 * H), f32)
        c = jnp.zeros((nb, 2 * H), f32)
        hs = []
        for s in range(L):                                        # fully unrolled
            gates = g_in[s * nb:(s + 1) * nb, :] + jnp.dot(
                h, w_hh, preferred_element_type=f32)
            z = jnp.where(g_mask, jnp.tanh(gates), jax.nn.sigmoid(gates))
            c = z[:, 2 * H:4 * H] * c + z[:, 0:2 * H] * z[:, 4 * H:6 * H]
            h = z[:, 6 * H:8 * H] * jnp.tanh(c)
            hs.append(h)
        # realign: forward half of step t, reverse half of step L-1-t
        return jnp.concatenate(
            [jnp.concatenate([hs[t][:, :H], hs[L - 1 - t][:, H:]], axis=1)
             for t in range(L)], axis=0)                          # (L*nb, 2H)

    win1, whh1, bg1 = win1_ref[...], whh1_ref[...], bg1_ref[...]
    win2, whh2, bg2 = win2_ref[...], whh2_ref[...], bg2_ref[...]

    dec1 = bilstm(x1_rows, B, win1, whh1, bg1)   # (L*B, 2H)
    dec2 = bilstm(x2_rows, B, win2, whh2, bg2)   # (L*B, 2H)

    # ---- soft cross-attention + local-inference composition ----------------
    def gather_stream(rows, b):                  # rows (L*B, D) -> (L, D)
        return jnp.concatenate(
            [rows[t * B + b:t * B + b + 1, :] for t in range(L)], axis=0)

    m1_streams = []
    m2_streams = []
    for b in range(B):
        a = gather_stream(dec1, b)               # (L, 2H) seq1 decoder
        cdec = gather_stream(dec2, b)            # (L, 2H) seq2 decoder
        # scores computed once; second attention uses the transpose
        s_ab = lax.dot_general(a, cdec, (((1,), (1,)), ((), ())),
                               preferred_element_type=f32)        # (L, L)
        p_b = jax.nn.softmax(s_ab, axis=-1)
        p_a = jax.nn.softmax(s_ab.T, axis=-1)
        att1 = jnp.dot(p_b, cdec, preferred_element_type=f32)     # (L, 2H)
        att2 = jnp.dot(p_a, a, preferred_element_type=f32)        # (L, 2H)
        m1_streams.append(
            jnp.concatenate([a, att1, a - att1, a * att1], axis=1))       # (L, 8H)
        m2_streams.append(
            jnp.concatenate([cdec, att2, cdec - att2, cdec * att2], axis=1))

    # one compose matmul for both sequences: relu(linear1(m))
    w1t, b1 = w1t_ref[...], b1_ref[...]
    m_sm = jnp.concatenate(m1_streams + m2_streams, axis=0)       # (2B*L, 8H)
    comp_sm = jnp.maximum(
        jnp.dot(m_sm, w1t, preferred_element_type=f32) + b1, 0.0)  # (2B*L, H)

    # interleave streams into step-major rows for the composition BiLSTM
    comp_rows = jnp.concatenate(
        [comp_sm[j * L + s:j * L + s + 1, :]
         for s in range(L) for j in range(2 * B)], axis=0)        # (L*2B, H)

    f_rows = bilstm(comp_rows, 2 * B, win2, whh2, bg2)            # (L*2B, 2H)

    # ---- avg/max pooling over time + classifier head ------------------------
    blocks = [f_rows[s * 2 * B:(s + 1) * 2 * B, :] for s in range(L)]
    ssum = blocks[0]
    smax = blocks[0]
    for blk in blocks[1:]:
        ssum = ssum + blk
        smax = jnp.maximum(smax, blk)
    avg = ssum * (1.0 / L)                                        # (2B, 2H)

    fx = jnp.concatenate(
        [avg[0:B], smax[0:B], avg[B:2 * B], smax[B:2 * B]], axis=1)   # (B, 8H)
    hid = jnp.tanh(jnp.dot(fx, w1t, preferred_element_type=f32) + b1)
    # TODO(synk): nn.Dropout(0.5) is identity in eval mode; no mask applied.
    out_ref[...] = jnp.dot(hid, w2t_ref[...],
                           preferred_element_type=f32) + b2_ref[...]


# --------------------------------------------------------------------------
# Wrapper: one pallas_call for the whole forward
# --------------------------------------------------------------------------
def esim_forward(prepared, seq1, seq2, mask1, mask2):
    del mask1, mask2   # masking is commented out in the reference forward
    B, L = seq1.shape
    H = prepared["w1t"].shape[1]
    O = prepared["w2t"].shape[1]

    # row order: [seq1 step-major (t*B + b), then seq2 step-major]
    ids = jnp.concatenate(
        [jnp.transpose(seq1).reshape(-1), jnp.transpose(seq2).reshape(-1)],
        axis=0).astype(jnp.int32)[:, None]                        # (2*B*L, 1)

    kernel = functools.partial(esim_kernel, B=B, L=L, H=H)
    return pl.pallas_call(
        kernel,
        out_shape=jax.ShapeDtypeStruct((B, O), jnp.float32),
        in_specs=[pl.BlockSpec(memory_space=VMEM)] * 12,
        out_specs=pl.BlockSpec(memory_space=VMEM),
    )(ids, prepared["table"],
      prepared["lstm1"]["w_in"], prepared["lstm1"]["w_hh"], prepared["lstm1"]["b"],
      prepared["lstm2"]["w_in"], prepared["lstm2"]["w_hh"], prepared["lstm2"]["b"],
      prepared["w1t"], prepared["b1"], prepared["w2t"], prepared["b2"])


# --------------------------------------------------------------------------
# One-time parameter packing (pre-transpose / pre-combine)
# --------------------------------------------------------------------------
def _prep_bilstm(p):
    """Pack a PyTorch-layout bidirectional LSTM into fused block weights.

    Combined gate lane layout: [i_f, i_r, f_f, f_r, g_f, g_r, o_f, o_r]
    (H lanes each); state lane layout: [fwd(0:H) | rev(H:2H)].
    """
    H = p["whh_f"].shape[1]
    din = p["wih_f"].shape[1]

    def gate_blocks(w):      # (4H, K) -> [(K, H)] in PyTorch order [i, f, g, o]
        return [w[g * H:(g + 1) * H, :].T for g in range(4)]

    wif, wir = gate_blocks(p["wih_f"]), gate_blocks(p["wih_r"])
    whf, whr = gate_blocks(p["whh_f"]), gate_blocks(p["whh_r"])
    z_in = jnp.zeros((din, H), jnp.float32)
    z_h = jnp.zeros((H, H), jnp.float32)

    w_in = jnp.concatenate([
        jnp.concatenate([wif[0], z_in, wif[1], z_in,
                         wif[2], z_in, wif[3], z_in], axis=1),
        jnp.concatenate([z_in, wir[0], z_in, wir[1],
                         z_in, wir[2], z_in, wir[3]], axis=1),
    ], axis=0)                                                   # (2*din, 8H)
    w_hh = jnp.concatenate([
        jnp.concatenate([whf[0], z_h, whf[1], z_h,
                         whf[2], z_h, whf[3], z_h], axis=1),
        jnp.concatenate([z_h, whr[0], z_h, whr[1],
                         z_h, whr[2], z_h, whr[3]], axis=1),
    ], axis=0)                                                   # (2H, 8H)

    bf = p["bih_f"] + p["bhh_f"]
    br = p["bih_r"] + p["bhh_r"]
    b = jnp.concatenate(
        [bf[0:H], br[0:H], bf[H:2 * H], br[H:2 * H],
         bf[2 * H:3 * H], br[2 * H:3 * H], bf[3 * H:4 * H], br[3 * H:4 * H]],
        axis=0)[None, :]                                         # (1, 8H)
    return dict(w_in=w_in, w_hh=w_hh, b=b)


def prepare_params(params):
    table = params["embedding"]
    V, E = table.shape
    Vp = -(-V // 8) * 8                      # pad vocab rows (zero, never hit)
    if Vp != V:
        table = jnp.concatenate(
            [table, jnp.zeros((Vp - V, E), table.dtype)], axis=0)
    return dict(
        table=table,
        lstm1=_prep_bilstm(params["bilstm1"]),
        lstm2=_prep_bilstm(params["bilstm2"]),
        w1t=params["w1"].T,
        b1=params["b1"][None, :],
        w2t=params["w2"].T,
        b2=params["b2"][None, :],
    )


# --------------------------------------------------------------------------
# Deterministic parameter init (raw PyTorch layout)
# --------------------------------------------------------------------------
def _lstm_params(key, din, h, scale=0.1):
    ks = jax.random.split(key, 8)
    return dict(
        wih_f=scale * jax.random.normal(ks[0], (4 * h, din), jnp.float32),
        whh_f=scale * jax.random.normal(ks[1], (4 * h, h), jnp.float32),
        bih_f=scale * jax.random.normal(ks[2], (4 * h,), jnp.float32),
        bhh_f=scale * jax.random.normal(ks[3], (4 * h,), jnp.float32),
        wih_r=scale * jax.random.normal(ks[4], (4 * h, din), jnp.float32),
        whh_r=scale * jax.random.normal(ks[5], (4 * h, h), jnp.float32),
        bih_r=scale * jax.random.normal(ks[6], (4 * h,), jnp.float32),
        bhh_r=scale * jax.random.normal(ks[7], (4 * h,), jnp.float32),
    )


def init_params(key, vocab_size, embed_size, hidden_size, output_size):
    ks = jax.random.split(key, 7)
    scale = 0.1
    return dict(
        embedding=scale * jax.random.normal(ks[0], (vocab_size, embed_size),
                                            jnp.float32),
        bilstm1=_lstm_params(ks[1], embed_size, hidden_size),
        bilstm2=_lstm_params(ks[2], hidden_size, hidden_size),
        w1=scale * jax.random.normal(ks[3], (hidden_size, hidden_size * 8),
                                     jnp.float32),
        b1=scale * jax.random.normal(ks[4], (hidden_size,), jnp.float32),
        w2=scale * jax.random.normal(ks[5], (output_size, hidden_size),
                                     jnp.float32),
        b2=scale * jax.random.normal(ks[6], (output_size,), jnp.float32),
    )


if __name__ == "__main__":
    B, L, V, E, H, O = 2, 8, 50, 32, 32, 3   # embed_size == hidden_size required

    key = jax.random.PRNGKey(0)
    kp, k1, k2 = jax.random.split(key, 3)
    params = init_params(kp, V, E, H, O)
    prepared = prepare_params(params)        # one-time weight packing

    seq1 = jax.random.randint(k1, (B, L), 0, V, dtype=jnp.int32)
    seq2 = jax.random.randint(k2, (B, L), 0, V, dtype=jnp.int32)
    mask1 = jnp.zeros((B, L), jnp.int32)
    mask2 = jnp.zeros((B, L), jnp.int32)

    fwd = jax.jit(esim_forward)
    logit = fwd(prepared, seq1, seq2, mask1, mask2)
    jax.block_until_ready(logit)
    assert logit.shape == (B, O), logit.shape
    print("KERNEL_OK")
</pallas_src>

<mosaic_0001>
module attributes {stable_mosaic.version = 11 : i64} {
  func.func @esim_kernel(%arg0: memref<32x1xi32, #tpu.memory_space<vmem>>, %arg1: memref<56x32xf32, #tpu.memory_space<vmem>>, %arg2: memref<64x256xf32, #tpu.memory_space<vmem>>, %arg3: memref<64x256xf32, #tpu.memory_space<vmem>>, %arg4: memref<1x256xf32, #tpu.memory_space<vmem>>, %arg5: memref<64x256xf32, #tpu.memory_space<vmem>>, %arg6: memref<64x256xf32, #tpu.memory_space<vmem>>, %arg7: memref<1x256xf32, #tpu.memory_space<vmem>>, %arg8: memref<256x32xf32, #tpu.memory_space<vmem>>, %arg9: memref<1x32xf32, #tpu.memory_space<vmem>>, %arg10: memref<32x3xf32, #tpu.memory_space<vmem>>, %arg11: memref<1x3xf32, #tpu.memory_space<vmem>>, %arg12: memref<2x3xf32, #tpu.memory_space<vmem>>) attributes {dimension_semantics = [], scalar_prefetch = 0 : i64, scratch_operands = 0 : i64, tpu.core_type = #tpu.core_type<tc>} {
    %c0 = arith.constant 0 : index
    %c0_0 = arith.constant 0 : index
    %0 = vector.load %arg0[%c0, %c0_0] : memref<32x1xi32, #tpu.memory_space<vmem>>, vector<32x1xi32>
    %1 = tpu.iota {dimensions = array<i32: 1>} : vector<32x56xi32>
    %2 = vector.broadcast %0 : vector<32x1xi32> to vector<32x56xi32>
    %3 = arith.cmpi eq, %1, %2 : vector<32x56xi32>
    %4 = arith.extui %3 : vector<32x56xi1> to vector<32x56xi32>
    %5 = arith.sitofp %4 : vector<32x56xi32> to vector<32x56xf32>
    %c0_1 = arith.constant 0 : index
    %c0_2 = arith.constant 0 : index
    %6 = vector.load %arg1[%c0_1, %c0_2] : memref<56x32xf32, #tpu.memory_space<vmem>>, vector<56x32xf32>
    %cst = arith.constant dense<0.000000e+00> : vector<32x32xf32>
    %7 = tpu.matmul %5, %6, %cst {dimension_numbers = #tpu.dot_dimension_numbers<[1], [0], [0], [1], [0, 0, 1, 1], [], []>} : vector<32x56xf32>, vector<56x32xf32>, vector<32x32xf32> -> vector<32x32xf32>
    %8 = vector.extract_strided_slice %7 {offsets = [0, 0], sizes = [16, 32], strides = [1, 1]} : vector<32x32xf32> to vector<16x32xf32>
    %9 = vector.extract_strided_slice %7 {offsets = [16, 0], sizes = [16, 32], strides = [1, 1]} : vector<32x32xf32> to vector<16x32xf32>
    %c0_3 = arith.constant 0 : index
    %c0_4 = arith.constant 0 : index
    %10 = vector.load %arg2[%c0_3, %c0_4] : memref<64x256xf32, #tpu.memory_space<vmem>>, vector<64x256xf32>
    %c0_5 = arith.constant 0 : index
    %c0_6 = arith.constant 0 : index
    %11 = vector.load %arg3[%c0_5, %c0_6] : memref<64x256xf32, #tpu.memory_space<vmem>>, vector<64x256xf32>
    %c0_7 = arith.constant 0 : index
    %c0_8 = arith.constant 0 : index
    %12 = vector.load %arg4[%c0_7, %c0_8] : memref<1x256xf32, #tpu.memory_space<vmem>>, vector<1x256xf32>
    %c0_9 = arith.constant 0 : index
    %c0_10 = arith.constant 0 : index
    %13 = vector.load %arg5[%c0_9, %c0_10] : memref<64x256xf32, #tpu.memory_space<vmem>>, vector<64x256xf32>
    %c0_11 = arith.constant 0 : index
    %c0_12 = arith.constant 0 : index
    %14 = vector.load %arg6[%c0_11, %c0_12] : memref<64x256xf32, #tpu.memory_space<vmem>>, vector<64x256xf32>
    %c0_13 = arith.constant 0 : index
    %c0_14 = arith.constant 0 : index
    %15 = vector.load %arg7[%c0_13, %c0_14] : memref<1x256xf32, #tpu.memory_space<vmem>>, vector<1x256xf32>
    %16 = vector.extract_strided_slice %8 {offsets = [0, 0], sizes = [2, 32], strides = [1, 1]} : vector<16x32xf32> to vector<2x32xf32>
    %17 = vector.extract_strided_slice %8 {offsets = [14, 0], sizes = [2, 32], strides = [1, 1]} : vector<16x32xf32> to vector<2x32xf32>
    %18 = tpu.concatenate %16, %17 in 1 : vector<2x32xf32>, vector<2x32xf32> -> vector<2x64xf32>
    %19 = vector.extract_strided_slice %8 {offsets = [2, 0], sizes = [2, 32], strides = [1, 1]} : vector<16x32xf32> to vector<2x32xf32>
    %20 = vector.extract_strided_slice %8 {offsets = [12, 0], sizes = [2, 32], strides = [1, 1]} : vector<16x32xf32> to vector<2x32xf32>
    %21 = tpu.concatenate %19, %20 in 1 : vector<2x32xf32>, vector<2x32xf32> -> vector<2x64xf32>
    %22 = vector.extract_strided_slice %8 {offsets = [4, 0], sizes = [2, 32], strides = [1, 1]} : vector<16x32xf32> to vector<2x32xf32>
    %23 = vector.extract_strided_slice %8 {offsets = [10, 0], sizes = [2, 32], strides = [1, 1]} : vector<16x32xf32> to vector<2x32xf32>
    %24 = tpu.concatenate %22, %23 in 1 : vector<2x32xf32>, vector<2x32xf32> -> vector<2x64xf32>
    %25 = vector.extract_strided_slice %8 {offsets = [6, 0], sizes = [2, 32], strides = [1, 1]} : vector<16x32xf32> to vector<2x32xf32>
    %26 = vector.extract_strided_slice %8 {offsets = [8, 0], sizes = [2, 32], strides = [1, 1]} : vector<16x32xf32> to vector<2x32xf32>
    %27 = tpu.concatenate %25, %26 in 1 : vector<2x32xf32>, vector<2x32xf32> -> vector<2x64xf32>
    %28 = vector.extract_strided_slice %8 {offsets = [8, 0], sizes = [2, 32], strides = [1, 1]} : vector<16x32xf32> to vector<2x32xf32>
    %29 = vector.extract_strided_slice %8 {offsets = [6, 0], sizes = [2, 32], strides = [1, 1]} : vector<16x32xf32> to vector<2x32xf32>
    %30 = tpu.concatenate %28, %29 in 1 : vector<2x32xf32>, vector<2x32xf32> -> vector<2x64xf32>
    %31 = vector.extract_strided_slice %8 {offsets = [10, 0], sizes = [2, 32], strides = [1, 1]} : vector<16x32xf32> to vector<2x32xf32>
    %32 = vector.extract_strided_slice %8 {offsets = [4, 0], sizes = [2, 32], strides = [1, 1]} : vector<16x32xf32> to vector<2x32xf32>
    %33 = tpu.concatenate %31, %32 in 1 : vector<2x32xf32>, vector<2x32xf32> -> vector<2x64xf32>
    %34 = vector.extract_strided_slice %8 {offsets = [12, 0], sizes = [2, 32], strides = [1, 1]} : vector<16x32xf32> to vector<2x32xf32>
    %35 = vector.extract_strided_slice %8 {offsets = [2, 0], sizes = [2, 32], strides = [1, 1]} : vector<16x32xf32> to vector<2x32xf32>
    %36 = tpu.concatenate %34, %35 in 1 : vector<2x32xf32>, vector<2x32xf32> -> vector<2x64xf32>
    %37 = vector.extract_strided_slice %8 {offsets = [14, 0], sizes = [2, 32], strides = [1, 1]} : vector<16x32xf32> to vector<2x32xf32>
    %38 = vector.extract_strided_slice %8 {offsets = [0, 0], sizes = [2, 32], strides = [1, 1]} : vector<16x32xf32> to vector<2x32xf32>
    %39 = tpu.concatenate %37, %38 in 1 : vector<2x32xf32>, vector<2x32xf32> -> vector<2x64xf32>
    %40 = tpu.concatenate %18, %21, %24, %27, %30, %33, %36, %39 in 0 : vector<2x64xf32>, vector<2x64xf32>, vector<2x64xf32>, vector<2x64xf32>, vector<2x64xf32>, vector<2x64xf32>, vector<2x64xf32>, vector<2x64xf32> -> vector<16x64xf32>
    %cst_15 = arith.constant dense<0.000000e+00> : vector<16x256xf32>
    %41 = tpu.matmul %40, %10, %cst_15 {dimension_numbers = #tpu.dot_dimension_numbers<[1], [0], [0], [1], [0, 0, 1, 1], [], []>} : vector<16x64xf32>, vector<64x256xf32>, vector<16x256xf32> -> vector<16x256xf32>
    %42 = vector.broadcast %12 : vector<1x256xf32> to vector<16x256xf32>
    %43 = arith.addf %41, %42 : vector<16x256xf32>
    %44 = tpu.iota {dimensions = array<i32: 1>} : vector<2x256xi32>
    %c128_i32 = arith.constant 128 : i32
    %45 = vector.broadcast %c128_i32 : i32 to vector<2x256xi32>
    %46 = arith.cmpi sge, %44, %45 : vector<2x256xi32>
    %c192_i32 = arith.constant 192 : i32
    %47 = vector.broadcast %c192_i32 : i32 to vector<2x256xi32>
    %48 = arith.cmpi slt, %44, %47 : vector<2x256xi32>
    %49 = arith.andi %46, %48 : vector<2x256xi1>
    %cst_16 = arith.constant 0.000000e+00 : f32
    %50 = vector.broadcast %cst_16 : f32 to vector<2x64xf32>
    %cst_17 = arith.constant 0.000000e+00 : f32
    %51 = vector.broadcast %cst_17 : f32 to vector<2x64xf32>
    %52 = vector.extract_strided_slice %43 {offsets = [0, 0], sizes = [2, 256], strides = [1, 1]} : vector<16x256xf32> to vector<2x256xf32>
    %cst_18 = arith.constant dense<0.000000e+00> : vector<2x256xf32>
    %53 = tpu.matmul %50, %11, %cst_18 {dimension_numbers = #tpu.dot_dimension_numbers<[1], [0], [0], [1], [0, 0, 1, 1], [], []>} : vector<2x64xf32>, vector<64x256xf32>, vector<2x256xf32> -> vector<2x256xf32>
    %54 = arith.addf %52, %53 : vector<2x256xf32>
    %55 = math.tanh %54 : vector<2x256xf32>
    %56 = arith.negf %54 : vector<2x256xf32>
    %57 = math.exp %56 : vector<2x256xf32>
    %cst_19 = arith.constant 1.000000e+00 : f32
    %58 = vector.broadcast %cst_19 : f32 to vector<2x256xf32>
    %59 = arith.addf %58, %57 : vector<2x256xf32>
    %60 = arith.divf %58, %59 : vector<2x256xf32>
    %61 = arith.select %49, %55, %60 : vector<2x256xi1>, vector<2x256xf32>
    %62 = vector.extract_strided_slice %61 {offsets = [0, 64], sizes = [2, 64], strides = [1, 1]} : vector<2x256xf32> to vector<2x64xf32>
    %63 = arith.mulf %62, %51 : vector<2x64xf32>
    %64 = vector.extract_strided_slice %61 {offsets = [0, 0], sizes = [2, 64], strides = [1, 1]} : vector<2x256xf32> to vector<2x64xf32>
    %65 = vector.extract_strided_slice %61 {offsets = [0, 128], sizes = [2, 64], strides = [1, 1]} : vector<2x256xf32> to vector<2x64xf32>
    %66 = arith.mulf %64, %65 : vector<2x64xf32>
    %67 = arith.addf %63, %66 : vector<2x64xf32>
    %68 = vector.extract_strided_slice %61 {offsets = [0, 192], sizes = [2, 64], strides = [1, 1]} : vector<2x256xf32> to vector<2x64xf32>
    %69 = math.tanh %67 : vector<2x64xf32>
    %70 = arith.mulf %68, %69 : vector<2x64xf32>
    %71 = vector.extract_strided_slice %43 {offsets = [2, 0], sizes = [2, 256], strides = [1, 1]} : vector<16x256xf32> to vector<2x256xf32>
    %cst_20 = arith.constant dense<0.000000e+00> : vector<2x256xf32>
    %72 = tpu.matmul %70, %11, %cst_20 {dimension_numbers = #tpu.dot_dimension_numbers<[1], [0], [0], [1], [0, 0, 1, 1], [], []>} : vector<2x64xf32>, vector<64x256xf32>, vector<2x256xf32> -> vector<2x256xf32>
    %73 = arith.addf %71, %72 : vector<2x256xf32>
    %74 = math.tanh %73 : vector<2x256xf32>
    %75 = arith.negf %73 : vector<2x256xf32>
    %76 = math.exp %75 : vector<2x256xf32>
    %cst_21 = arith.constant 1.000000e+00 : f32
    %77 = vector.broadcast %cst_21 : f32 to vector<2x256xf32>
    %78 = arith.addf %77, %76 : vector<2x256xf32>
    %79 = arith.divf %77, %78 : vector<2x256xf32>
    %80 = arith.select %49, %74, %79 : vector<2x256xi1>, vector<2x256xf32>
    %81 = vector.extract_strided_slice %80 {offsets = [0, 64], sizes = [2, 64], strides = [1, 1]} : vector<2x256xf32> to vector<2x64xf32>
    %82 = arith.mulf %81, %67 : vector<2x64xf32>
    %83 = vector.extract_strided_slice %80 {offsets = [0, 0], sizes = [2, 64], strides = [1, 1]} : vector<2x256xf32> to vector<2x64xf32>
    %84 = vector.extract_strided_slice %80 {offsets = [0, 128], sizes = [2, 64], strides = [1, 1]} : vector<2x256xf32> to vector<2x64xf32>
    %85 = arith.mulf %83, %84 : vector<2x64xf32>
    %86 = arith.addf %82, %85 : vector<2x64xf32>
    %87 = vector.extract_strided_slice %80 {offsets = [0, 192], sizes = [2, 64], strides = [1, 1]} : vector<2x256xf32> to vector<2x64xf32>
    %88 = math.tanh %86 : vector<2x64xf32>
    %89 = arith.mulf %87, %88 : vector<2x64xf32>
    %90 = vector.extract_strided_slice %43 {offsets = [4, 0], sizes = [2, 256], strides = [1, 1]} : vector<16x256xf32> to vector<2x256xf32>
    %cst_22 = arith.constant dense<0.000000e+00> : vector<2x256xf32>
    %91 = tpu.matmul %89, %11, %cst_22 {dimension_numbers = #tpu.dot_dimension_numbers<[1], [0], [0], [1], [0, 0, 1, 1], [], []>} : vector<2x64xf32>, vector<64x256xf32>, vector<2x256xf32> -> vector<2x256xf32>
    %92 = arith.addf %90, %91 : vector<2x256xf32>
    %93 = math.tanh %92 : vector<2x256xf32>
    %94 = arith.negf %92 : vector<2x256xf32>
    %95 = math.exp %94 : vector<2x256xf32>
    %cst_23 = arith.constant 1.000000e+00 : f32
    %96 = vector.broadcast %cst_23 : f32 to vector<2x256xf32>
    %97 = arith.addf %96, %95 : vector<2x256xf32>
    %98 = arith.divf %96, %97 : vector<2x256xf32>
    %99 = arith.select %49, %93, %98 : vector<2x256xi1>, vector<2x256xf32>
    %100 = vector.extract_strided_slice %99 {offsets = [0, 64], sizes = [2, 64], strides = [1, 1]} : vector<2x256xf32> to vector<2x64xf32>
    %101 = arith.mulf %100, %86 : vector<2x64xf32>
    %102 = vector.extract_strided_slice %99 {offsets = [0, 0], sizes = [2, 64], strides = [1, 1]} : vector<2x256xf32> to vector<2x64xf32>
    %103 = vector.extract_strided_slice %99 {offsets = [0, 128], sizes = [2, 64], strides = [1, 1]} : vector<2x256xf32> to vector<2x64xf32>
    %104 = arith.mulf %102, %103 : vector<2x64xf32>
    %105 = arith.addf %101, %104 : vector<2x64xf32>
    %106 = vector.extract_strided_slice %99 {offsets = [0, 192], sizes = [2, 64], strides = [1, 1]} : vector<2x256xf32> to vector<2x64xf32>
    %107 = math.tanh %105 : vector<2x64xf32>
    %108 = arith.mulf %106, %107 : vector<2x64xf32>
    %109 = vector.extract_strided_slice %43 {offsets = [6, 0], sizes = [2, 256], strides = [1, 1]} : vector<16x256xf32> to vector<2x256xf32>
    %cst_24 = arith.constant dense<0.000000e+00> : vector<2x256xf32>
    %110 = tpu.matmul %108, %11, %cst_24 {dimension_numbers = #tpu.dot_dimension_numbers<[1], [0], [0], [1], [0, 0, 1, 1], [], []>} : vector<2x64xf32>, vector<64x256xf32>, vector<2x256xf32> -> vector<2x256xf32>
    %111 = arith.addf %109, %110 : vector<2x256xf32>
    %112 = math.tanh %111 : vector<2x256xf32>
    %113 = arith.negf %111 : vector<2x256xf32>
    %114 = math.exp %113 : vector<2x256xf32>
    %cst_25 = arith.constant 1.000000e+00 : f32
    %115 = vector.broadcast %cst_25 : f32 to vector<2x256xf32>
    %116 = arith.addf %115, %114 : vector<2x256xf32>
    %117 = arith.divf %115, %116 : vector<2x256xf32>
    %118 = arith.select %49, %112, %117 : vector<2x256xi1>, vector<2x256xf32>
    %119 = vector.extract_strided_slice %118 {offsets = [0, 64], sizes = [2, 64], strides = [1, 1]} : vector<2x256xf32> to vector<2x64xf32>
    %120 = arith.mulf %119, %105 : vector<2x64xf32>
    %121 = vector.extract_strided_slice %118 {offsets = [0, 0], sizes = [2, 64], strides = [1, 1]} : vector<2x256xf32> to vector<2x64xf32>
    %122 = vector.extract_strided_slice %118 {offsets = [0, 128], sizes = [2, 64], strides = [1, 1]} : vector<2x256xf32> to vector<2x64xf32>
    %123 = arith.mulf %121, %122 : vector<2x64xf32>
    %124 = arith.addf %120, %123 : vector<2x64xf32>
    %125 = vector.extract_strided_slice %118 {offsets = [0, 192], sizes = [2, 64], strides = [1, 1]} : vector<2x256xf32> to vector<2x64xf32>
    %126 = math.tanh %124 : vector<2x64xf32>
    %127 = arith.mulf %125, %126 : vector<2x64xf32>
    %128 = vector.extract_strided_slice %43 {offsets = [8, 0], sizes = [2, 256], strides = [1, 1]} : vector<16x256xf32> to vector<2x256xf32>
    %cst_26 = arith.constant dense<0.000000e+00> : vector<2x256xf32>
    %129 = tpu.matmul %127, %11, %cst_26 {dimension_numbers = #tpu.dot_dimension_numbers<[1], [0], [0], [1], [0, 0, 1, 1], [], []>} : vector<2x64xf32>, vector<64x256xf32>, vector<2x256xf32> -> vector<2x256xf32>
    %130 = arith.addf %128, %129 : vector<2x256xf32>
    %131 = math.tanh %130 : vector<2x256xf32>
    %132 = arith.negf %130 : vector<2x256xf32>
    %133 = math.exp %132 : vector<2x256xf32>
    %cst_27 = arith.constant 1.000000e+00 : f32
    %134 = vector.broadcast %cst_27 : f32 to vector<2x256xf32>
    %135 = arith.addf %134, %133 : vector<2x256xf32>
    %136 = arith.divf %134, %135 : vector<2x256xf32>
    %137 = arith.select %49, %131, %136 : vector<2x256xi1>, vector<2x256xf32>
    %138 = vector.extract_strided_slice %137 {offsets = [0, 64], sizes = [2, 64], strides = [1, 1]} : vector<2x256xf32> to vector<2x64xf32>
    %139 = arith.mulf %138, %124 : vector<2x64xf32>
    %140 = vector.extract_strided_slice %137 {offsets = [0, 0], sizes = [2, 64], strides = [1, 1]} : vector<2x256xf32> to vector<2x64xf32>
    %141 = vector.extract_strided_slice %137 {offsets = [0, 128], sizes = [2, 64], strides = [1, 1]} : vector<2x256xf32> to vector<2x64xf32>
    %142 = arith.mulf %140, %141 : vector<2x64xf32>
    %143 = arith.addf %139, %142 : vector<2x64xf32>
    %144 = vector.extract_strided_slice %137 {offsets = [0, 192], sizes = [2, 64], strides = [1, 1]} : vector<2x256xf32> to vector<2x64xf32>
    %145 = math.tanh %143 : vector<2x64xf32>
    %146 = arith.mulf %144, %145 : vector<2x64xf32>
    %147 = vector.extract_strided_slice %43 {offsets = [10, 0], sizes = [2, 256], strides = [1, 1]} : vector<16x256xf32> to vector<2x256xf32>
    %cst_28 = arith.constant dense<0.000000e+00> : vector<2x256xf32>
    %148 = tpu.matmul %146, %11, %cst_28 {dimension_numbers = #tpu.dot_dimension_numbers<[1], [0], [0], [1], [0, 0, 1, 1], [], []>} : vector<2x64xf32>, vector<64x256xf32>, vector<2x256xf32> -> vector<2x256xf32>
    %149 = arith.addf %147, %148 : vector<2x256xf32>
    %150 = math.tanh %149 : vector<2x256xf32>
    %151 = arith.negf %149 : vector<2x256xf32>
    %152 = math.exp %151 : vector<2x256xf32>
    %cst_29 = arith.constant 1.000000e+00 : f32
    %153 = vector.broadcast %cst_29 : f32 to vector<2x256xf32>
    %154 = arith.addf %153, %152 : vector<2x256xf32>
    %155 = arith.divf %153, %154 : vector<2x256xf32>
    %156 = arith.select %49, %150, %155 : vector<2x256xi1>, vector<2x256xf32>
    %157 = vector.extract_strided_slice %156 {offsets = [0, 64], sizes = [2, 64], strides = [1, 1]} : vector<2x256xf32> to vector<2x64xf32>
    %158 = arith.mulf %157, %143 : vector<2x64xf32>
    %159 = vector.extract_strided_slice %156 {offsets = [0, 0], sizes = [2, 64], strides = [1, 1]} : vector<2x256xf32> to vector<2x64xf32>
    %160 = vector.extract_strided_slice %156 {offsets = [0, 128], sizes = [2, 64], strides = [1, 1]} : vector<2x256xf32> to vector<2x64xf32>
    %161 = arith.mulf %159, %160 : vector<2x64xf32>
    %162 = arith.addf %158, %161 : vector<2x64xf32>
    %163 = vector.extract_strided_slice %156 {offsets = [0, 192], sizes = [2, 64], strides = [1, 1]} : vector<2x256xf32> to vector<2x64xf32>
    %164 = math.tanh %162 : vector<2x64xf32>
    %165 = arith.mulf %163, %164 : vector<2x64xf32>
    %166 = vector.extract_strided_slice %43 {offsets = [12, 0], sizes = [2, 256], strides = [1, 1]} : vector<16x256xf32> to vector<2x256xf32>
    %cst_30 = arith.constant dense<0.000000e+00> : vector<2x256xf32>
    %167 = tpu.matmul %165, %11, %cst_30 {dimension_numbers = #tpu.dot_dimension_numbers<[1], [0], [0], [1], [0, 0, 1, 1], [], []>} : vector<2x64xf32>, vector<64x256xf32>, vector<2x256xf32> -> vector<2x256xf32>
    %168 = arith.addf %166, %167 : vector<2x256xf32>
    %169 = math.tanh %168 : vector<2x256xf32>
    %170 = arith.negf %168 : vector<2x256xf32>
    %171 = math.exp %170 : vector<2x256xf32>
    %cst_31 = arith.constant 1.000000e+00 : f32
    %172 = vector.broadcast %cst_31 : f32 to vector<2x256xf32>
    %173 = arith.addf %172, %171 : vector<2x256xf32>
    %174 = arith.divf %172, %173 : vector<2x256xf32>
    %175 = arith.select %49, %169, %174 : vector<2x256xi1>, vector<2x256xf32>
    %176 = vector.extract_strided_slice %175 {offsets = [0, 64], sizes = [2, 64], strides = [1, 1]} : vector<2x256xf32> to vector<2x64xf32>
    %177 = arith.mulf %176, %162 : vector<2x64xf32>
    %178 = vector.extract_strided_slice %175 {offsets = [0, 0], sizes = [2, 64], strides = [1, 1]} : vector<2x256xf32> to vector<2x64xf32>
    %179 = vector.extract_strided_slice %175 {offsets = [0, 128], sizes = [2, 64], strides = [1, 1]} : vector<2x256xf32> to vector<2x64xf32>
    %180 = arith.mulf %178, %179 : vector<2x64xf32>
    %181 = arith.addf %177, %180 : vector<2x64xf32>
    %182 = vector.extract_strided_slice %175 {offsets = [0, 192], sizes = [2, 64], strides = [1, 1]} : vector<2x256xf32> to vector<2x64xf32>
    %183 = math.tanh %181 : vector<2x64xf32>
    %184 = arith.mulf %182, %183 : vector<2x64xf32>
    %185 = vector.extract_strided_slice %43 {offsets = [14, 0], sizes = [2, 256], strides = [1, 1]} : vector<16x256xf32> to vector<2x256xf32>
    %cst_32 = arith.constant dense<0.000000e+00> : vector<2x256xf32>
    %186 = tpu.matmul %184, %11, %cst_32 {dimension_numbers = #tpu.dot_dimension_numbers<[1], [0], [0], [1], [0, 0, 1, 1], [], []>} : vector<2x64xf32>, vector<64x256xf32>, vector<2x256xf32> -> vector<2x256xf32>
    %187 = arith.addf %185, %186 : vector<2x256xf32>
    %188 = math.tanh %187 : vector<2x256xf32>
    %189 = arith.negf %187 : vector<2x256xf32>
    %190 = math.exp %189 : vector<2x256xf32>
    %cst_33 = arith.constant 1.000000e+00 : f32
    %191 = vector.broadcast %cst_33 : f32 to vector<2x256xf32>
    %192 = arith.addf %191, %190 : vector<2x256xf32>
    %193 = arith.divf %191, %192 : vector<2x256xf32>
    %194 = arith.select %49, %188, %193 : vector<2x256xi1>, vector<2x256xf32>
    %195 = vector.extract_strided_slice %194 {offsets = [0, 64], sizes = [2, 64], strides = [1, 1]} : vector<2x256xf32> to vector<2x64xf32>
    %196 = arith.mulf %195, %181 : vector<2x64xf32>
    %197 = vector.extract_strided_slice %194 {offsets = [0, 0], sizes = [2, 64], strides = [1, 1]} : vector<2x256xf32> to vector<2x64xf32>
    %198 = vector.extract_strided_slice %194 {offsets = [0, 128], sizes = [2, 64], strides = [1, 1]} : vector<2x256xf32> to vector<2x64xf32>
    %199 = arith.mulf %197, %198 : vector<2x64xf32>
    %200 = arith.addf %196, %199 : vector<2x64xf32>
    %201 = vector.extract_strided_slice %194 {offsets = [0, 192], sizes = [2, 64], strides = [1, 1]} : vector<2x256xf32> to vector<2x64xf32>
    %202 = math.tanh %200 : vector<2x64xf32>
    %203 = arith.mulf %201, %202 : vector<2x64xf32>
    %204 = vector.extract_strided_slice %70 {offsets = [0, 0], sizes = [2, 32], strides = [1, 1]} : vector<2x64xf32> to vector<2x32xf32>
    %205 = vector.extract_strided_slice %203 {offsets = [0, 32], sizes = [2, 32], strides = [1, 1]} : vector<2x64xf32> to vector<2x32xf32>
    %206 = tpu.concatenate %204, %205 in 1 : vector<2x32xf32>, vector<2x32xf32> -> vector<2x64xf32>
    %207 = vector.extract_strided_slice %89 {offsets = [0, 0], sizes = [2, 32], strides = [1, 1]} : vector<2x64xf32> to vector<2x32xf32>
    %208 = vector.extract_strided_slice %184 {offsets = [0, 32], sizes = [2, 32], strides = [1, 1]} : vector<2x64xf32> to vector<2x32xf32>
    %209 = tpu.concatenate %207, %208 in 1 : vector<2x32xf32>, vector<2x32xf32> -> vector<2x64xf32>
    %210 = vector.extract_strided_slice %108 {offsets = [0, 0], sizes = [2, 32], strides = [1, 1]} : vector<2x64xf32> to vector<2x32xf32>
    %211 = vector.extract_strided_slice %165 {offsets = [0, 32], sizes = [2, 32], strides = [1, 1]} : vector<2x64xf32> to vector<2x32xf32>
    %212 = tpu.concatenate %210, %211 in 1 : vector<2x32xf32>, vector<2x32xf32> -> vector<2x64xf32>
    %213 = vector.extract_strided_slice %127 {offsets = [0, 0], sizes = [2, 32], strides = [1, 1]} : vector<2x64xf32> to vector<2x32xf32>
    %214 = vector.extract_strided_slice %146 {offsets = [0, 32], sizes = [2, 32], strides = [1, 1]} : vector<2x64xf32> to vector<2x32xf32>
    %215 = tpu.concatenate %213, %214 in 1 : vector<2x32xf32>, vector<2x32xf32> -> vector<2x64xf32>
    %216 = vector.extract_strided_slice %146 {offsets = [0, 0], sizes = [2, 32], strides = [1, 1]} : vector<2x64xf32> to vector<2x32xf32>
    %217 = vector.extract_strided_slice %127 {offsets = [0, 32], sizes = [2, 32], strides = [1, 1]} : vector<2x64xf32> to vector<2x32xf32>
    %218 = tpu.concatenate %216, %217 in 1 : vector<2x32xf32>, vector<2x32xf32> -> vector<2x64xf32>
    %219 = vector.extract_strided_slice %165 {offsets = [0, 0], sizes = [2, 32], strides = [1, 1]} : vector<2x64xf32> to vector<2x32xf32>
    %220 = vector.extract_strided_slice %108 {offsets = [0, 32], sizes = [2, 32], strides = [1, 1]} : vector<2x64xf32> to vector<2x32xf32>
    %221 = tpu.concatenate %219, %220 in 1 : vector<2x32xf32>, vector<2x32xf32> -> vector<2x64xf32>
    %222 = vector.extract_strided_slice %184 {offsets = [0, 0], sizes = [2, 32], strides = [1, 1]} : vector<2x64xf32> to vector<2x32xf32>
    %223 = vector.extract_strided_slice %89 {offsets = [0, 32], sizes = [2, 32], strides = [1, 1]} : vector<2x64xf32> to vector<2x32xf32>
    %224 = tpu.concatenate %222, %223 in 1 : vector<2x32xf32>, vector<2x32xf32> -> vector<2x64xf32>
    %225 = vector.extract_strided_slice %203 {offsets = [0, 0], sizes = [2, 32], strides = [1, 1]} : vector<2x64xf32> to vector<2x32xf32>
    %226 = vector.extract_strided_slice %70 {offsets = [0, 32], sizes = [2, 32], strides = [1, 1]} : vector<2x64xf32> to vector<2x32xf32>
    %227 = tpu.concatenate %225, %226 in 1 : vector<2x32xf32>, vector<2x32xf32> -> vector<2x64xf32>
    %228 = tpu.concatenate %206, %209, %212, %215, %218, %221, %224, %227 in 0 : vector<2x64xf32>, vector<2x64xf32>, vector<2x64xf32>, vector<2x64xf32>, vector<2x64xf32>, vector<2x64xf32>, vector<2x64xf32>, vector<2x64xf32> -> vector<16x64xf32>
    %229 = vector.extract_strided_slice %9 {offsets = [0, 0], sizes = [2, 32], strides = [1, 1]} : vector<16x32xf32> to vector<2x32xf32>
    %230 = vector.extract_strided_slice %9 {offsets = [14, 0], sizes = [2, 32], strides = [1, 1]} : vector<16x32xf32> to vector<2x32xf32>
    %231 = tpu.concatenate %229, %230 in 1 : vector<2x32xf32>, vector<2x32xf32> -> vector<2x64xf32>
    %232 = vector.extract_strided_slice %9 {offsets = [2, 0], sizes = [2, 32], strides = [1, 1]} : vector<16x32xf32> to vector<2x32xf32>
    %233 = vector.extract_strided_slice %9 {offsets = [12, 0], sizes = [2, 32], strides = [1, 1]} : vector<16x32xf32> to vector<2x32xf32>
    %234 = tpu.concatenate %232, %233 in 1 : vector<2x32xf32>, vector<2x32xf32> -> vector<2x64xf32>
    %235 = vector.extract_strided_slice %9 {offsets = [4, 0], sizes = [2, 32], strides = [1, 1]} : vector<16x32xf32> to vector<2x32xf32>
    %236 = vector.extract_strided_slice %9 {offsets = [10, 0], sizes = [2, 32], strides = [1, 1]} : vector<16x32xf32> to vector<2x32xf32>
    %237 = tpu.concatenate %235, %236 in 1 : vector<2x32xf32>, vector<2x32xf32> -> vector<2x64xf32>
    %238 = vector.extract_strided_slice %9 {offsets = [6, 0], sizes = [2, 32], strides = [1, 1]} : vector<16x32xf32> to vector<2x32xf32>
    %239 = vector.extract_strided_slice %9 {offsets = [8, 0], sizes = [2, 32], strides = [1, 1]} : vector<16x32xf32> to vector<2x32xf32>
    %240 = tpu.concatenate %238, %239 in 1 : vector<2x32xf32>, vector<2x32xf32> -> vector<2x64xf32>
    %241 = vector.extract_strided_slice %9 {offsets = [8, 0], sizes = [2, 32], strides = [1, 1]} : vector<16x32xf32> to vector<2x32xf32>
    %242 = vector.extract_strided_slice %9 {offsets = [6, 0], sizes = [2, 32], strides = [1, 1]} : vector<16x32xf32> to vector<2x32xf32>
    %243 = tpu.concatenate %241, %242 in 1 : vector<2x32xf32>, vector<2x32xf32> -> vector<2x64xf32>
    %244 = vector.extract_strided_slice %9 {offsets = [10, 0], sizes = [2, 32], strides = [1, 1]} : vector<16x32xf32> to vector<2x32xf32>
    %245 = vector.extract_strided_slice %9 {offsets = [4, 0], sizes = [2, 32], strides = [1, 1]} : vector<16x32xf32> to vector<2x32xf32>
    %246 = tpu.concatenate %244, %245 in 1 : vector<2x32xf32>, vector<2x32xf32> -> vector<2x64xf32>
    %247 = vector.extract_strided_slice %9 {offsets = [12, 0], sizes = [2, 32], strides = [1, 1]} : vector<16x32xf32> to vector<2x32xf32>
    %248 = vector.extract_strided_slice %9 {offsets = [2, 0], sizes = [2, 32], strides = [1, 1]} : vector<16x32xf32> to vector<2x32xf32>
    %249 = tpu.concatenate %247, %248 in 1 : vector<2x32xf32>, vector<2x32xf32> -> vector<2x64xf32>
    %250 = vector.extract_strided_slice %9 {offsets = [14, 0], sizes = [2, 32], strides = [1, 1]} : vector<16x32xf32> to vector<2x32xf32>
    %251 = vector.extract_strided_slice %9 {offsets = [0, 0], sizes = [2, 32], strides = [1, 1]} : vector<16x32xf32> to vector<2x32xf32>
    %252 = tpu.concatenate %250, %251 in 1 : vector<2x32xf32>, vector<2x32xf32> -> vector<2x64xf32>
    %253 = tpu.concatenate %231, %234, %237, %240, %243, %246, %249, %252 in 0 : vector<2x64xf32>, vector<2x64xf32>, vector<2x64xf32>, vector<2x64xf32>, vector<2x64xf32>, vector<2x64xf32>, vector<2x64xf32>, vector<2x64xf32> -> vector<16x64xf32>
    %cst_34 = arith.constant dense<0.000000e+00> : vector<16x256xf32>
    %254 = tpu.matmul %253, %13, %cst_34 {dimension_numbers = #tpu.dot_dimension_numbers<[1], [0], [0], [1], [0, 0, 1, 1], [], []>} : vector<16x64xf32>, vector<64x256xf32>, vector<16x256xf32> -> vector<16x256xf32>
    %255 = vector.broadcast %15 : vector<1x256xf32> to vector<16x256xf32>
    %256 = arith.addf %254, %255 : vector<16x256xf32>
    %257 = tpu.iota {dimensions = array<i32: 1>} : vector<2x256xi32>
    %c128_i32_35 = arith.constant 128 : i32
    %258 = vector.broadcast %c128_i32_35 : i32 to vector<2x256xi32>
    %259 = arith.cmpi sge, %257, %258 : vector<2x256xi32>
    %c192_i32_36 = arith.constant 192 : i32
    %260 = vector.broadcast %c192_i32_36 : i32 to vector<2x256xi32>
    %261 = arith.cmpi slt, %257, %260 : vector<2x256xi32>
    %262 = arith.andi %259, %261 : vector<2x256xi1>
    %cst_37 = arith.constant 0.000000e+00 : f32
    %263 = vector.broadcast %cst_37 : f32 to vector<2x64xf32>
    %cst_38 = arith.constant 0.000000e+00 : f32
    %264 = vector.broadcast %cst_38 : f32 to vector<2x64xf32>
    %265 = vector.extract_strided_slice %256 {offsets = [0, 0], sizes = [2, 256], strides = [1, 1]} : vector<16x256xf32> to vector<2x256xf32>
    %cst_39 = arith.constant dense<0.000000e+00> : vector<2x256xf32>
    %266 = tpu.matmul %263, %14, %cst_39 {dimension_numbers = #tpu.dot_dimension_numbers<[1], [0], [0], [1], [0, 0, 1, 1], [], []>} : vector<2x64xf32>, vector<64x256xf32>, vector<2x256xf32> -> vector<2x256xf32>
    %267 = arith.addf %265, %266 : vector<2x256xf32>
    %268 = math.tanh %267 : vector<2x256xf32>
    %269 = arith.negf %267 : vector<2x256xf32>
    %270 = math.exp %269 : vector<2x256xf32>
    %cst_40 = arith.constant 1.000000e+00 : f32
    %271 = vector.broadcast %cst_40 : f32 to vector<2x256xf32>
    %272 = arith.addf %271, %270 : vector<2x256xf32>
    %273 = arith.divf %271, %272 : vector<2x256xf32>
    %274 = arith.select %262, %268, %273 : vector<2x256xi1>, vector<2x256xf32>
    %275 = vector.extract_strided_slice %274 {offsets = [0, 64], sizes = [2, 64], strides = [1, 1]} : vector<2x256xf32> to vector<2x64xf32>
    %276 = arith.mulf %275, %264 : vector<2x64xf32>
    %277 = vector.extract_strided_slice %274 {offsets = [0, 0], sizes = [2, 64], strides = [1, 1]} : vector<2x256xf32> to vector<2x64xf32>
    %278 = vector.extract_strided_slice %274 {offsets = [0, 128], sizes = [2, 64], strides = [1, 1]} : vector<2x256xf32> to vector<2x64xf32>
    %279 = arith.mulf %277, %278 : vector<2x64xf32>
    %280 = arith.addf %276, %279 : vector<2x64xf32>
    %281 = vector.extract_strided_slice %274 {offsets = [0, 192], sizes = [2, 64], strides = [1, 1]} : vector<2x256xf32> to vector<2x64xf32>
    %282 = math.tanh %280 : vector<2x64xf32>
    %283 = arith.mulf %281, %282 : vector<2x64xf32>
    %284 = vector.extract_strided_slice %256 {offsets = [2, 0], sizes = [2, 256], strides = [1, 1]} : vector<16x256xf32> to vector<2x256xf32>
    %cst_41 = arith.constant dense<0.000000e+00> : vector<2x256xf32>
    %285 = tpu.matmul %283, %14, %cst_41 {dimension_numbers = #tpu.dot_dimension_numbers<[1], [0], [0], [1], [0, 0, 1, 1], [], []>} : vector<2x64xf32>, vector<64x256xf32>, vector<2x256xf32> -> vector<2x256xf32>
    %286 = arith.addf %284, %285 : vector<2x256xf32>
    %287 = math.tanh %286 : vector<2x256xf32>
    %288 = arith.negf %286 : vector<2x256xf32>
    %289 = math.exp %288 : vector<2x256xf32>
    %cst_42 = arith.constant 1.000000e+00 : f32
    %290 = vector.broadcast %cst_42 : f32 to vector<2x256xf32>
    %291 = arith.addf %290, %289 : vector<2x256xf32>
    %292 = arith.divf %290, %291 : vector<2x256xf32>
    %293 = arith.select %262, %287, %292 : vector<2x256xi1>, vector<2x256xf32>
    %294 = vector.extract_strided_slice %293 {offsets = [0, 64], sizes = [2, 64], strides = [1, 1]} : vector<2x256xf32> to vector<2x64xf32>
    %295 = arith.mulf %294, %280 : vector<2x64xf32>
    %296 = vector.extract_strided_slice %293 {offsets = [0, 0], sizes = [2, 64], strides = [1, 1]} : vector<2x256xf32> to vector<2x64xf32>
    %297 = vector.extract_strided_slice %293 {offsets = [0, 128], sizes = [2, 64], strides = [1, 1]} : vector<2x256xf32> to vector<2x64xf32>
    %298 = arith.mulf %296, %297 : vector<2x64xf32>
    %299 = arith.addf %295, %298 : vector<2x64xf32>
    %300 = vector.extract_strided_slice %293 {offsets = [0, 192], sizes = [2, 64], strides = [1, 1]} : vector<2x256xf32> to vector<2x64xf32>
    %301 = math.tanh %299 : vector<2x64xf32>
    %302 = arith.mulf %300, %301 : vector<2x64xf32>
    %303 = vector.extract_strided_slice %256 {offsets = [4, 0], sizes = [2, 256], strides = [1, 1]} : vector<16x256xf32> to vector<2x256xf32>
    %cst_43 = arith.constant dense<0.000000e+00> : vector<2x256xf32>
    %304 = tpu.matmul %302, %14, %cst_43 {dimension_numbers = #tpu.dot_dimension_numbers<[1], [0], [0], [1], [0, 0, 1, 1], [], []>} : vector<2x64xf32>, vector<64x256xf32>, vector<2x256xf32> -> vector<2x256xf32>
    %305 = arith.addf %303, %304 : vector<2x256xf32>
    %306 = math.tanh %305 : vector<2x256xf32>
    %307 = arith.negf %305 : vector<2x256xf32>
    %308 = math.exp %307 : vector<2x256xf32>
    %cst_44 = arith.constant 1.000000e+00 : f32
    %309 = vector.broadcast %cst_44 : f32 to vector<2x256xf32>
    %310 = arith.addf %309, %308 : vector<2x256xf32>
    %311 = arith.divf %309, %310 : vector<2x256xf32>
    %312 = arith.select %262, %306, %311 : vector<2x256xi1>, vector<2x256xf32>
    %313 = vector.extract_strided_slice %312 {offsets = [0, 64], sizes = [2, 64], strides = [1, 1]} : vector<2x256xf32> to vector<2x64xf32>
    %314 = arith.mulf %313, %299 : vector<2x64xf32>
    %315 = vector.extract_strided_slice %312 {offsets = [0, 0], sizes = [2, 64], strides = [1, 1]} : vector<2x256xf32> to vector<2x64xf32>
    %316 = vector.extract_strided_slice %312 {offsets = [0, 128], sizes = [2, 64], strides = [1, 1]} : vector<2x256xf32> to vector<2x64xf32>
    %317 = arith.mulf %315, %316 : vector<2x64xf32>
    %318 = arith.addf %314, %317 : vector<2x64xf32>
    %319 = vector.extract_strided_slice %312 {offsets = [0, 192], sizes = [2, 64], strides = [1, 1]} : vector<2x256xf32> to vector<2x64xf32>
    %320 = math.tanh %318 : vector<2x64xf32>
    %321 = arith.mulf %319, %320 : vector<2x64xf32>
    %322 = vector.extract_strided_slice %256 {offsets = [6, 0], sizes = [2, 256], strides = [1, 1]} : vector<16x256xf32> to vector<2x256xf32>
    %cst_45 = arith.constant dense<0.000000e+00> : vector<2x256xf32>
    %323 = tpu.matmul %321, %14, %cst_45 {dimension_numbers = #tpu.dot_dimension_numbers<[1], [0], [0], [1], [0, 0, 1, 1], [], []>} : vector<2x64xf32>, vector<64x256xf32>, vector<2x256xf32> -> vector<2x256xf32>
    %324 = arith.addf %322, %323 : vector<2x256xf32>
    %325 = math.tanh %324 : vector<2x256xf32>
    %326 = arith.negf %324 : vector<2x256xf32>
    %327 = math.exp %326 : vector<2x256xf32>
    %cst_46 = arith.constant 1.000000e+00 : f32
    %328 = vector.broadcast %cst_46 : f32 to vector<2x256xf32>
    %329 = arith.addf %328, %327 : vector<2x256xf32>
    %330 = arith.divf %328, %329 : vector<2x256xf32>
    %331 = arith.select %262, %325, %330 : vector<2x256xi1>, vector<2x256xf32>
    %332 = vector.extract_strided_slice %331 {offsets = [0, 64], sizes = [2, 64], strides = [1, 1]} : vector<2x256xf32> to vector<2x64xf32>
    %333 = arith.mulf %332, %318 : vector<2x64xf32>
    %334 = vector.extract_strided_slice %331 {offsets = [0, 0], sizes = [2, 64], strides = [1, 1]} : vector<2x256xf32> to vector<2x64xf32>
    %335 = vector.extract_strided_slice %331 {offsets = [0, 128], sizes = [2, 64], strides = [1, 1]} : vector<2x256xf32> to vector<2x64xf32>
    %336 = arith.mulf %334, %335 : vector<2x64xf32>
    %337 = arith.addf %333, %336 : vector<2x64xf32>
    %338 = vector.extract_strided_slice %331 {offsets = [0, 192], sizes = [2, 64], strides = [1, 1]} : vector<2x256xf32> to vector<2x64xf32>
    %339 = math.tanh %337 : vector<2x64xf32>
    %340 = arith.mulf %338, %339 : vector<2x64xf32>
    %341 = vector.extract_strided_slice %256 {offsets = [8, 0], sizes = [2, 256], strides = [1, 1]} : vector<16x256xf32> to vector<2x256xf32>
    %cst_47 = arith.constant dense<0.000000e+00> : vector<2x256xf32>
    %342 = tpu.matmul %340, %14, %cst_47 {dimension_numbers = #tpu.dot_dimension_numbers<[1], [0], [0], [1], [0, 0, 1, 1], [], []>} : vector<2x64xf32>, vector<64x256xf32>, vector<2x256xf32> -> vector<2x256xf32>
    %343 = arith.addf %341, %342 : vector<2x256xf32>
    %344 = math.tanh %343 : vector<2x256xf32>
    %345 = arith.negf %343 : vector<2x256xf32>
    %346 = math.exp %345 : vector<2x256xf32>
    %cst_48 = arith.constant 1.000000e+00 : f32
    %347 = vector.broadcast %cst_48 : f32 to vector<2x256xf32>
    %348 = arith.addf %347, %346 : vector<2x256xf32>
    %349 = arith.divf %347, %348 : vector<2x256xf32>
    %350 = arith.select %262, %344, %349 : vector<2x256xi1>, vector<2x256xf32>
    %351 = vector.extract_strided_slice %350 {offsets = [0, 64], sizes = [2, 64], strides = [1, 1]} : vector<2x256xf32> to vector<2x64xf32>
    %352 = arith.mulf %351, %337 : vector<2x64xf32>
    %353 = vector.extract_strided_slice %350 {offsets = [0, 0], sizes = [2, 64], strides = [1, 1]} : vector<2x256xf32> to vector<2x64xf32>
    %354 = vector.extract_strided_slice %350 {offsets = [0, 128], sizes = [2, 64], strides = [1, 1]} : vector<2x256xf32> to vector<2x64xf32>
    %355 = arith.mulf %353, %354 : vector<2x64xf32>
    %356 = arith.addf %352, %355 : vector<2x64xf32>
    %357 = vector.extract_strided_slice %350 {offsets = [0, 192], sizes = [2, 64], strides = [1, 1]} : vector<2x256xf32> to vector<2x64xf32>
    %358 = math.tanh %356 : vector<2x64xf32>
    %359 = arith.mulf %357, %358 : vector<2x64xf32>
    %360 = vector.extract_strided_slice %256 {offsets = [10, 0], sizes = [2, 256], strides = [1, 1]} : vector<16x256xf32> to vector<2x256xf32>
    %cst_49 = arith.constant dense<0.000000e+00> : vector<2x256xf32>
    %361 = tpu.matmul %359, %14, %cst_49 {dimension_numbers = #tpu.dot_dimension_numbers<[1], [0], [0], [1], [0, 0, 1, 1], [], []>} : vector<2x64xf32>, vector<64x256xf32>, vector<2x256xf32> -> vector<2x256xf32>
    %362 = arith.addf %360, %361 : vector<2x256xf32>
    %363 = math.tanh %362 : vector<2x256xf32>
    %364 = arith.negf %362 : vector<2x256xf32>
    %365 = math.exp %364 : vector<2x256xf32>
    %cst_50 = arith.constant 1.000000e+00 : f32
    %366 = vector.broadcast %cst_50 : f32 to vector<2x256xf32>
    %367 = arith.addf %366, %365 : vector<2x256xf32>
    %368 = arith.divf %366, %367 : vector<2x256xf32>
    %369 = arith.select %262, %363, %368 : vector<2x256xi1>, vector<2x256xf32>
    %370 = vector.extract_strided_slice %369 {offsets = [0, 64], sizes = [2, 64], strides = [1, 1]} : vector<2x256xf32> to vector<2x64xf32>
    %371 = arith.mulf %370, %356 : vector<2x64xf32>
    %372 = vector.extract_strided_slice %369 {offsets = [0, 0], sizes = [2, 64], strides = [1, 1]} : vector<2x256xf32> to vector<2x64xf32>
    %373 = vector.extract_strided_slice %369 {offsets = [0, 128], sizes = [2, 64], strides = [1, 1]} : vector<2x256xf32> to vector<2x64xf32>
    %374 = arith.mulf %372, %373 : vector<2x64xf32>
    %375 = arith.addf %371, %374 : vector<2x64xf32>
    %376 = vector.extract_strided_slice %369 {offsets = [0, 192], sizes = [2, 64], strides = [1, 1]} : vector<2x256xf32> to vector<2x64xf32>
    %377 = math.tanh %375 : vector<2x64xf32>
    %378 = arith.mulf %376, %377 : vector<2x64xf32>
    %379 = vector.extract_strided_slice %256 {offsets = [12, 0], sizes = [2, 256], strides = [1, 1]} : vector<16x256xf32> to vector<2x256xf32>
    %cst_51 = arith.constant dense<0.000000e+00> : vector<2x256xf32>
    %380 = tpu.matmul %378, %14, %cst_51 {dimension_numbers = #tpu.dot_dimension_numbers<[1], [0], [0], [1], [0, 0, 1, 1], [], []>} : vector<2x64xf32>, vector<64x256xf32>, vector<2x256xf32> -> vector<2x256xf32>
    %381 = arith.addf %379, %380 : vector<2x256xf32>
    %382 = math.tanh %381 : vector<2x256xf32>
    %383 = arith.negf %381 : vector<2x256xf32>
    %384 = math.exp %383 : vector<2x256xf32>
    %cst_52 = arith.constant 1.000000e+00 : f32
    %385 = vector.broadcast %cst_52 : f32 to vector<2x256xf32>
    %386 = arith.addf %385, %384 : vector<2x256xf32>
    %387 = arith.divf %385, %386 : vector<2x256xf32>
    %388 = arith.select %262, %382, %387 : vector<2x256xi1>, vector<2x256xf32>
    %389 = vector.extract_strided_slice %388 {offsets = [0, 64], sizes = [2, 64], strides = [1, 1]} : vector<2x256xf32> to vector<2x64xf32>
    %390 = arith.mulf %389, %375 : vector<2x64xf32>
    %391 = vector.extract_strided_slice %388 {offsets = [0, 0], sizes = [2, 64], strides = [1, 1]} : vector<2x256xf32> to vector<2x64xf32>
    %392 = vector.extract_strided_slice %388 {offsets = [0, 128], sizes = [2, 64], strides = [1, 1]} : vector<2x256xf32> to vector<2x64xf32>
    %393 = arith.mulf %391, %392 : vector<2x64xf32>
    %394 = arith.addf %390, %393 : vector<2x64xf32>
    %395 = vector.extract_strided_slice %388 {offsets = [0, 192], sizes = [2, 64], strides = [1, 1]} : vector<2x256xf32> to vector<2x64xf32>
    %396 = math.tanh %394 : vector<2x64xf32>
    %397 = arith.mulf %395, %396 : vector<2x64xf32>
    %398 = vector.extract_strided_slice %256 {offsets = [14, 0], sizes = [2, 256], strides = [1, 1]} : vector<16x256xf32> to vector<2x256xf32>
    %cst_53 = arith.constant dense<0.000000e+00> : vector<2x256xf32>
    %399 = tpu.matmul %397, %14, %cst_53 {dimension_numbers = #tpu.dot_dimension_numbers<[1], [0], [0], [1], [0, 0, 1, 1], [], []>} : vector<2x64xf32>, vector<64x256xf32>, vector<2x256xf32> -> vector<2x256xf32>
    %400 = arith.addf %398, %399 : vector<2x256xf32>
    %401 = math.tanh %400 : vector<2x256xf32>
    %402 = arith.negf %400 : vector<2x256xf32>
    %403 = math.exp %402 : vector<2x256xf32>
    %cst_54 = arith.constant 1.000000e+00 : f32
    %404 = vector.broadcast %cst_54 : f32 to vector<2x256xf32>
    %405 = arith.addf %404, %403 : vector<2x256xf32>
    %406 = arith.divf %404, %405 : vector<2x256xf32>
    %407 = arith.select %262, %401, %406 : vector<2x256xi1>, vector<2x256xf32>
    %408 = vector.extract_strided_slice %407 {offsets = [0, 64], sizes = [2, 64], strides = [1, 1]} : vector<2x256xf32> to vector<2x64xf32>
    %409 = arith.mulf %408, %394 : vector<2x64xf32>
    %410 = vector.extract_strided_slice %407 {offsets = [0, 0], sizes = [2, 64], strides = [1, 1]} : vector<2x256xf32> to vector<2x64xf32>
    %411 = vector.extract_strided_slice %407 {offsets = [0, 128], sizes = [2, 64], strides = [1, 1]} : vector<2x256xf32> to vector<2x64xf32>
    %412 = arith.mulf %410, %411 : vector<2x64xf32>
    %413 = arith.addf %409, %412 : vector<2x64xf32>
    %414 = vector.extract_strided_slice %407 {offsets = [0, 192], sizes = [2, 64], strides = [1, 1]} : vector<2x256xf32> to vector<2x64xf32>
    %415 = math.tanh %413 : vector<2x64xf32>
    %416 = arith.mulf %414, %415 : vector<2x64xf32>
    %417 = vector.extract_strided_slice %283 {offsets = [0, 0], sizes = [2, 32], strides = [1, 1]} : vector<2x64xf32> to vector<2x32xf32>
    %418 = vector.extract_strided_slice %416 {offsets = [0, 32], sizes = [2, 32], strides = [1, 1]} : vector<2x64xf32> to vector<2x32xf32>
    %419 = tpu.concatenate %417, %418 in 1 : vector<2x32xf32>, vector<2x32xf32> -> vector<2x64xf32>
    %420 = vector.extract_strided_slice %302 {offsets = [0, 0], sizes = [2, 32], strides = [1, 1]} : vector<2x64xf32> to vector<2x32xf32>
    %421 = vector.extract_strided_slice %397 {offsets = [0, 32], sizes = [2, 32], strides = [1, 1]} : vector<2x64xf32> to vector<2x32xf32>
    %422 = tpu.concatenate %420, %421 in 1 : vector<2x32xf32>, vector<2x32xf32> -> vector<2x64xf32>
    %423 = vector.extract_strided_slice %321 {offsets = [0, 0], sizes = [2, 32], strides = [1, 1]} : vector<2x64xf32> to vector<2x32xf32>
    %424 = vector.extract_strided_slice %378 {offsets = [0, 32], sizes = [2, 32], strides = [1, 1]} : vector<2x64xf32> to vector<2x32xf32>
    %425 = tpu.concatenate %423, %424 in 1 : vector<2x32xf32>, vector<2x32xf32> -> vector<2x64xf32>
    %426 = vector.extract_strided_slice %340 {offsets = [0, 0], sizes = [2, 32], strides = [1, 1]} : vector<2x64xf32> to vector<2x32xf32>
    %427 = vector.extract_strided_slice %359 {offsets = [0, 32], sizes = [2, 32], strides = [1, 1]} : vector<2x64xf32> to vector<2x32xf32>
    %428 = tpu.concatenate %426, %427 in 1 : vector<2x32xf32>, vector<2x32xf32> -> vector<2x64xf32>
    %429 = vector.extract_strided_slice %359 {offsets = [0, 0], sizes = [2, 32], strides = [1, 1]} : vector<2x64xf32> to vector<2x32xf32>
    %430 = vector.extract_strided_slice %340 {offsets = [0, 32], sizes = [2, 32], strides = [1, 1]} : vector<2x64xf32> to vector<2x32xf32>
    %431 = tpu.concatenate %429, %430 in 1 : vector<2x32xf32>, vector<2x32xf32> -> vector<2x64xf32>
    %432 = vector.extract_strided_slice %378 {offsets = [0, 0], sizes = [2, 32], strides = [1, 1]} : vector<2x64xf32> to vector<2x32xf32>
    %433 = vector.extract_strided_slice %321 {offsets = [0, 32], sizes = [2, 32], strides = [1, 1]} : vector<2x64xf32> to vector<2x32xf32>
    %434 = tpu.concatenate %432, %433 in 1 : vector<2x32xf32>, vector<2x32xf32> -> vector<2x64xf32>
    %435 = vector.extract_strided_slice %397 {offsets = [0, 0], sizes = [2, 32], strides = [1, 1]} : vector<2x64xf32> to vector<2x32xf32>
    %436 = vector.extract_strided_slice %302 {offsets = [0, 32], sizes = [2, 32], strides = [1, 1]} : vector<2x64xf32> to vector<2x32xf32>
    %437 = tpu.concatenate %435, %436 in 1 : vector<2x32xf32>, vector<2x32xf32> -> vector<2x64xf32>
    %438 = vector.extract_strided_slice %416 {offsets = [0, 0], sizes = [2, 32], strides = [1, 1]} : vector<2x64xf32> to vector<2x32xf32>
    %439 = vector.extract_strided_slice %283 {offsets = [0, 32], sizes = [2, 32], strides = [1, 1]} : vector<2x64xf32> to vector<2x32xf32>
    %440 = tpu.concatenate %438, %439 in 1 : vector<2x32xf32>, vector<2x32xf32> -> vector<2x64xf32>
    %441 = tpu.concatenate %419, %422, %425, %428, %431, %434, %437, %440 in 0 : vector<2x64xf32>, vector<2x64xf32>, vector<2x64xf32>, vector<2x64xf32>, vector<2x64xf32>, vector<2x64xf32>, vector<2x64xf32>, vector<2x64xf32> -> vector<16x64xf32>
    %442 = vector.extract_strided_slice %228 {offsets = [0, 0], sizes = [1, 64], strides = [1, 1]} : vector<16x64xf32> to vector<1x64xf32>
    %443 = vector.extract_strided_slice %228 {offsets = [2, 0], sizes = [1, 64], strides = [1, 1]} : vector<16x64xf32> to vector<1x64xf32>
    %444 = vector.extract_strided_slice %228 {offsets = [4, 0], sizes = [1, 64], strides = [1, 1]} : vector<16x64xf32> to vector<1x64xf32>
    %445 = vector.extract_strided_slice %228 {offsets = [6, 0], sizes = [1, 64], strides = [1, 1]} : vector<16x64xf32> to vector<1x64xf32>
    %446 = vector.extract_strided_slice %228 {offsets = [8, 0], sizes = [1, 64], strides = [1, 1]} : vector<16x64xf32> to vector<1x64xf32>
    %447 = vector.extract_strided_slice %228 {offsets = [10, 0], sizes = [1, 64], strides = [1, 1]} : vector<16x64xf32> to vector<1x64xf32>
    %448 = vector.extract_strided_slice %228 {offsets = [12, 0], sizes = [1, 64], strides = [1, 1]} : vector<16x64xf32> to vector<1x64xf32>
    %449 = vector.extract_strided_slice %228 {offsets = [14, 0], sizes = [1, 64], strides = [1, 1]} : vector<16x64xf32> to vector<1x64xf32>
    %450 = tpu.concatenate %442, %443, %444, %445, %446, %447, %448, %449 in 0 : vector<1x64xf32>, vector<1x64xf32>, vector<1x64xf32>, vector<1x64xf32>, vector<1x64xf32>, vector<1x64xf32>, vector<1x64xf32>, vector<1x64xf32> -> vector<8x64xf32>
    %451 = vector.extract_strided_slice %441 {offsets = [0, 0], sizes = [1, 64], strides = [1, 1]} : vector<16x64xf32> to vector<1x64xf32>
    %452 = vector.extract_strided_slice %441 {offsets = [2, 0], sizes = [1, 64], strides = [1, 1]} : vector<16x64xf32> to vector<1x64xf32>
    %453 = vector.extract_strided_slice %441 {offsets = [4, 0], sizes = [1, 64], strides = [1, 1]} : vector<16x64xf32> to vector<1x64xf32>
    %454 = vector.extract_strided_slice %441 {offsets = [6, 0], sizes = [1, 64], strides = [1, 1]} : vector<16x64xf32> to vector<1x64xf32>
    %455 = vector.extract_strided_slice %441 {offsets = [8, 0], sizes = [1, 64], strides = [1, 1]} : vector<16x64xf32> to vector<1x64xf32>
    %456 = vector.extract_strided_slice %441 {offsets = [10, 0], sizes = [1, 64], strides = [1, 1]} : vector<16x64xf32> to vector<1x64xf32>
    %457 = vector.extract_strided_slice %441 {offsets = [12, 0], sizes = [1, 64], strides = [1, 1]} : vector<16x64xf32> to vector<1x64xf32>
    %458 = vector.extract_strided_slice %441 {offsets = [14, 0], sizes = [1, 64], strides = [1, 1]} : vector<16x64xf32> to vector<1x64xf32>
    %459 = tpu.concatenate %451, %452, %453, %454, %455, %456, %457, %458 in 0 : vector<1x64xf32>, vector<1x64xf32>, vector<1x64xf32>, vector<1x64xf32>, vector<1x64xf32>, vector<1x64xf32>, vector<1x64xf32>, vector<1x64xf32> -> vector<8x64xf32>
    %cst_55 = arith.constant dense<0.000000e+00> : vector<8x8xf32>
    %460 = tpu.matmul %450, %459, %cst_55 {dimension_numbers = #tpu.dot_dimension_numbers<[1], [1], [0], [0], [0, 0, 1, 0], [], []>} : vector<8x64xf32>, vector<8x64xf32>, vector<8x8xf32> -> vector<8x8xf32>
    %cst_56 = arith.constant dense<0xFF800000> : vector<8xf32>
    %461 = vector.multi_reduction <maximumf>, %460, %cst_56 [1] : vector<8x8xf32> to vector<8xf32>
    %cst_57 = arith.constant 0xFF800000 : f32
    %462 = vector.broadcast %cst_57 : f32 to vector<8xf32>
    %463 = arith.maximumf %462, %461 : vector<8xf32>
    %464 = vector.shape_cast %463 : vector<8xf32> to vector<8x1xf32>
    %465 = vector.broadcast %464 : vector<8x1xf32> to vector<8x8xf32>
    %466 = arith.subf %460, %465 : vector<8x8xf32>
    %467 = math.exp %466 : vector<8x8xf32>
    %cst_58 = arith.constant dense<0.000000e+00> : vector<8xf32>
    %468 = vector.multi_reduction <add>, %467, %cst_58 [1] : vector<8x8xf32> to vector<8xf32>
    %469 = vector.shape_cast %468 : vector<8xf32> to vector<8x1xf32>
    %470 = vector.broadcast %469 : vector<8x1xf32> to vector<8x8xf32>
    %471 = arith.divf %467, %470 : vector<8x8xf32>
    %472 = tpu.transpose %460, [1, 0] : vector<8x8xf32> -> vector<8x8xf32>
    %cst_59 = arith.constant dense<0xFF800000> : vector<8xf32>
    %473 = vector.multi_reduction <maximumf>, %472, %cst_59 [1] : vector<8x8xf32> to vector<8xf32>
    %cst_60 = arith.constant 0xFF800000 : f32
    %474 = vector.broadcast %cst_60 : f32 to vector<8xf32>
    %475 = arith.maximumf %474, %473 : vector<8xf32>
    %476 = vector.shape_cast %475 : vector<8xf32> to vector<8x1xf32>
    %477 = vector.broadcast %476 : vector<8x1xf32> to vector<8x8xf32>
    %478 = arith.subf %472, %477 : vector<8x8xf32>
    %479 = math.exp %478 : vector<8x8xf32>
    %cst_61 = arith.constant dense<0.000000e+00> : vector<8xf32>
    %480 = vector.multi_reduction <add>, %479, %cst_61 [1] : vector<8x8xf32> to vector<8xf32>
    %481 = vector.shape_cast %480 : vector<8xf32> to vector<8x1xf32>
    %482 = vector.broadcast %481 : vector<8x1xf32> to vector<8x8xf32>
    %483 = arith.divf %479, %482 : vector<8x8xf32>
    %cst_62 = arith.constant dense<0.000000e+00> : vector<8x64xf32>
    %484 = tpu.matmul %471, %459, %cst_62 {dimension_numbers = #tpu.dot_dimension_numbers<[1], [0], [0], [1], [0, 0, 1, 1], [], []>} : vector<8x8xf32>, vector<8x64xf32>, vector<8x64xf32> -> vector<8x64xf32>
    %cst_63 = arith.constant dense<0.000000e+00> : vector<8x64xf32>
    %485 = tpu.matmul %483, %450, %cst_63 {dimension_numbers = #tpu.dot_dimension_numbers<[1], [0], [0], [1], [0, 0, 1, 1], [], []>} : vector<8x8xf32>, vector<8x64xf32>, vector<8x64xf32> -> vector<8x64xf32>
    %486 = arith.subf %450, %484 : vector<8x64xf32>
    %487 = arith.mulf %450, %484 : vector<8x64xf32>
    %488 = tpu.concatenate %450, %484, %486, %487 in 1 : vector<8x64xf32>, vector<8x64xf32>, vector<8x64xf32>, vector<8x64xf32> -> vector<8x256xf32>
    %489 = arith.subf %459, %485 : vector<8x64xf32>
    %490 = arith.mulf %459, %485 : vector<8x64xf32>
    %491 = tpu.concatenate %459, %485, %489, %490 in 1 : vector<8x64xf32>, vector<8x64xf32>, vector<8x64xf32>, vector<8x64xf32> -> vector<8x256xf32>
    %492 = vector.extract_strided_slice %228 {offsets = [1, 0], sizes = [1, 64], strides = [1, 1]} : vector<16x64xf32> to vector<1x64xf32>
    %493 = vector.extract_strided_slice %228 {offsets = [3, 0], sizes = [1, 64], strides = [1, 1]} : vector<16x64xf32> to vector<1x64xf32>
    %494 = vector.extract_strided_slice %228 {offsets = [5, 0], sizes = [1, 64], strides = [1, 1]} : vector<16x64xf32> to vector<1x64xf32>
    %495 = vector.extract_strided_slice %228 {offsets = [7, 0], sizes = [1, 64], strides = [1, 1]} : vector<16x64xf32> to vector<1x64xf32>
    %496 = vector.extract_strided_slice %228 {offsets = [9, 0], sizes = [1, 64], strides = [1, 1]} : vector<16x64xf32> to vector<1x64xf32>
    %497 = vector.extract_strided_slice %228 {offsets = [11, 0], sizes = [1, 64], strides = [1, 1]} : vector<16x64xf32> to vector<1x64xf32>
    %498 = vector.extract_strided_slice %228 {offsets = [13, 0], sizes = [1, 64], strides = [1, 1]} : vector<16x64xf32> to vector<1x64xf32>
    %499 = vector.extract_strided_slice %228 {offsets = [15, 0], sizes = [1, 64], strides = [1, 1]} : vector<16x64xf32> to vector<1x64xf32>
    %500 = tpu.concatenate %492, %493, %494, %495, %496, %497, %498, %499 in 0 : vector<1x64xf32>, vector<1x64xf32>, vector<1x64xf32>, vector<1x64xf32>, vector<1x64xf32>, vector<1x64xf32>, vector<1x64xf32>, vector<1x64xf32> -> vector<8x64xf32>
    %501 = vector.extract_strided_slice %441 {offsets = [1, 0], sizes = [1, 64], strides = [1, 1]} : vector<16x64xf32> to vector<1x64xf32>
    %502 = vector.extract_strided_slice %441 {offsets = [3, 0], sizes = [1, 64], strides = [1, 1]} : vector<16x64xf32> to vector<1x64xf32>
    %503 = vector.extract_strided_slice %441 {offsets = [5, 0], sizes = [1, 64], strides = [1, 1]} : vector<16x64xf32> to vector<1x64xf32>
    %504 = vector.extract_strided_slice %441 {offsets = [7, 0], sizes = [1, 64], strides = [1, 1]} : vector<16x64xf32> to vector<1x64xf32>
    %505 = vector.extract_strided_slice %441 {offsets = [9, 0], sizes = [1, 64], strides = [1, 1]} : vector<16x64xf32> to vector<1x64xf32>
    %506 = vector.extract_strided_slice %441 {offsets = [11, 0], sizes = [1, 64], strides = [1, 1]} : vector<16x64xf32> to vector<1x64xf32>
    %507 = vector.extract_strided_slice %441 {offsets = [13, 0], sizes = [1, 64], strides = [1, 1]} : vector<16x64xf32> to vector<1x64xf32>
    %508 = vector.extract_strided_slice %441 {offsets = [15, 0], sizes = [1, 64], strides = [1, 1]} : vector<16x64xf32> to vector<1x64xf32>
    %509 = tpu.concatenate %501, %502, %503, %504, %505, %506, %507, %508 in 0 : vector<1x64xf32>, vector<1x64xf32>, vector<1x64xf32>, vector<1x64xf32>, vector<1x64xf32>, vector<1x64xf32>, vector<1x64xf32>, vector<1x64xf32> -> vector<8x64xf32>
    %cst_64 = arith.constant dense<0.000000e+00> : vector<8x8xf32>
    %510 = tpu.matmul %500, %509, %cst_64 {dimension_numbers = #tpu.dot_dimension_numbers<[1], [1], [0], [0], [0, 0, 1, 0], [], []>} : vector<8x64xf32>, vector<8x64xf32>, vector<8x8xf32> -> vector<8x8xf32>
    %cst_65 = arith.constant dense<0xFF800000> : vector<8xf32>
    %511 = vector.multi_reduction <maximumf>, %510, %cst_65 [1] : vector<8x8xf32> to vector<8xf32>
    %cst_66 = arith.constant 0xFF800000 : f32
    %512 = vector.broadcast %cst_66 : f32 to vector<8xf32>
    %513 = arith.maximumf %512, %511 : vector<8xf32>
    %514 = vector.shape_cast %513 : vector<8xf32> to vector<8x1xf32>
    %515 = vector.broadcast %514 : vector<8x1xf32> to vector<8x8xf32>
    %516 = arith.subf %510, %515 : vector<8x8xf32>
    %517 = math.exp %516 : vector<8x8xf32>
    %cst_67 = arith.constant dense<0.000000e+00> : vector<8xf32>
    %518 = vector.multi_reduction <add>, %517, %cst_67 [1] : vector<8x8xf32> to vector<8xf32>
    %519 = vector.shape_cast %518 : vector<8xf32> to vector<8x1xf32>
    %520 = vector.broadcast %519 : vector<8x1xf32> to vector<8x8xf32>
    %521 = arith.divf %517, %520 : vector<8x8xf32>
    %522 = tpu.transpose %510, [1, 0] : vector<8x8xf32> -> vector<8x8xf32>
    %cst_68 = arith.constant dense<0xFF800000> : vector<8xf32>
    %523 = vector.multi_reduction <maximumf>, %522, %cst_68 [1] : vector<8x8xf32> to vector<8xf32>
    %cst_69 = arith.constant 0xFF800000 : f32
    %524 = vector.broadcast %cst_69 : f32 to vector<8xf32>
    %525 = arith.maximumf %524, %523 : vector<8xf32>
    %526 = vector.shape_cast %525 : vector<8xf32> to vector<8x1xf32>
    %527 = vector.broadcast %526 : vector<8x1xf32> to vector<8x8xf32>
    %528 = arith.subf %522, %527 : vector<8x8xf32>
    %529 = math.exp %528 : vector<8x8xf32>
    %cst_70 = arith.constant dense<0.000000e+00> : vector<8xf32>
    %530 = vector.multi_reduction <add>, %529, %cst_70 [1] : vector<8x8xf32> to vector<8xf32>
    %531 = vector.shape_cast %530 : vector<8xf32> to vector<8x1xf32>
    %532 = vector.broadcast %531 : vector<8x1xf32> to vector<8x8xf32>
    %533 = arith.divf %529, %532 : vector<8x8xf32>
    %cst_71 = arith.constant dense<0.000000e+00> : vector<8x64xf32>
    %534 = tpu.matmul %521, %509, %cst_71 {dimension_numbers = #tpu.dot_dimension_numbers<[1], [0], [0], [1], [0, 0, 1, 1], [], []>} : vector<8x8xf32>, vector<8x64xf32>, vector<8x64xf32> -> vector<8x64xf32>
    %cst_72 = arith.constant dense<0.000000e+00> : vector<8x64xf32>
    %535 = tpu.matmul %533, %500, %cst_72 {dimension_numbers = #tpu.dot_dimension_numbers<[1], [0], [0], [1], [0, 0, 1, 1], [], []>} : vector<8x8xf32>, vector<8x64xf32>, vector<8x64xf32> -> vector<8x64xf32>
    %536 = arith.subf %500, %534 : vector<8x64xf32>
    %537 = arith.mulf %500, %534 : vector<8x64xf32>
    %538 = tpu.concatenate %500, %534, %536, %537 in 1 : vector<8x64xf32>, vector<8x64xf32>, vector<8x64xf32>, vector<8x64xf32> -> vector<8x256xf32>
    %539 = arith.subf %509, %535 : vector<8x64xf32>
    %540 = arith.mulf %509, %535 : vector<8x64xf32>
    %541 = tpu.concatenate %509, %535, %539, %540 in 1 : vector<8x64xf32>, vector<8x64xf32>, vector<8x64xf32>, vector<8x64xf32> -> vector<8x256xf32>
    %c0_73 = arith.constant 0 : index
    %c0_74 = arith.constant 0 : index
    %542 = vector.load %arg8[%c0_73, %c0_74] : memref<256x32xf32, #tpu.memory_space<vmem>>, vector<256x32xf32>
    %c0_75 = arith.constant 0 : index
    %c0_76 = arith.constant 0 : index
    %543 = vector.load %arg9[%c0_75, %c0_76] : memref<1x32xf32, #tpu.memory_space<vmem>>, vector<1x32xf32>
    %544 = tpu.concatenate %488, %538, %491, %541 in 0 : vector<8x256xf32>, vector<8x256xf32>, vector<8x256xf32>, vector<8x256xf32> -> vector<32x256xf32>
    %cst_77 = arith.constant dense<0.000000e+00> : vector<32x32xf32>
    %545 = tpu.matmul %544, %542, %cst_77 {dimension_numbers = #tpu.dot_dimension_numbers<[1], [0], [0], [1], [0, 0, 1, 1], [], []>} : vector<32x256xf32>, vector<256x32xf32>, vector<32x32xf32> -> vector<32x32xf32>
    %546 = vector.broadcast %543 : vector<1x32xf32> to vector<32x32xf32>
    %547 = arith.addf %545, %546 : vector<32x32xf32>
    %cst_78 = arith.constant 0.000000e+00 : f32
    %548 = vector.broadcast %cst_78 : f32 to vector<32x32xf32>
    %549 = arith.maximumf %547, %548 : vector<32x32xf32>
    %550 = vector.extract_strided_slice %549 {offsets = [0, 0], sizes = [1, 32], strides = [1, 1]} : vector<32x32xf32> to vector<1x32xf32>
    %551 = vector.extract_strided_slice %549 {offsets = [8, 0], sizes = [1, 32], strides = [1, 1]} : vector<32x32xf32> to vector<1x32xf32>
    %552 = vector.extract_strided_slice %549 {offsets = [16, 0], sizes = [1, 32], strides = [1, 1]} : vector<32x32xf32> to vector<1x32xf32>
    %553 = vector.extract_strided_slice %549 {offsets = [24, 0], sizes = [1, 32], strides = [1, 1]} : vector<32x32xf32> to vector<1x32xf32>
    %554 = vector.extract_strided_slice %549 {offsets = [1, 0], sizes = [1, 32], strides = [1, 1]} : vector<32x32xf32> to vector<1x32xf32>
    %555 = vector.extract_strided_slice %549 {offsets = [9, 0], sizes = [1, 32], strides = [1, 1]} : vector<32x32xf32> to vector<1x32xf32>
    %556 = vector.extract_strided_slice %549 {offsets = [17, 0], sizes = [1, 32], strides = [1, 1]} : vector<32x32xf32> to vector<1x32xf32>
    %557 = vector.extract_strided_slice %549 {offsets = [25, 0], sizes = [1, 32], strides = [1, 1]} : vector<32x32xf32> to vector<1x32xf32>
    %558 = vector.extract_strided_slice %549 {offsets = [2, 0], sizes = [1, 32], strides = [1, 1]} : vector<32x32xf32> to vector<1x32xf32>
    %559 = vector.extract_strided_slice %549 {offsets = [10, 0], sizes = [1, 32], strides = [1, 1]} : vector<32x32xf32> to vector<1x32xf32>
    %560 = vector.extract_strided_slice %549 {offsets = [18, 0], sizes = [1, 32], strides = [1, 1]} : vector<32x32xf32> to vector<1x32xf32>
    %561 = vector.extract_strided_slice %549 {offsets = [26, 0], sizes = [1, 32], strides = [1, 1]} : vector<32x32xf32> to vector<1x32xf32>
    %562 = vector.extract_strided_slice %549 {offsets = [3, 0], sizes = [1, 32], strides = [1, 1]} : vector<32x32xf32> to vector<1x32xf32>
    %563 = vector.extract_strided_slice %549 {offsets = [11, 0], sizes = [1, 32], strides = [1, 1]} : vector<32x32xf32> to vector<1x32xf32>
    %564 = vector.extract_strided_slice %549 {offsets = [19, 0], sizes = [1, 32], strides = [1, 1]} : vector<32x32xf32> to vector<1x32xf32>
    %565 = vector.extract_strided_slice %549 {offsets = [27, 0], sizes = [1, 32], strides = [1, 1]} : vector<32x32xf32> to vector<1x32xf32>
    %566 = vector.extract_strided_slice %549 {offsets = [4, 0], sizes = [1, 32], strides = [1, 1]} : vector<32x32xf32> to vector<1x32xf32>
    %567 = vector.extract_strided_slice %549 {offsets = [12, 0], sizes = [1, 32], strides = [1, 1]} : vector<32x32xf32> to vector<1x32xf32>
    %568 = vector.extract_strided_slice %549 {offsets = [20, 0], sizes = [1, 32], strides = [1, 1]} : vector<32x32xf32> to vector<1x32xf32>
    %569 = vector.extract_strided_slice %549 {offsets = [28, 0], sizes = [1, 32], strides = [1, 1]} : vector<32x32xf32> to vector<1x32xf32>
    %570 = vector.extract_strided_slice %549 {offsets = [5, 0], sizes = [1, 32], strides = [1, 1]} : vector<32x32xf32> to vector<1x32xf32>
    %571 = vector.extract_strided_slice %549 {offsets = [13, 0], sizes = [1, 32], strides = [1, 1]} : vector<32x32xf32> to vector<1x32xf32>
    %572 = vector.extract_strided_slice %549 {offsets = [21, 0], sizes = [1, 32], strides = [1, 1]} : vector<32x32xf32> to vector<1x32xf32>
    %573 = vector.extract_strided_slice %549 {offsets = [29, 0], sizes = [1, 32], strides = [1, 1]} : vector<32x32xf32> to vector<1x32xf32>
    %574 = vector.extract_strided_slice %549 {offsets = [6, 0], sizes = [1, 32], strides = [1, 1]} : vector<32x32xf32> to vector<1x32xf32>
    %575 = vector.extract_strided_slice %549 {offsets = [14, 0], sizes = [1, 32], strides = [1, 1]} : vector<32x32xf32> to vector<1x32xf32>
    %576 = vector.extract_strided_slice %549 {offsets = [22, 0], sizes = [1, 32], strides = [1, 1]} : vector<32x32xf32> to vector<1x32xf32>
    %577 = vector.extract_strided_slice %549 {offsets = [30, 0], sizes = [1, 32], strides = [1, 1]} : vector<32x32xf32> to vector<1x32xf32>
    %578 = vector.extract_strided_slice %549 {offsets = [7, 0], sizes = [1, 32], strides = [1, 1]} : vector<32x32xf32> to vector<1x32xf32>
    %579 = vector.extract_strided_slice %549 {offsets = [15, 0], sizes = [1, 32], strides = [1, 1]} : vector<32x32xf32> to vector<1x32xf32>
    %580 = vector.extract_strided_slice %549 {offsets = [23, 0], sizes = [1, 32], strides = [1, 1]} : vector<32x32xf32> to vector<1x32xf32>
    %581 = vector.extract_strided_slice %549 {offsets = [31, 0], sizes = [1, 32], strides = [1, 1]} : vector<32x32xf32> to vector<1x32xf32>
    %582 = tpu.concatenate %550, %551, %552, %553, %554, %555, %556, %557, %558, %559, %560, %561, %562, %563, %564, %565 in 0 : vector<1x32xf32>, vector<1x32xf32>, vector<1x32xf32>, vector<1x32xf32>, vector<1x32xf32>, vector<1x32xf32>, vector<1x32xf32>, vector<1x32xf32>, vector<1x32xf32>, vector<1x32xf32>, vector<1x32xf32>, vector<1x32xf32>, vector<1x32xf32>, vector<1x32xf32>, vector<1x32xf32>, vector<1x32xf32> -> vector<16x32xf32>
    %583 = tpu.concatenate %566, %567, %568, %569, %570, %571, %572, %573, %574, %575, %576, %577, %578, %579, %580, %581 in 0 : vector<1x32xf32>, vector<1x32xf32>, vector<1x32xf32>, vector<1x32xf32>, vector<1x32xf32>, vector<1x32xf32>, vector<1x32xf32>, vector<1x32xf32>, vector<1x32xf32>, vector<1x32xf32>, vector<1x32xf32>, vector<1x32xf32>, vector<1x32xf32>, vector<1x32xf32>, vector<1x32xf32>, vector<1x32xf32> -> vector<16x32xf32>
    %584 = tpu.concatenate %582, %583 in 0 : vector<16x32xf32>, vector<16x32xf32> -> vector<32x32xf32>
    %585 = vector.extract_strided_slice %584 {offsets = [0, 0], sizes = [4, 32], strides = [1, 1]} : vector<32x32xf32> to vector<4x32xf32>
    %586 = vector.extract_strided_slice %584 {offsets = [28, 0], sizes = [4, 32], strides = [1, 1]} : vector<32x32xf32> to vector<4x32xf32>
    %587 = tpu.concatenate %585, %586 in 1 : vector<4x32xf32>, vector<4x32xf32> -> vector<4x64xf32>
    %588 = vector.extract_strided_slice %584 {offsets = [4, 0], sizes = [4, 32], strides = [1, 1]} : vector<32x32xf32> to vector<4x32xf32>
    %589 = vector.extract_strided_slice %584 {offsets = [24, 0], sizes = [4, 32], strides = [1, 1]} : vector<32x32xf32> to vector<4x32xf32>
    %590 = tpu.concatenate %588, %589 in 1 : vector<4x32xf32>, vector<4x32xf32> -> vector<4x64xf32>
    %591 = vector.extract_strided_slice %584 {offsets = [8, 0], sizes = [4, 32], strides = [1, 1]} : vector<32x32xf32> to vector<4x32xf32>
    %592 = vector.extract_strided_slice %584 {offsets = [20, 0], sizes = [4, 32], strides = [1, 1]} : vector<32x32xf32> to vector<4x32xf32>
    %593 = tpu.concatenate %591, %592 in 1 : vector<4x32xf32>, vector<4x32xf32> -> vector<4x64xf32>
    %594 = vector.extract_strided_slice %584 {offsets = [12, 0], sizes = [4, 32], strides = [1, 1]} : vector<32x32xf32> to vector<4x32xf32>
    %595 = vector.extract_strided_slice %584 {offsets = [16, 0], sizes = [4, 32], strides = [1, 1]} : vector<32x32xf32> to vector<4x32xf32>
    %596 = tpu.concatenate %594, %595 in 1 : vector<4x32xf32>, vector<4x32xf32> -> vector<4x64xf32>
    %597 = vector.extract_strided_slice %584 {offsets = [16, 0], sizes = [4, 32], strides = [1, 1]} : vector<32x32xf32> to vector<4x32xf32>
    %598 = vector.extract_strided_slice %584 {offsets = [12, 0], sizes = [4, 32], strides = [1, 1]} : vector<32x32xf32> to vector<4x32xf32>
    %599 = tpu.concatenate %597, %598 in 1 : vector<4x32xf32>, vector<4x32xf32> -> vector<4x64xf32>
    %600 = vector.extract_strided_slice %584 {offsets = [20, 0], sizes = [4, 32], strides = [1, 1]} : vector<32x32xf32> to vector<4x32xf32>
    %601 = vector.extract_strided_slice %584 {offsets = [8, 0], sizes = [4, 32], strides = [1, 1]} : vector<32x32xf32> to vector<4x32xf32>
    %602 = tpu.concatenate %600, %601 in 1 : vector<4x32xf32>, vector<4x32xf32> -> vector<4x64xf32>
    %603 = vector.extract_strided_slice %584 {offsets = [24, 0], sizes = [4, 32], strides = [1, 1]} : vector<32x32xf32> to vector<4x32xf32>
    %604 = vector.extract_strided_slice %584 {offsets = [4, 0], sizes = [4, 32], strides = [1, 1]} : vector<32x32xf32> to vector<4x32xf32>
    %605 = tpu.concatenate %603, %604 in 1 : vector<4x32xf32>, vector<4x32xf32> -> vector<4x64xf32>
    %606 = vector.extract_strided_slice %584 {offsets = [28, 0], sizes = [4, 32], strides = [1, 1]} : vector<32x32xf32> to vector<4x32xf32>
    %607 = vector.extract_strided_slice %584 {offsets = [0, 0], sizes = [4, 32], strides = [1, 1]} : vector<32x32xf32> to vector<4x32xf32>
    %608 = tpu.concatenate %606, %607 in 1 : vector<4x32xf32>, vector<4x32xf32> -> vector<4x64xf32>
    %609 = tpu.concatenate %587, %590, %593, %596, %599, %602, %605, %608 in 0 : vector<4x64xf32>, vector<4x64xf32>, vector<4x64xf32>, vector<4x64xf32>, vector<4x64xf32>, vector<4x64xf32>, vector<4x64xf32>, vector<4x64xf32> -> vector<32x64xf32>
    %cst_79 = arith.constant dense<0.000000e+00> : vector<32x256xf32>
    %610 = tpu.matmul %609, %13, %cst_79 {dimension_numbers = #tpu.dot_dimension_numbers<[1], [0], [0], [1], [0, 0, 1, 1], [], []>} : vector<32x64xf32>, vector<64x256xf32>, vector<32x256xf32> -> vector<32x256xf32>
    %611 = vector.broadcast %15 : vector<1x256xf32> to vector<32x256xf32>
    %612 = arith.addf %610, %611 : vector<32x256xf32>
    %613 = tpu.iota {dimensions = array<i32: 1>} : vector<4x256xi32>
    %c128_i32_80 = arith.constant 128 : i32
    %614 = vector.broadcast %c128_i32_80 : i32 to vector<4x256xi32>
    %615 = arith.cmpi sge, %613, %614 : vector<4x256xi32>
    %c192_i32_81 = arith.constant 192 : i32
    %616 = vector.broadcast %c192_i32_81 : i32 to vector<4x256xi32>
    %617 = arith.cmpi slt, %613, %616 : vector<4x256xi32>
    %618 = arith.andi %615, %617 : vector<4x256xi1>
    %cst_82 = arith.constant 0.000000e+00 : f32
    %619 = vector.broadcast %cst_82 : f32 to vector<4x64xf32>
    %cst_83 = arith.constant 0.000000e+00 : f32
    %620 = vector.broadcast %cst_83 : f32 to vector<4x64xf32>
    %621 = vector.extract_strided_slice %612 {offsets = [0, 0], sizes = [4, 256], strides = [1, 1]} : vector<32x256xf32> to vector<4x256xf32>
    %cst_84 = arith.constant dense<0.000000e+00> : vector<4x256xf32>
    %622 = tpu.matmul %619, %14, %cst_84 {dimension_numbers = #tpu.dot_dimension_numbers<[1], [0], [0], [1], [0, 0, 1, 1], [], []>} : vector<4x64xf32>, vector<64x256xf32>, vector<4x256xf32> -> vector<4x256xf32>
    %623 = arith.addf %621, %622 : vector<4x256xf32>
    %624 = math.tanh %623 : vector<4x256xf32>
    %625 = arith.negf %623 : vector<4x256xf32>
    %626 = math.exp %625 : vector<4x256xf32>
    %cst_85 = arith.constant 1.000000e+00 : f32
    %627 = vector.broadcast %cst_85 : f32 to vector<4x256xf32>
    %628 = arith.addf %627, %626 : vector<4x256xf32>
    %629 = arith.divf %627, %628 : vector<4x256xf32>
    %630 = arith.select %618, %624, %629 : vector<4x256xi1>, vector<4x256xf32>
    %631 = vector.extract_strided_slice %630 {offsets = [0, 64], sizes = [4, 64], strides = [1, 1]} : vector<4x256xf32> to vector<4x64xf32>
    %632 = arith.mulf %631, %620 : vector<4x64xf32>
    %633 = vector.extract_strided_slice %630 {offsets = [0, 0], sizes = [4, 64], strides = [1, 1]} : vector<4x256xf32> to vector<4x64xf32>
    %634 = vector.extract_strided_slice %630 {offsets = [0, 128], sizes = [4, 64], strides = [1, 1]} : vector<4x256xf32> to vector<4x64xf32>
    %635 = arith.mulf %633, %634 : vector<4x64xf32>
    %636 = arith.addf %632, %635 : vector<4x64xf32>
    %637 = vector.extract_strided_slice %630 {offsets = [0, 192], sizes = [4, 64], strides = [1, 1]} : vector<4x256xf32> to vector<4x64xf32>
    %638 = math.tanh %636 : vector<4x64xf32>
    %639 = arith.mulf %637, %638 : vector<4x64xf32>
    %640 = vector.extract_strided_slice %612 {offsets = [4, 0], sizes = [4, 256], strides = [1, 1]} : vector<32x256xf32> to vector<4x256xf32>
    %cst_86 = arith.constant dense<0.000000e+00> : vector<4x256xf32>
    %641 = tpu.matmul %639, %14, %cst_86 {dimension_numbers = #tpu.dot_dimension_numbers<[1], [0], [0], [1], [0, 0, 1, 1], [], []>} : vector<4x64xf32>, vector<64x256xf32>, vector<4x256xf32> -> vector<4x256xf32>
    %642 = arith.addf %640, %641 : vector<4x256xf32>
    %643 = math.tanh %642 : vector<4x256xf32>
    %644 = arith.negf %642 : vector<4x256xf32>
    %645 = math.exp %644 : vector<4x256xf32>
    %cst_87 = arith.constant 1.000000e+00 : f32
    %646 = vector.broadcast %cst_87 : f32 to vector<4x256xf32>
    %647 = arith.addf %646, %645 : vector<4x256xf32>
    %648 = arith.divf %646, %647 : vector<4x256xf32>
    %649 = arith.select %618, %643, %648 : vector<4x256xi1>, vector<4x256xf32>
    %650 = vector.extract_strided_slice %649 {offsets = [0, 64], sizes = [4, 64], strides = [1, 1]} : vector<4x256xf32> to vector<4x64xf32>
    %651 = arith.mulf %650, %636 : vector<4x64xf32>
    %652 = vector.extract_strided_slice %649 {offsets = [0, 0], sizes = [4, 64], strides = [1, 1]} : vector<4x256xf32> to vector<4x64xf32>
    %653 = vector.extract_strided_slice %649 {offsets = [0, 128], sizes = [4, 64], strides = [1, 1]} : vector<4x256xf32> to vector<4x64xf32>
    %654 = arith.mulf %652, %653 : vector<4x64xf32>
    %655 = arith.addf %651, %654 : vector<4x64xf32>
    %656 = vector.extract_strided_slice %649 {offsets = [0, 192], sizes = [4, 64], strides = [1, 1]} : vector<4x256xf32> to vector<4x64xf32>
    %657 = math.tanh %655 : vector<4x64xf32>
    %658 = arith.mulf %656, %657 : vector<4x64xf32>
    %659 = vector.extract_strided_slice %612 {offsets = [8, 0], sizes = [4, 256], strides = [1, 1]} : vector<32x256xf32> to vector<4x256xf32>
    %cst_88 = arith.constant dense<0.000000e+00> : vector<4x256xf32>
    %660 = tpu.matmul %658, %14, %cst_88 {dimension_numbers = #tpu.dot_dimension_numbers<[1], [0], [0], [1], [0, 0, 1, 1], [], []>} : vector<4x64xf32>, vector<64x256xf32>, vector<4x256xf32> -> vector<4x256xf32>
    %661 = arith.addf %659, %660 : vector<4x256xf32>
    %662 = math.tanh %661 : vector<4x256xf32>
    %663 = arith.negf %661 : vector<4x256xf32>
    %664 = math.exp %663 : vector<4x256xf32>
    %cst_89 = arith.constant 1.000000e+00 : f32
    %665 = vector.broadcast %cst_89 : f32 to vector<4x256xf32>
    %666 = arith.addf %665, %664 : vector<4x256xf32>
    %667 = arith.divf %665, %666 : vector<4x256xf32>
    %668 = arith.select %618, %662, %667 : vector<4x256xi1>, vector<4x256xf32>
    %669 = vector.extract_strided_slice %668 {offsets = [0, 64], sizes = [4, 64], strides = [1, 1]} : vector<4x256xf32> to vector<4x64xf32>
    %670 = arith.mulf %669, %655 : vector<4x64xf32>
    %671 = vector.extract_strided_slice %668 {offsets = [0, 0], sizes = [4, 64], strides = [1, 1]} : vector<4x256xf32> to vector<4x64xf32>
    %672 = vector.extract_strided_slice %668 {offsets = [0, 128], sizes = [4, 64], strides = [1, 1]} : vector<4x256xf32> to vector<4x64xf32>
    %673 = arith.mulf %671, %672 : vector<4x64xf32>
    %674 = arith.addf %670, %673 : vector<4x64xf32>
    %675 = vector.extract_strided_slice %668 {offsets = [0, 192], sizes = [4, 64], strides = [1, 1]} : vector<4x256xf32> to vector<4x64xf32>
    %676 = math.tanh %674 : vector<4x64xf32>
    %677 = arith.mulf %675, %676 : vector<4x64xf32>
    %678 = vector.extract_strided_slice %612 {offsets = [12, 0], sizes = [4, 256], strides = [1, 1]} : vector<32x256xf32> to vector<4x256xf32>
    %cst_90 = arith.constant dense<0.000000e+00> : vector<4x256xf32>
    %679 = tpu.matmul %677, %14, %cst_90 {dimension_numbers = #tpu.dot_dimension_numbers<[1], [0], [0], [1], [0, 0, 1, 1], [], []>} : vector<4x64xf32>, vector<64x256xf32>, vector<4x256xf32> -> vector<4x256xf32>
    %680 = arith.addf %678, %679 : vector<4x256xf32>
    %681 = math.tanh %680 : vector<4x256xf32>
    %682 = arith.negf %680 : vector<4x256xf32>
    %683 = math.exp %682 : vector<4x256xf32>
    %cst_91 = arith.constant 1.000000e+00 : f32
    %684 = vector.broadcast %cst_91 : f32 to vector<4x256xf32>
    %685 = arith.addf %684, %683 : vector<4x256xf32>
    %686 = arith.divf %684, %685 : vector<4x256xf32>
    %687 = arith.select %618, %681, %686 : vector<4x256xi1>, vector<4x256xf32>
    %688 = vector.extract_strided_slice %687 {offsets = [0, 64], sizes = [4, 64], strides = [1, 1]} : vector<4x256xf32> to vector<4x64xf32>
    %689 = arith.mulf %688, %674 : vector<4x64xf32>
    %690 = vector.extract_strided_slice %687 {offsets = [0, 0], sizes = [4, 64], strides = [1, 1]} : vector<4x256xf32> to vector<4x64xf32>
    %691 = vector.extract_strided_slice %687 {offsets = [0, 128], sizes = [4, 64], strides = [1, 1]} : vector<4x256xf32> to vector<4x64xf32>
    %692 = arith.mulf %690, %691 : vector<4x64xf32>
    %693 = arith.addf %689, %692 : vector<4x64xf32>
    %694 = vector.extract_strided_slice %687 {offsets = [0, 192], sizes = [4, 64], strides = [1, 1]} : vector<4x256xf32> to vector<4x64xf32>
    %695 = math.tanh %693 : vector<4x64xf32>
    %696 = arith.mulf %694, %695 : vector<4x64xf32>
    %697 = vector.extract_strided_slice %612 {offsets = [16, 0], sizes = [4, 256], strides = [1, 1]} : vector<32x256xf32> to vector<4x256xf32>
    %cst_92 = arith.constant dense<0.000000e+00> : vector<4x256xf32>
    %698 = tpu.matmul %696, %14, %cst_92 {dimension_numbers = #tpu.dot_dimension_numbers<[1], [0], [0], [1], [0, 0, 1, 1], [], []>} : vector<4x64xf32>, vector<64x256xf32>, vector<4x256xf32> -> vector<4x256xf32>
    %699 = arith.addf %697, %698 : vector<4x256xf32>
    %700 = math.tanh %699 : vector<4x256xf32>
    %701 = arith.negf %699 : vector<4x256xf32>
    %702 = math.exp %701 : vector<4x256xf32>
    %cst_93 = arith.constant 1.000000e+00 : f32
    %703 = vector.broadcast %cst_93 : f32 to vector<4x256xf32>
    %704 = arith.addf %703, %702 : vector<4x256xf32>
    %705 = arith.divf %703, %704 : vector<4x256xf32>
    %706 = arith.select %618, %700, %705 : vector<4x256xi1>, vector<4x256xf32>
    %707 = vector.extract_strided_slice %706 {offsets = [0, 64], sizes = [4, 64], strides = [1, 1]} : vector<4x256xf32> to vector<4x64xf32>
    %708 = arith.mulf %707, %693 : vector<4x64xf32>
    %709 = vector.extract_strided_slice %706 {offsets = [0, 0], sizes = [4, 64], strides = [1, 1]} : vector<4x256xf32> to vector<4x64xf32>
    %710 = vector.extract_strided_slice %706 {offsets = [0, 128], sizes = [4, 64], strides = [1, 1]} : vector<4x256xf32> to vector<4x64xf32>
    %711 = arith.mulf %709, %710 : vector<4x64xf32>
    %712 = arith.addf %708, %711 : vector<4x64xf32>
    %713 = vector.extract_strided_slice %706 {offsets = [0, 192], sizes = [4, 64], strides = [1, 1]} : vector<4x256xf32> to vector<4x64xf32>
    %714 = math.tanh %712 : vector<4x64xf32>
    %715 = arith.mulf %713, %714 : vector<4x64xf32>
    %716 = vector.extract_strided_slice %612 {offsets = [20, 0], sizes = [4, 256], strides = [1, 1]} : vector<32x256xf32> to vector<4x256xf32>
    %cst_94 = arith.constant dense<0.000000e+00> : vector<4x256xf32>
    %717 = tpu.matmul %715, %14, %cst_94 {dimension_numbers = #tpu.dot_dimension_numbers<[1], [0], [0], [1], [0, 0, 1, 1], [], []>} : vector<4x64xf32>, vector<64x256xf32>, vector<4x256xf32> -> vector<4x256xf32>
    %718 = arith.addf %716, %717 : vector<4x256xf32>
    %719 = math.tanh %718 : vector<4x256xf32>
    %720 = arith.negf %718 : vector<4x256xf32>
    %721 = math.exp %720 : vector<4x256xf32>
    %cst_95 = arith.constant 1.000000e+00 : f32
    %722 = vector.broadcast %cst_95 : f32 to vector<4x256xf32>
    %723 = arith.addf %722, %721 : vector<4x256xf32>
    %724 = arith.divf %722, %723 : vector<4x256xf32>
    %725 = arith.select %618, %719, %724 : vector<4x256xi1>, vector<4x256xf32>
    %726 = vector.extract_strided_slice %725 {offsets = [0, 64], sizes = [4, 64], strides = [1, 1]} : vector<4x256xf32> to vector<4x64xf32>
    %727 = arith.mulf %726, %712 : vector<4x64xf32>
    %728 = vector.extract_strided_slice %725 {offsets = [0, 0], sizes = [4, 64], strides = [1, 1]} : vector<4x256xf32> to vector<4x64xf32>
    %729 = vector.extract_strided_slice %725 {offsets = [0, 128], sizes = [4, 64], strides = [1, 1]} : vector<4x256xf32> to vector<4x64xf32>
    %730 = arith.mulf %728, %729 : vector<4x64xf32>
    %731 = arith.addf %727, %730 : vector<4x64xf32>
    %732 = vector.extract_strided_slice %725 {offsets = [0, 192], sizes = [4, 64], strides = [1, 1]} : vector<4x256xf32> to vector<4x64xf32>
    %733 = math.tanh %731 : vector<4x64xf32>
    %734 = arith.mulf %732, %733 : vector<4x64xf32>
    %735 = vector.extract_strided_slice %612 {offsets = [24, 0], sizes = [4, 256], strides = [1, 1]} : vector<32x256xf32> to vector<4x256xf32>
    %cst_96 = arith.constant dense<0.000000e+00> : vector<4x256xf32>
    %736 = tpu.matmul %734, %14, %cst_96 {dimension_numbers = #tpu.dot_dimension_numbers<[1], [0], [0], [1], [0, 0, 1, 1], [], []>} : vector<4x64xf32>, vector<64x256xf32>, vector<4x256xf32> -> vector<4x256xf32>
    %737 = arith.addf %735, %736 : vector<4x256xf32>
    %738 = math.tanh %737 : vector<4x256xf32>
    %739 = arith.negf %737 : vector<4x256xf32>
    %740 = math.exp %739 : vector<4x256xf32>
    %cst_97 = arith.constant 1.000000e+00 : f32
    %741 = vector.broadcast %cst_97 : f32 to vector<4x256xf32>
    %742 = arith.addf %741, %740 : vector<4x256xf32>
    %743 = arith.divf %741, %742 : vector<4x256xf32>
    %744 = arith.select %618, %738, %743 : vector<4x256xi1>, vector<4x256xf32>
    %745 = vector.extract_strided_slice %744 {offsets = [0, 64], sizes = [4, 64], strides = [1, 1]} : vector<4x256xf32> to vector<4x64xf32>
    %746 = arith.mulf %745, %731 : vector<4x64xf32>
    %747 = vector.extract_strided_slice %744 {offsets = [0, 0], sizes = [4, 64], strides = [1, 1]} : vector<4x256xf32> to vector<4x64xf32>
    %748 = vector.extract_strided_slice %744 {offsets = [0, 128], sizes = [4, 64], strides = [1, 1]} : vector<4x256xf32> to vector<4x64xf32>
    %749 = arith.mulf %747, %748 : vector<4x64xf32>
    %750 = arith.addf %746, %749 : vector<4x64xf32>
    %751 = vector.extract_strided_slice %744 {offsets = [0, 192], sizes = [4, 64], strides = [1, 1]} : vector<4x256xf32> to vector<4x64xf32>
    %752 = math.tanh %750 : vector<4x64xf32>
    %753 = arith.mulf %751, %752 : vector<4x64xf32>
    %754 = vector.extract_strided_slice %612 {offsets = [28, 0], sizes = [4, 256], strides = [1, 1]} : vector<32x256xf32> to vector<4x256xf32>
    %cst_98 = arith.constant dense<0.000000e+00> : vector<4x256xf32>
    %755 = tpu.matmul %753, %14, %cst_98 {dimension_numbers = #tpu.dot_dimension_numbers<[1], [0], [0], [1], [0, 0, 1, 1], [], []>} : vector<4x64xf32>, vector<64x256xf32>, vector<4x256xf32> -> vector<4x256xf32>
    %756 = arith.addf %754, %755 : vector<4x256xf32>
    %757 = math.tanh %756 : vector<4x256xf32>
    %758 = arith.negf %756 : vector<4x256xf32>
    %759 = math.exp %758 : vector<4x256xf32>
    %cst_99 = arith.constant 1.000000e+00 : f32
    %760 = vector.broadcast %cst_99 : f32 to vector<4x256xf32>
    %761 = arith.addf %760, %759 : vector<4x256xf32>
    %762 = arith.divf %760, %761 : vector<4x256xf32>
    %763 = arith.select %618, %757, %762 : vector<4x256xi1>, vector<4x256xf32>
    %764 = vector.extract_strided_slice %763 {offsets = [0, 64], sizes = [4, 64], strides = [1, 1]} : vector<4x256xf32> to vector<4x64xf32>
    %765 = arith.mulf %764, %750 : vector<4x64xf32>
    %766 = vector.extract_strided_slice %763 {offsets = [0, 0], sizes = [4, 64], strides = [1, 1]} : vector<4x256xf32> to vector<4x64xf32>
    %767 = vector.extract_strided_slice %763 {offsets = [0, 128], sizes = [4, 64], strides = [1, 1]} : vector<4x256xf32> to vector<4x64xf32>
    %768 = arith.mulf %766, %767 : vector<4x64xf32>
    %769 = arith.addf %765, %768 : vector<4x64xf32>
    %770 = vector.extract_strided_slice %763 {offsets = [0, 192], sizes = [4, 64], strides = [1, 1]} : vector<4x256xf32> to vector<4x64xf32>
    %771 = math.tanh %769 : vector<4x64xf32>
    %772 = arith.mulf %770, %771 : vector<4x64xf32>
    %773 = vector.extract_strided_slice %639 {offsets = [0, 0], sizes = [4, 32], strides = [1, 1]} : vector<4x64xf32> to vector<4x32xf32>
    %774 = vector.extract_strided_slice %772 {offsets = [0, 32], sizes = [4, 32], strides = [1, 1]} : vector<4x64xf32> to vector<4x32xf32>
    %775 = tpu.concatenate %773, %774 in 1 : vector<4x32xf32>, vector<4x32xf32> -> vector<4x64xf32>
    %776 = vector.extract_strided_slice %658 {offsets = [0, 0], sizes = [4, 32], strides = [1, 1]} : vector<4x64xf32> to vector<4x32xf32>
    %777 = vector.extract_strided_slice %753 {offsets = [0, 32], sizes = [4, 32], strides = [1, 1]} : vector<4x64xf32> to vector<4x32xf32>
    %778 = tpu.concatenate %776, %777 in 1 : vector<4x32xf32>, vector<4x32xf32> -> vector<4x64xf32>
    %779 = vector.extract_strided_slice %677 {offsets = [0, 0], sizes = [4, 32], strides = [1, 1]} : vector<4x64xf32> to vector<4x32xf32>
    %780 = vector.extract_strided_slice %734 {offsets = [0, 32], sizes = [4, 32], strides = [1, 1]} : vector<4x64xf32> to vector<4x32xf32>
    %781 = tpu.concatenate %779, %780 in 1 : vector<4x32xf32>, vector<4x32xf32> -> vector<4x64xf32>
    %782 = vector.extract_strided_slice %696 {offsets = [0, 0], sizes = [4, 32], strides = [1, 1]} : vector<4x64xf32> to vector<4x32xf32>
    %783 = vector.extract_strided_slice %715 {offsets = [0, 32], sizes = [4, 32], strides = [1, 1]} : vector<4x64xf32> to vector<4x32xf32>
    %784 = tpu.concatenate %782, %783 in 1 : vector<4x32xf32>, vector<4x32xf32> -> vector<4x64xf32>
    %785 = vector.extract_strided_slice %715 {offsets = [0, 0], sizes = [4, 32], strides = [1, 1]} : vector<4x64xf32> to vector<4x32xf32>
    %786 = vector.extract_strided_slice %696 {offsets = [0, 32], sizes = [4, 32], strides = [1, 1]} : vector<4x64xf32> to vector<4x32xf32>
    %787 = tpu.concatenate %785, %786 in 1 : vector<4x32xf32>, vector<4x32xf32> -> vector<4x64xf32>
    %788 = vector.extract_strided_slice %734 {offsets = [0, 0], sizes = [4, 32], strides = [1, 1]} : vector<4x64xf32> to vector<4x32xf32>
    %789 = vector.extract_strided_slice %677 {offsets = [0, 32], sizes = [4, 32], strides = [1, 1]} : vector<4x64xf32> to vector<4x32xf32>
    %790 = tpu.concatenate %788, %789 in 1 : vector<4x32xf32>, vector<4x32xf32> -> vector<4x64xf32>
    %791 = vector.extract_strided_slice %753 {offsets = [0, 0], sizes = [4, 32], strides = [1, 1]} : vector<4x64xf32> to vector<4x32xf32>
    %792 = vector.extract_strided_slice %658 {offsets = [0, 32], sizes = [4, 32], strides = [1, 1]} : vector<4x64xf32> to vector<4x32xf32>
    %793 = tpu.concatenate %791, %792 in 1 : vector<4x32xf32>, vector<4x32xf32> -> vector<4x64xf32>
    %794 = vector.extract_strided_slice %772 {offsets = [0, 0], sizes = [4, 32], strides = [1, 1]} : vector<4x64xf32> to vector<4x32xf32>
    %795 = vector.extract_strided_slice %639 {offsets = [0, 32], sizes = [4, 32], strides = [1, 1]} : vector<4x64xf32> to vector<4x32xf32>
    %796 = tpu.concatenate %794, %795 in 1 : vector<4x32xf32>, vector<4x32xf32> -> vector<4x64xf32>
    %797 = tpu.concatenate %775, %778, %781, %784, %787, %790, %793, %796 in 0 : vector<4x64xf32>, vector<4x64xf32>, vector<4x64xf32>, vector<4x64xf32>, vector<4x64xf32>, vector<4x64xf32>, vector<4x64xf32>, vector<4x64xf32> -> vector<32x64xf32>
    %798 = vector.extract_strided_slice %797 {offsets = [0, 0], sizes = [4, 64], strides = [1, 1]} : vector<32x64xf32> to vector<4x64xf32>
    %799 = vector.extract_strided_slice %797 {offsets = [4, 0], sizes = [4, 64], strides = [1, 1]} : vector<32x64xf32> to vector<4x64xf32>
    %800 = vector.extract_strided_slice %797 {offsets = [8, 0], sizes = [4, 64], strides = [1, 1]} : vector<32x64xf32> to vector<4x64xf32>
    %801 = vector.extract_strided_slice %797 {offsets = [12, 0], sizes = [4, 64], strides = [1, 1]} : vector<32x64xf32> to vector<4x64xf32>
    %802 = vector.extract_strided_slice %797 {offsets = [16, 0], sizes = [4, 64], strides = [1, 1]} : vector<32x64xf32> to vector<4x64xf32>
    %803 = vector.extract_strided_slice %797 {offsets = [20, 0], sizes = [4, 64], strides = [1, 1]} : vector<32x64xf32> to vector<4x64xf32>
    %804 = vector.extract_strided_slice %797 {offsets = [24, 0], sizes = [4, 64], strides = [1, 1]} : vector<32x64xf32> to vector<4x64xf32>
    %805 = vector.extract_strided_slice %797 {offsets = [28, 0], sizes = [4, 64], strides = [1, 1]} : vector<32x64xf32> to vector<4x64xf32>
    %806 = arith.addf %798, %799 : vector<4x64xf32>
    %807 = arith.maximumf %798, %799 : vector<4x64xf32>
    %808 = arith.addf %806, %800 : vector<4x64xf32>
    %809 = arith.maximumf %807, %800 : vector<4x64xf32>
    %810 = arith.addf %808, %801 : vector<4x64xf32>
    %811 = arith.maximumf %809, %801 : vector<4x64xf32>
    %812 = arith.addf %810, %802 : vector<4x64xf32>
    %813 = arith.maximumf %811, %802 : vector<4x64xf32>
    %814 = arith.addf %812, %803 : vector<4x64xf32>
    %815 = arith.maximumf %813, %803 : vector<4x64xf32>
    %816 = arith.addf %814, %804 : vector<4x64xf32>
    %817 = arith.maximumf %815, %804 : vector<4x64xf32>
    %818 = arith.addf %816, %805 : vector<4x64xf32>
    %819 = arith.maximumf %817, %805 : vector<4x64xf32>
    %cst_100 = arith.constant 1.250000e-01 : f32
    %820 = vector.broadcast %cst_100 : f32 to vector<4x64xf32>
    %821 = arith.mulf %818, %820 : vector<4x64xf32>
    %822 = vector.extract_strided_slice %821 {offsets = [0, 0], sizes = [2, 64], strides = [1, 1]} : vector<4x64xf32> to vector<2x64xf32>
    %823 = vector.extract_strided_slice %819 {offsets = [0, 0], sizes = [2, 64], strides = [1, 1]} : vector<4x64xf32> to vector<2x64xf32>
    %824 = vector.extract_strided_slice %821 {offsets = [2, 0], sizes = [2, 64], strides = [1, 1]} : vector<4x64xf32> to vector<2x64xf32>
    %825 = vector.extract_strided_slice %819 {offsets = [2, 0], sizes = [2, 64], strides = [1, 1]} : vector<4x64xf32> to vector<2x64xf32>
    %826 = tpu.concatenate %822, %823, %824, %825 in 1 : vector<2x64xf32>, vector<2x64xf32>, vector<2x64xf32>, vector<2x64xf32> -> vector<2x256xf32>
    %cst_101 = arith.constant dense<0.000000e+00> : vector<2x32xf32>
    %827 = tpu.matmul %826, %542, %cst_101 {dimension_numbers = #tpu.dot_dimension_numbers<[1], [0], [0], [1], [0, 0, 1, 1], [], []>} : vector<2x256xf32>, vector<256x32xf32>, vector<2x32xf32> -> vector<2x32xf32>
    %828 = vector.broadcast %543 : vector<1x32xf32> to vector<2x32xf32>
    %829 = arith.addf %827, %828 : vector<2x32xf32>
    %830 = math.tanh %829 : vector<2x32xf32>
    %c0_102 = arith.constant 0 : index
    %c0_103 = arith.constant 0 : index
    %831 = vector.load %arg10[%c0_102, %c0_103] : memref<32x3xf32, #tpu.memory_space<vmem>>, vector<32x3xf32>
    %cst_104 = arith.constant dense<0.000000e+00> : vector<2x3xf32>
    %832 = tpu.matmul %830, %831, %cst_104 {dimension_numbers = #tpu.dot_dimension_numbers<[1], [0], [0], [1], [0, 0, 1, 1], [], []>} : vector<2x32xf32>, vector<32x3xf32>, vector<2x3xf32> -> vector<2x3xf32>
    %c0_105 = arith.constant 0 : index
    %c0_106 = arith.constant 0 : index
    %833 = vector.load %arg11[%c0_105, %c0_106] : memref<1x3xf32, #tpu.memory_space<vmem>>, vector<1x3xf32>
    %834 = vector.broadcast %833 : vector<1x3xf32> to vector<2x3xf32>
    %835 = arith.addf %832, %834 : vector<2x3xf32>
    %c0_107 = arith.constant 0 : index
    %c0_108 = arith.constant 0 : index
    %836 = vector.load %arg12[%c0_107, %c0_108] : memref<2x3xf32, #tpu.memory_space<vmem>>, vector<2x3xf32>
    tpu.vector_store %arg12[%c0_107, %c0_108], %835 {strides = array<i32>} : memref<2x3xf32, #tpu.memory_space<vmem>>, vector<2x3xf32>,
    return
  }
}

</mosaic_0001>

<bundles_post_ra>
// kernel: esim_forward.1
= control target key start
LH: loop header
LB: loop body
LE: loop exit
PB: predicated region body
PF: predicated region fallthrough
CT: control target
= control target key end

     0   :  { %17 = vsyncpa [#allocation3], 0  ;;  %s6208_s0 = inlined_call_operand.vmem [shape: s32[32,1], index: 0, kind: input, shape index: {}]   ;;  %s6209_s1 = inlined_call_operand.vmem [shape: f32[56,32], index: 1, kind: input, shape index: {}]   ;;  %s6210_s2 = inlined_call_operand.vmem [shape: f32[64,256], index: 2, kind: input, shape index: {}]   ;;  %s6211_s3 = inlined_call_operand.vmem [shape: f32[64,256], index: 3, kind: input, shape index: {}]   ;;  %s6212_s4 = inlined_call_operand.vmem [shape: f32[1,256], index: 4, kind: input, shape index: {}]   ;;  %s6213_s5 = inlined_call_operand.hbm [shape: f32[64,256], index: 5, kind: input, shape index: {}]   ;;  %s6214_s6 = inlined_call_operand.hbm [shape: f32[64,256], index: 6, kind: input, shape index: {}]   ;;  %s6215_s7 = inlined_call_operand.vmem [shape: f32[1,256], index: 7, kind: input, shape index: {}]   ;;  %s6216_s8 = inlined_call_operand.vmem [shape: f32[256,32], index: 8, kind: input, shape index: {}]   ;;  %s6217_s9 = inlined_call_operand.vmem [shape: f32[1,32], index: 9, kind: input, shape index: {}]   ;;  %s6218_s10 = inlined_call_operand.vmem [shape: f32[32,3], index: 10, kind: input, shape index: {}]   ;;  %s6219_s11 = inlined_call_operand.vmem [shape: f32[1,3], index: 11, kind: input, shape index: {}]   ;;  %s6220_s12 = inlined_call_operand.hbm [shape: f32[2,3], index: 12, kind: output, shape index: {}]  }
   0x1   :  { %18 = vsyncpa [#allocation6], 0 }
   0x2   :  { %19 = vsyncpa [#allocation4], 0  ;;  %s34_s23 = sshll.u32 %s6213_s5, 4  ;;  %s4508_s24 = smov [#allocation2]   ;;  %s35_s23 = int_to_ptr.hbm [resolvable:$true] %s34_s23 }
   0x3   :  { %s36_s25 = sshll.u32 %s4508_s24, 4  ;;  %s47_s28 = sshll.u32 %s6214_s6, 4  ;;  %s37_s25 = int_to_ptr.vmem [resolvable:$true] %s36_s25  ;;  %s48_s28 = int_to_ptr.hbm [resolvable:$true] %s47_s28 }
   0x4   :  { %s4509_s29 = smov 256   ;;  %s4510_s30 = smov 16  }
   0x5   :  { %42 = dma.hbm_to_vmem [thread:$0]  %s35_s23, 2048, %s37_s25, [#allocation3], %s4509_s29, %s4509_s29, %s4510_s30  }
   0x6   :  { %s4511_s13 = smov [#allocation5]  }
   0x7   :  { %s49_s14 = sshll.u32 %s4511_s13, 4  ;;  %s50_s14 = int_to_ptr.vmem [resolvable:$true] %s49_s14 }
   0x8   :  { %55 = dma.hbm_to_vmem [thread:$0]  %s48_s28, 2048, %s50_s14, [#allocation6], %s4509_s29, %s4509_s29, %s4510_s30  }
   0x9   :  { %4502 = dma.done.wait [#allocation3], 2048  }
   0xa   :  { %4503 = vsyncadd [#allocation3], 4294965248 }
   0xb   :  { %4504 = dma.done.wait [#allocation6], 2048  }
   0xc   :  { %4505 = vsyncadd [#allocation6], 4294965248  ;;  %v4512_v0 = vmov 0   ;;  %v74_v1 = vld [vmem:[%s6208_s0] sm:$0xff]  ;;  %v110_v2 = vld [vmem:[%s6209_s1 + $0x30] sm:$0xff]  ;;  %v78_v10 = vlaneseq  ;;  %vm111_vm0 = vcmask 457728  }
   0xd   :  { %4022 = vset.pattern.permute.xlu0 %v4512_v0  ;;  %4023 = vset.pattern.permute.xlu1 %v4512_v0  ;;  %v109_v3 = vld [vmem:[%s6209_s1 + $0x28] sm:$0xff]  ;;  %v108_v4 = vld [vmem:[%s6209_s1 + $0x20] sm:$0xff]  ;;  %v107_v5 = vld [vmem:[%s6209_s1 + $0x18] sm:$0xff]  ;;  %v4513_v13 = vmov 0.0   ;;  %vm224_vm3 = vcmask 261120   ;;  %vm242_vm4 = vcmask 1041408  }
   0xe   :  { %81 = vperm.xlu0 %4022, %v74_v1   ;;  %133 = vmatpush.msra.mxu0 %v110_v2  ;;  %v75_v6 = vld [vmem:[%s6208_s0 + $0x8] sm:$0xff]  ;;  %v106_v7 = vld [vmem:[%s6209_s1 + $0x10] sm:$0xff]  ;;  %v104_v9 = vld [vmem:[%s6209_s1] sm:$0xff]  ;;  %v4615_v11 = vand.u32 127, %v78_v10  ;;  %vm244_vm5 = vcmask 1043456   ;;  %vm256_vm6 = vcmask 523264  }
   0xf   :  { %v105_v8 = vld [vmem:[%s6209_s1 + $0x8] sm:$0xff]  ;;  %s4514_s1 = smov 32   ;;  %v4638_v23 = vld [vmem:[%s6211_s3 + $0x70] sm:$0xff]  ;;  %v4643_v24 = vld [vmem:[%s6211_s3 + $0x60] sm:$0xff]  ;;  %vm246_vm7 = vcmask 1045504   ;;  %s4516_s15 = smov [#allocation7]  }
  0x10   :  { %134 = vmatpush.msra.mxu0 %v109_v3  ;;  %v167_v25 = vld [vmem:[%s6210_s2 + $0x70] sm:$0xff]  ;;  %327 = vmatpush.msra.mxu3 %v4638_v23  ;;  %v165_v26 = vld [vmem:[%s6210_s2 + $0x60] sm:$0xff]  ;;  %v168_v39 = vld [vmem:[%s6210_s2 + $0x78] sm:$0xff]  ;;  %s3879_s16 = sshll.u32 %s6220_s12, 4  ;;  %s3880_s16 = int_to_ptr.hbm [resolvable:$true] %s3879_s16 }
  0x11   :  { %271 = vmatpush.msra.mxu1 %v167_v25  ;;  %v4655_v27 = vld [vmem:[%s6211_s3 + $0x50] sm:$0xff]  ;;  %425 = vmatpush.msra.mxu2 %v4638_v23  ;;  %v4663_v28 = vld [vmem:[%s6211_s3 + $0x40] sm:$0xff]  ;;  %v166_v40 = vld [vmem:[%s6210_s2 + $0x68] sm:$0xff] }
  0x12   :  { %135 = vmatpush.msra.mxu0 %v108_v4  ;;  %328 = vmatpush.msra.mxu3 %v4643_v24  ;;  %v163_v29 = vld [vmem:[%s6210_s2 + $0x50] sm:$0xff]  ;;  %v161_v31 = vld [vmem:[%s6210_s2 + $0x40] sm:$0xff]  ;;  %v164_v41 = vld [vmem:[%s6210_s2 + $0x58] sm:$0xff] }
  0x13   :  { %272 = vmatpush.msra.mxu1 %v165_v26  ;;  %426 = vmatpush.msra.mxu2 %v4643_v24  ;;  %v4679_v30 = vld [vmem:[%s6211_s3 + $0x30] sm:$0xff]  ;;  %v4688_v32 = vld [vmem:[%s6211_s3 + $0x20] sm:$0xff]  ;;  %v162_v42 = vld [vmem:[%s6210_s2 + $0x48] sm:$0xff] }
  0x14   :  { %136 = vmatpush.msra.mxu0 %v107_v5  ;;  %329 = vmatpush.msra.mxu3 %v4655_v27  ;;  %v159_v33 = vld [vmem:[%s6210_s2 + $0x30] sm:$0xff]  ;;  %v157_v35 = vld [vmem:[%s6210_s2 + $0x20] sm:$0xff]  ;;  %v160_v43 = vld [vmem:[%s6210_s2 + $0x38] sm:$0xff] }
  0x15   :  { %427 = vmatpush.msra.mxu2 %v4655_v27  ;;  %273 = vmatpush.msra.mxu1 %v163_v29  ;;  %v4696_v34 = vld [vmem:[%s6211_s3 + $0x10] sm:$0xff]  ;;  %v4707_v36 = vld [vmem:[%s6211_s3] sm:$0xff]  ;;  %v158_v44 = vld [vmem:[%s6210_s2 + $0x28] sm:$0xff] }
  0x16   :  { %84 = vperm.xlu0 %4022, %v75_v6   ;;  %137 = vmatpush.msra.mxu0 %v106_v7  ;;  %v155_v37 = vld [vmem:[%s6210_s2 + $0x10] sm:$0xff]  ;;  %v153_v38 = vld [vmem:[%s6210_s2] sm:$0xff]  ;;  %v156_v45 = vld [vmem:[%s6210_s2 + $0x18] sm:$0xff] }
  0x17   :  { %330 = vmatpush.msra.mxu3 %v4663_v28  ;;  %428 = vmatpush.msra.mxu2 %v4663_v28  ;;  %v154_v46 = vld [vmem:[%s6210_s2 + $0x8] sm:$0xff]  ;;  %v4767_v47 = vld [vmem:[%s6211_s3 + $0x78] sm:$0xff]  ;;  %v185_v6 = vld [vmem:[%s6212_s4] sm:$0x3]  ;;  %s4515_s4 = smov 64  }
  0x18   :  { %138 = vmatpush.msra.mxu0 %v105_v8  ;;  %274 = vmatpush.msra.mxu1 %v161_v31  ;;  %v4773_v49 = vld [vmem:[%s6211_s3 + $0x68] sm:$0xff]  ;;  %v4779_v51 = vld [vmem:[%s6211_s3 + $0x58] sm:$0xff]  ;;  %v252_v7 = vperm.slane %v185_v6, 0 }
  0x19   :  { %331 = vmatpush.msra.mxu3 %v4679_v30  ;;  %429 = vmatpush.msra.mxu2 %v4679_v30  ;;  %v4785_v52 = vld [vmem:[%s6211_s3 + $0x48] sm:$0xff]  ;;  %v4791_v53 = vld [vmem:[%s6211_s3 + $0x38] sm:$0xff] }
  0x1a   :  { %139 = vmatpush.msra.mxu0 %v104_v9  ;;  %275 = vmatpush.msra.mxu1 %v159_v33  ;;  %v4797_v54 = vld [vmem:[%s6211_s3 + $0x28] sm:$0xff]  ;;  %v4807_v59 = vld [vmem:[%s6211_s3 + $0x18] sm:$0xff] }
  0x1b   :  { %332 = vmatpush.msra.mxu3 %v4688_v32  ;;  %430 = vmatpush.msra.mxu2 %v4688_v32  ;;  %v4817_v63 = vld [vmem:[%s6211_s3 + $0x8] sm:$0xff] }
  0x1c   :  { %533 = vmatpush.msrb.mxu0 %v4638_v23  ;;  %276 = vmatpush.msra.mxu1 %v157_v35 }
  0x1d   :  { %333 = vmatpush.msra.mxu3 %v4696_v34  ;;  %431 = vmatpush.msra.mxu2 %v4696_v34 }
  0x1e   :  { %534 = vmatpush.msrb.mxu0 %v4643_v24  ;;  %277 = vmatpush.msra.mxu1 %v155_v37 }
  0x1f   :  { %334 = vmatpush.msra.mxu3 %v4707_v36  ;;  %432 = vmatpush.msra.mxu2 %v4707_v36 }
  0x20   :  { %535 = vmatpush.msrb.mxu0 %v4655_v27  ;;  %335 = vmatmul.f32.vlgmr.msra.gmra.mxu3 %v4513_v13 }
  0x21   :  { %641 = vmatpush.msrb.mxu2 %v4638_v23  ;;  %278 = vmatpush.msra.mxu1 %v153_v38 }
  0x22   :  { %536 = vmatpush.msrb.mxu0 %v4663_v28  ;;  %445 = vmatpush.msrb.mxu3 %v4767_v47 }
  0x23   :  { %642 = vmatpush.msrb.mxu2 %v4643_v24  ;;  %294 = vmatpush.msrb.mxu1 %v168_v39 }
  0x24   :  { %537 = vmatpush.msrb.mxu0 %v4679_v30  ;;  %446 = vmatpush.msrb.mxu3 %v4773_v49 }
  0x25   :  { %643 = vmatpush.msrb.mxu2 %v4655_v27  ;;  %295 = vmatpush.msrb.mxu1 %v166_v40 }
  0x26   :  { %538 = vmatpush.msrb.mxu0 %v4688_v32  ;;  %447 = vmatpush.msrb.mxu3 %v4779_v51 }
  0x27   :  { %644 = vmatpush.msrb.mxu2 %v4663_v28  ;;  %296 = vmatpush.msrb.mxu1 %v164_v41 }
  0x28   :  { %539 = vmatpush.msrb.mxu0 %v4696_v34  ;;  %448 = vmatpush.msrb.mxu3 %v4785_v52 }
  0x29   :  { %645 = vmatpush.msrb.mxu2 %v4679_v30  ;;  %297 = vmatpush.msrb.mxu1 %v162_v42  ;;  %v4877_v42 = vadd.s32 128, %v4615_v11 }
  0x2a   :  { %540 = vmatpush.msrb.mxu0 %v4707_v36  ;;  %449 = vmatpush.msrb.mxu3 %v4791_v53 }
  0x2b   :  { %646 = vmatpush.msrb.mxu2 %v4688_v32  ;;  %298 = vmatpush.msrb.mxu1 %v160_v43  ;;  %vm313_vm13 = vcmp.lt.s32.totalorder %v4877_v42, 192 }
  0x2c   :  { %450 = vmatpush.msrb.mxu3 %v4797_v54 }
  0x2d   :  { %647 = vmatpush.msrb.mxu2 %v4696_v34  ;;  %299 = vmatpush.msrb.mxu1 %v158_v44 }
  0x2e   :  { %451 = vmatpush.msrb.mxu3 %v4807_v59 }
  0x2f   :  { %648 = vmatpush.msrb.mxu2 %v4707_v36  ;;  %300 = vmatpush.msrb.mxu1 %v156_v45 }
  0x30   :  { %452 = vmatpush.msrb.mxu3 %v4817_v63 }
  0x31   :  { %301 = vmatpush.msrb.mxu1 %v154_v46 }
  0x32   :  { %661 = vmatpush.msra.mxu3 %v4767_v47 }
  0x34   :  { %662 = vmatpush.msra.mxu3 %v4773_v49 }
  0x36   :  { %663 = vmatpush.msra.mxu3 %v4779_v51 }
  0x38   :  { %664 = vmatpush.msra.mxu3 %v4785_v52 }
  0x3a   :  { %665 = vmatpush.msra.mxu3 %v4791_v53 }
  0x3c   :  { %666 = vmatpush.msra.mxu3 %v4797_v54 }
  0x3e   :  { %667 = vmatpush.msra.mxu3 %v4807_v59 }
  0x40   :  { %668 = vmatpush.msra.mxu3 %v4817_v63 }
  0x80   :  { %v82_v12 = vpop.permute.xlu0 %81 }
  0x81   :  { %vm92_vm1 = vcmp.eq.s32.totalorder %v4615_v11, %v82_v12 }
  0x82   :  { %v3890_v14 = vsel %vm92_vm1, 1.0, %v4513_v13 }
  0x83   :  { %3894 = vmatmul.msk.f32.vlgmr.msra.gmra.mxu0 %vm111_vm0, %v3890_v14 }
  0x84   :  { %749 = vmatpush.msra.mxu0 %v4638_v23 }
  0x86   :  { %750 = vmatpush.msra.mxu0 %v4643_v24 }
  0x88   :  { %v85_v15 = vpop.permute.xlu0 %84  ;;  %751 = vmatpush.msra.mxu0 %v4655_v27 }
  0x89   :  { %vm93_vm2 = vcmp.eq.s32.totalorder %v4615_v11, %v85_v15 }
  0x8a   :  { %v3891_v16 = vsel %vm93_vm2, 1.0, %v4513_v13  ;;  %752 = vmatpush.msra.mxu0 %v4663_v28 }
  0x8b   :  { %3895 = vmatmul.msk.f32.gmra.mxu0 %vm111_vm0, %v3891_v16 }
  0x8c   :  { %753 = vmatpush.msra.mxu0 %v4679_v30 }
  0x8e   :  { %754 = vmatpush.msra.mxu0 %v4688_v32 }
  0x90   :  { %755 = vmatpush.msra.mxu0 %v4696_v34 }
  0x92   :  { %756 = vmatpush.msra.mxu0 %v4707_v36 }
  0xa3   :  { %v336_v12 = vpop.f32.mrf.mxu3 }
 0x100   :  { %v4623_v17 = vpop.f32.mrf.mxu0 }
 0x101   :  { %v232_v18 = vrot.slane %v4623_v17, 6  ;;  %v237_v20 = vrot.slane %v4623_v17, 2 }
 0x103   :  { %233 = vrot.lane.b32.xlu2 %v232_v18, %s4514_s1 }
 0x108   :  { %v4627_v19 = vpop.f32.mrf.mxu0 }
 0x109   :  { %v220_v21 = vrot.slane %v4627_v19, 6  ;;  %v226_v22 = vrot.slane %v4627_v19, 2 }
 0x10b   :  { %238 = vrot.lane.b32.xlu2 %v237_v20, %s4514_s1  ;;  %221 = vrot.lane.b32.xlu1 %v220_v21, %s4514_s1 }
 0x113   :  { %227 = vrot.lane.b32.xlu1 %v226_v22, %s4514_s1 }
 0x15d   :  { %v234_v48 = vpop.permute.xlu2 %233 }
 0x15e   :  { %v236_v1 = vsel %vm224_vm3, %v4627_v19, %v234_v48 }
 0x165   :  { %v239_v55 = vpop.permute.xlu2 %238 }
 0x166   :  { %v241_v61 = vsel %vm224_vm3, %v4627_v19, %v239_v55 }
 0x167   :  { %v248_v2 = vsel %vm242_vm4, %v236_v1, %v241_v61 }
 0x168   :  { %v249_v3 = vsel %vm244_vm5, %v248_v2, %v236_v1 }
 0x169   :  { %v250_v4 = vsel %vm246_vm7, %v249_v3, %v241_v61 }
 0x17d   :  { %v222_v50 = vpop.permute.xlu1 %221 }
 0x17e   :  { %v225_v57 = vsel %vm224_vm3, %v4623_v17, %v222_v50 }
 0x185   :  { %v228_v56 = vpop.permute.xlu1 %227 }
 0x186   :  { %v230_v58 = vsel %vm224_vm3, %v4623_v17, %v228_v56  ;;  %v253_v17 = vperm.slane %v185_v6, 1 }
 0x187   :  { %v243_v60 = vsel %vm242_vm4, %v225_v57, %v230_v58 }
 0x188   :  { %v245_v62 = vsel %vm244_vm5, %v243_v60, %v225_v57 }
 0x189   :  { %v247_v0 = vsel %vm246_vm7, %v245_v62, %v230_v58 }
 0x18a   :  { %3898 = vmatmul.msk.f32.vlgmr.msra.gmra.mxu1 %vm256_vm6, %v247_v0 }
 0x18b   :  { %347 = vmatpush.msra.mxu1 %v4767_v47 }
 0x18d   :  { %348 = vmatpush.msra.mxu1 %v4773_v49 }
 0x18f   :  { %349 = vmatpush.msra.mxu1 %v4779_v51 }
 0x191   :  { %350 = vmatpush.msra.mxu1 %v4785_v52 }
 0x192   :  { %3899 = vmatmul.msk.f32.gmra.mxu1 %vm256_vm6, %v250_v4 }
 0x193   :  { %351 = vmatpush.msra.mxu1 %v4791_v53 }
 0x195   :  { %352 = vmatpush.msra.mxu1 %v4797_v54 }
 0x197   :  { %353 = vmatpush.msra.mxu1 %v4807_v59 }
 0x199   :  { %354 = vmatpush.msra.mxu1 %v4817_v63 }
 0x19a   :  { %3900 = vmatmul.msk.f32.vlgmr.msrb.gmra.mxu1 %vm256_vm6, %v247_v0 }
 0x19b   :  { %553 = vmatpush.msrb.mxu1 %v4767_v47 }
 0x19d   :  { %554 = vmatpush.msrb.mxu1 %v4773_v49 }
 0x19f   :  { %555 = vmatpush.msrb.mxu1 %v4779_v51 }
 0x1a1   :  { %556 = vmatpush.msrb.mxu1 %v4785_v52 }
 0x1a2   :  { %3901 = vmatmul.msk.f32.gmra.mxu1 %vm256_vm6, %v250_v4  ;;  %v76_v4 = vld [vmem:[%s6208_s0 + $0x10] sm:$0xff] }
 0x1a3   :  { %557 = vmatpush.msrb.mxu1 %v4791_v53 }
 0x1a5   :  { %558 = vmatpush.msrb.mxu1 %v4797_v54 }
 0x1a7   :  { %559 = vmatpush.msrb.mxu1 %v4807_v59 }
 0x1a9   :  { %560 = vmatpush.msrb.mxu1 %v4817_v63 }
 0x1aa   :  { %355 = vmatmul.f32.vlgmr.msra.gmra.mxu1 %v4513_v13 }
 0x1ab   :  { %769 = vmatpush.msra.mxu1 %v4767_v47 }
 0x1ad   :  { %770 = vmatpush.msra.mxu1 %v4773_v49 }
 0x1af   :  { %771 = vmatpush.msra.mxu1 %v4779_v51 }
 0x1b1   :  { %772 = vmatpush.msra.mxu1 %v4785_v52 }
 0x1b3   :  { %773 = vmatpush.msra.mxu1 %v4791_v53 }
 0x1b5   :  { %774 = vmatpush.msra.mxu1 %v4797_v54 }
 0x1b7   :  { %775 = vmatpush.msra.mxu1 %v4807_v59 }
 0x1b9   :  { %776 = vmatpush.msra.mxu1 %v4817_v63 }
 0x207   :  { %v280_v5 = vpop.f32.mrf.mxu1 }
 0x208   :  { %v4868_v10 = vadd.f32 %v280_v5, %v252_v7 }
 0x20a   :  { %v359_v14 = vadd.f32 %v336_v12, %v4868_v10 }
 0x20c   :  { %v3902_v16 = vmul.f32 -1.442695, %v359_v14 }
 0x20e   :  { %4051 = vpow2.f32 %v3902_v16 }
 0x20f   :  { %v283_v8 = vpop.f32.mrf.mxu1 }
 0x210   :  { %v4866_v9 = vadd.f32 %v283_v8, %v252_v7 }
 0x214   :  { %v4052_v20 = vpop.eup %4051 }
 0x215   :  { %v369_v21 = vadd.f32 1.0, %v4052_v20 }
 0x217   :  { %v303_v15 = vpop.f32.mrf.mxu1  ;;  %4053 = vrcp.f32 %v369_v21  ;;  %v382_v46 = vand.u32 2147483648, %v369_v21  ;;  %vm376_vm10 = vweird.f32 %v369_v21  ;;  %v380_v55 = vand.u32 2147483647, %v369_v21 }
 0x218   :  { %v4873_v22 = vadd.f32 %v303_v15, %v253_v17 }
 0x219   :  { %v383_v60 = vor.u32 1.1754944e-38, %v382_v46  ;;  %vm381_vm1 = vcmp.eq.f32.partialorder %v380_v55, 8.507059e+37 }
 0x21d   :  { %v4054_v31 = vpop.eup %4053 }
 0x21e   :  { %v372_v35 = vmul.f32 %v4054_v31, %v369_v21  ;;  %vm377_vm8 = vweird.f32 %v4054_v31 }
 0x21f   :  { %v306_v18 = vpop.f32.mrf.mxu1  ;;  %vm378_vm11 = vmor %vm376_vm10, %vm377_vm8 }
 0x220   :  { %v4871_v19 = vadd.f32 %v306_v18, %v253_v17  ;;  %v373_v38 = vsub.f32 1.0, %v372_v35 }
 0x222   :  { %v374_v40 = vmul.f32 %v4054_v31, %v373_v38 }
 0x224   :  { %v375_v44 = vadd.f32 %v4054_v31, %v374_v40 }
 0x226   :  { %v379_v57 = vsel %vm378_vm11, %v4054_v31, %v375_v44 }
 0x227   :  { %v356_v25 = vpop.f32.mrf.mxu1  ;;  %v384_v1 = vsel %vm381_vm1, %v383_v60, %v379_v57 }
 0x228   :  { %v360_v26 = vadd.f32 %v356_v25, %v4873_v22  ;;  %v403_v5 = vmul.f32 0.0, %v384_v1 }
 0x22a   :  { %v3903_v29 = vmul.f32 -1.442695, %v360_v26 }
 0x22c   :  { %4055 = vpow2.f32 %v3903_v29 }
 0x232   :  { %v4056_v33 = vpop.eup %4055 }
 0x233   :  { %v370_v37 = vadd.f32 1.0, %v4056_v33  ;;  %v77_v33 = vld [vmem:[%s6208_s0 + $0x18] sm:$0xff] }
 0x235   :  { %4057 = vrcp.f32 %v370_v37  ;;  %v397_v45 = vand.u32 2147483648, %v370_v37  ;;  %v395_v50 = vand.u32 2147483647, %v370_v37  ;;  %vm391_vm12 = vweird.f32 %v370_v37 }
 0x236   :  { %4059 = vtanh.f32 %v360_v26 }
 0x237   :  { %v398_v58 = vor.u32 1.1754944e-38, %v397_v45  ;;  %vm396_vm15 = vcmp.eq.f32.partialorder %v395_v50, 8.507059e+37 }
 0x23b   :  { %v4058_v39 = vpop.eup %4057 }
 0x23c   :  { %v387_v41 = vmul.f32 %v4058_v39, %v370_v37  ;;  %vm392_vm9 = vweird.f32 %v4058_v39  ;;  %v4060_v62 = vpop.eup %4059 }
 0x23d   :  { %vm393_vm14 = vmor %vm391_vm12, %vm392_vm9 }
 0x23e   :  { %v388_v43 = vsub.f32 1.0, %v387_v41 }
 0x240   :  { %v389_v48 = vmul.f32 %v4058_v39, %v388_v43 }
 0x242   :  { %v390_v56 = vadd.f32 %v4058_v39, %v389_v48 }
 0x244   :  { %v394_v61 = vsel %vm393_vm14, %v4058_v39, %v390_v56 }
 0x245   :  { %v399_v0 = vsel %vm396_vm15, %v398_v58, %v394_v61 }
 0x246   :  { %v402_v2 = vsel %vm313_vm13, %v4060_v62, %v399_v0 }
 0x247   :  { %v404_v3 = vmul.f32 %v402_v2, %v384_v1 }
 0x249   :  { %406 = vrot.lane.b32.xlu0 %v404_v3, %s4515_s4 }
 0x251   :  { %87 = vperm.xlu0 %4022, %v76_v4  }
 0x2bb   :  { %v407_v6 = vpop.permute.xlu0 %406 }
 0x2bc   :  { %v4886_v7 = vadd.f32 %v407_v6, %v403_v5 }
 0x2be   :  { %4061 = vtanh.f32 %v4886_v7  ;;  %v508_v0 = vrot.slane %v4886_v7, 6 }
 0x2c3   :  { %v88_v8 = vpop.permute.xlu0 %87 }
 0x2c4   :  { %v4062_v12 = vpop.eup %4061  ;;  %vm94_vm2 = vcmp.eq.s32.totalorder %v4615_v11, %v88_v8 }
 0x2c5   :  { %v3892_v14 = vsel %vm94_vm2, 1.0, %v4513_v13  ;;  %v4891_v15 = vmul.f32 %v4062_v12, %v402_v2 }
 0x2c6   :  { %3896 = vmatmul.msk.f32.gmra.mxu0 %vm111_vm0, %v3892_v14 }
 0x2c7   :  { %413 = vrot.lane.b32.xlu1 %v4891_v15, %s4515_s4 }
 0x2cf   :  { %90 = vperm.xlu1 %4023, %v77_v33  }
 0x339   :  { %v4896_v16 = vpop.permute.xlu1 %413 }
 0x33a   :  { %3904 = vmatmul.msk.f32.vlgmr.msra.gmra.mxu2 %vm256_vm6, %v4896_v16  ;;  %3905 = vmatmul.msk.f32.vlgmr.msrb.gmra.mxu3 %vm256_vm6, %v4896_v16 }
 0x33b   :  { %850 = vmatpush.msra.mxu2 %v4638_v23  ;;  %870 = vmatpush.msrb.mxu3 %v4767_v47 }
 0x33d   :  { %851 = vmatpush.msra.mxu2 %v4643_v24  ;;  %871 = vmatpush.msrb.mxu3 %v4773_v49 }
 0x33f   :  { %852 = vmatpush.msra.mxu2 %v4655_v27  ;;  %872 = vmatpush.msrb.mxu3 %v4779_v51 }
 0x341   :  { %853 = vmatpush.msra.mxu2 %v4663_v28  ;;  %873 = vmatpush.msrb.mxu3 %v4785_v52 }
 0x343   :  { %854 = vmatpush.msra.mxu2 %v4679_v30  ;;  %874 = vmatpush.msrb.mxu3 %v4791_v53 }
 0x345   :  { %855 = vmatpush.msra.mxu2 %v4688_v32  ;;  %875 = vmatpush.msrb.mxu3 %v4797_v54 }
 0x347   :  { %856 = vmatpush.msra.mxu2 %v4696_v34  ;;  %876 = vmatpush.msrb.mxu3 %v4807_v59 }
 0x349   :  { %857 = vmatpush.msra.mxu2 %v4707_v36  ;;  %877 = vmatpush.msrb.mxu3 %v4817_v63 }
 0x3bd   :  { %v434_v17 = vpop.f32.mrf.mxu2  ;;  %v454_v18 = vpop.f32.mrf.mxu3 }
 0x3be   :  { %v459_v20 = vrot.slane %v434_v17, 6  ;;  %v460_v21 = vrot.slane %v454_v18, 6  ;;  %v91_v17 = vpop.permute.xlu1 %90 }
 0x3bf   :  { %vm95_vm2 = vcmp.eq.s32.totalorder %v4615_v11, %v91_v17  ;;  %v4955_v11 = vpop.f32.mrf.mxu0 }
 0x3c0   :  { %v463_v25 = vadd.f32 %v459_v20, %v4868_v10  ;;  %v464_v26 = vadd.f32 %v460_v21, %v4873_v22  ;;  %v3893_v7 = vsel %vm95_vm2, 1.0, %v4513_v13 }
 0x3c1   :  { %3897 = vmatmul.msk.f32.gmra.mxu0 %vm111_vm0, %v3893_v7 }
 0x3c2   :  { %v3906_v29 = vmul.f32 -1.442695, %v463_v25  ;;  %v3907_v31 = vmul.f32 -1.442695, %v464_v26 }
 0x3c4   :  { %4063 = vpow2.f32 %v3906_v29 }
 0x3c5   :  { %4065 = vpow2.f32 %v3907_v31 }
 0x3ca   :  { %v4064_v35 = vpop.eup %4063 }
 0x3cb   :  { %v4066_v37 = vpop.eup %4065  ;;  %v473_v38 = vadd.f32 1.0, %v4064_v35 }
 0x3cc   :  { %v474_v39 = vadd.f32 1.0, %v4066_v37 }
 0x3cd   :  { %4067 = vrcp.f32 %v473_v38  ;;  %v486_v46 = vand.u32 2147483648, %v473_v38  ;;  %v484_v55 = vand.u32 2147483647, %v473_v38  ;;  %vm480_vm10 = vweird.f32 %v473_v38 }
 0x3ce   :  { %4069 = vrcp.f32 %v474_v39  ;;  %v501_v56 = vand.u32 2147483648, %v474_v39  ;;  %v499_v58 = vand.u32 2147483647, %v474_v39  ;;  %vm495_vm12 = vweird.f32 %v474_v39 }
 0x3cf   :  { %4071 = vtanh.f32 %v464_v26  ;;  %v487_v61 = vor.u32 1.1754944e-38, %v486_v46  ;;  %vm485_vm14 = vcmp.eq.f32.partialorder %v484_v55, 8.507059e+37 }
 0x3d0   :  { %v502_v2 = vor.u32 1.1754944e-38, %v501_v56  ;;  %vm500_vm1 = vcmp.eq.f32.partialorder %v499_v58, 8.507059e+37 }
 0x3d3   :  { %v4068_v40 = vpop.eup %4067 }
 0x3d4   :  { %v4070_v41 = vpop.eup %4069  ;;  %v476_v43 = vmul.f32 %v4068_v40, %v473_v38  ;;  %vm481_vm8 = vweird.f32 %v4068_v40 }
 0x3d5   :  { %v491_v44 = vmul.f32 %v4070_v41, %v474_v39  ;;  %vm496_vm9 = vweird.f32 %v4070_v41  ;;  %vm482_vm11 = vmor %vm480_vm10, %vm481_vm8  ;;  %v4072_v3 = vpop.eup %4071 }
 0x3d6   :  { %v477_v45 = vsub.f32 1.0, %v476_v43  ;;  %vm497_vm15 = vmor %vm495_vm12, %vm496_vm9 }
 0x3d7   :  { %v492_v48 = vsub.f32 1.0, %v491_v44 }
 0x3d8   :  { %v478_v50 = vmul.f32 %v4068_v40, %v477_v45 }
 0x3d9   :  { %v493_v57 = vmul.f32 %v4070_v41, %v492_v48 }
 0x3da   :  { %v479_v60 = vadd.f32 %v4068_v40, %v478_v50 }
 0x3db   :  { %v494_v62 = vadd.f32 %v4070_v41, %v493_v57 }
 0x3dc   :  { %v483_v1 = vsel %vm482_vm11, %v4068_v40, %v479_v60 }
 0x3dd   :  { %v488_v4 = vsel %vm485_vm14, %v487_v61, %v483_v1  ;;  %v498_v5 = vsel %vm497_vm15, %v4070_v41, %v494_v62 }
 0x3de   :  { %v503_v6 = vsel %vm500_vm1, %v502_v2, %v498_v5  ;;  %v510_v8 = vmul.f32 %v508_v0, %v488_v4 }
 0x3df   :  { %v506_v12 = vsel %vm313_vm13, %v4072_v3, %v503_v6 }
 0x3e0   :  { %v511_v14 = vmul.f32 %v506_v12, %v488_v4 }
 0x3e2   :  { %513 = vrot.lane.b32.xlu2 %v511_v14, %s4515_s4 }
 0x43c   :  { %v514_v18 = vpop.permute.xlu2 %513 }
 0x43d   :  { %v4930_v20 = vadd.f32 %v514_v18, %v510_v8 }
 0x43e   :  { %v4957_v31 = vpop.f32.mrf.mxu0 }
 0x43f   :  { %4073 = vtanh.f32 %v4930_v20  ;;  %v616_v8 = vrot.slane %v4930_v20, 6 }
 0x445   :  { %v4074_v21 = vpop.eup %4073 }
 0x446   :  { %v4933_v25 = vmul.f32 %v4074_v21, %v506_v12 }
 0x448   :  { %v520_v26 = vrot.slane %v4933_v25, 2 }
 0x44a   :  { %521 = vrot.lane.b32.xlu2 %v520_v26, %s4515_s4 }
 0x4a4   :  { %v522_v29 = vpop.permute.xlu2 %521 }
 0x4a5   :  { %3908 = vmatmul.msk.f32.vlgmr.msrb.gmra.mxu0 %vm256_vm6, %v522_v29  ;;  %3909 = vmatmul.msk.f32.vlgmr.msrb.gmra.mxu1 %vm256_vm6, %v522_v29 }
 0x4a6   :  { %958 = vmatpush.msrb.mxu0 %v4638_v23  ;;  %978 = vmatpush.msrb.mxu1 %v4767_v47 }
 0x4a8   :  { %959 = vmatpush.msrb.mxu0 %v4643_v24  ;;  %979 = vmatpush.msrb.mxu1 %v4773_v49 }
 0x4aa   :  { %960 = vmatpush.msrb.mxu0 %v4655_v27  ;;  %980 = vmatpush.msrb.mxu1 %v4779_v51 }
 0x4ac   :  { %961 = vmatpush.msrb.mxu0 %v4663_v28  ;;  %981 = vmatpush.msrb.mxu1 %v4785_v52 }
 0x4ae   :  { %962 = vmatpush.msrb.mxu0 %v4679_v30  ;;  %982 = vmatpush.msrb.mxu1 %v4791_v53 }
 0x4b0   :  { %963 = vmatpush.msrb.mxu0 %v4688_v32  ;;  %983 = vmatpush.msrb.mxu1 %v4797_v54 }
 0x4b2   :  { %964 = vmatpush.msrb.mxu0 %v4696_v34  ;;  %984 = vmatpush.msrb.mxu1 %v4807_v59 }
 0x4b4   :  { %965 = vmatpush.msrb.mxu0 %v4707_v36  ;;  %985 = vmatpush.msrb.mxu1 %v4817_v63 }
 0x522   :  { %v542_v33 = vpop.f32.mrf.mxu0  ;;  %v562_v35 = vpop.f32.mrf.mxu1 }
 0x523   :  { %v567_v37 = vrot.slane %v542_v33, 4  ;;  %v568_v38 = vrot.slane %v562_v35, 4 }
 0x525   :  { %v571_v39 = vadd.f32 %v567_v37, %v4868_v10  ;;  %v572_v40 = vadd.f32 %v568_v38, %v4873_v22 }
 0x527   :  { %v3910_v41 = vmul.f32 -1.442695, %v571_v39  ;;  %v3911_v43 = vmul.f32 -1.442695, %v572_v40 }
 0x529   :  { %4075 = vpow2.f32 %v3910_v41 }
 0x52a   :  { %4077 = vpow2.f32 %v3911_v43 }
 0x52f   :  { %v4076_v44 = vpop.eup %4075 }
 0x530   :  { %v4078_v45 = vpop.eup %4077  ;;  %v581_v46 = vadd.f32 1.0, %v4076_v44 }
 0x531   :  { %v582_v48 = vadd.f32 1.0, %v4078_v45 }
 0x532   :  { %4079 = vrcp.f32 %v581_v46  ;;  %v594_v60 = vand.u32 2147483648, %v581_v46  ;;  %v592_v0 = vand.u32 2147483647, %v581_v46  ;;  %vm588_vm9 = vweird.f32 %v581_v46 }
 0x533   :  { %4081 = vrcp.f32 %v582_v48  ;;  %v609_v1 = vand.u32 2147483648, %v582_v48  ;;  %v607_v3 = vand.u32 2147483647, %v582_v48  ;;  %vm603_vm11 = vweird.f32 %v582_v48 }
 0x534   :  { %4083 = vtanh.f32 %v572_v40  ;;  %v595_v5 = vor.u32 1.1754944e-38, %v594_v60  ;;  %vm593_vm12 = vcmp.eq.f32.partialorder %v592_v0, 8.507059e+37 }
 0x535   :  { %v610_v14 = vor.u32 1.1754944e-38, %v609_v1  ;;  %vm608_vm15 = vcmp.eq.f32.partialorder %v607_v3, 8.507059e+37 }
 0x538   :  { %v4080_v50 = vpop.eup %4079 }
 0x539   :  { %v4082_v55 = vpop.eup %4081  ;;  %v584_v56 = vmul.f32 %v4080_v50, %v581_v46  ;;  %vm589_vm0 = vweird.f32 %v4080_v50 }
 0x53a   :  { %v599_v57 = vmul.f32 %v4082_v55, %v582_v48  ;;  %vm604_vm8 = vweird.f32 %v4082_v55  ;;  %vm590_vm10 = vmor %vm588_vm9, %vm589_vm0  ;;  %v4084_v17 = vpop.eup %4083 }
 0x53b   :  { %v585_v58 = vsub.f32 1.0, %v584_v56  ;;  %vm605_vm14 = vmor %vm603_vm11, %vm604_vm8 }
 0x53c   :  { %v600_v61 = vsub.f32 1.0, %v599_v57 }
 0x53d   :  { %v586_v62 = vmul.f32 %v4080_v50, %v585_v58 }
 0x53e   :  { %v601_v2 = vmul.f32 %v4082_v55, %v600_v61 }
 0x53f   :  { %v587_v4 = vadd.f32 %v4080_v50, %v586_v62 }
 0x540   :  { %v602_v6 = vadd.f32 %v4082_v55, %v601_v2 }
 0x541   :  { %v591_v12 = vsel %vm590_vm10, %v4080_v50, %v587_v4 }
 0x542   :  { %v596_v7 = vsel %vm593_vm12, %v595_v5, %v591_v12  ;;  %v606_v18 = vsel %vm605_vm14, %v4082_v55, %v602_v6 }
 0x543   :  { %v611_v21 = vsel %vm608_vm15, %v610_v14, %v606_v18  ;;  %v618_v26 = vmul.f32 %v616_v8, %v596_v7 }
 0x544   :  { %v614_v29 = vsel %vm313_vm13, %v4084_v17, %v611_v21 }
 0x545   :  { %v619_v33 = vmul.f32 %v614_v29, %v596_v7 }
 0x547   :  { %621 = vrot.lane.b32.xlu0 %v619_v33, %s4515_s4 }
 0x5b9   :  { %v622_v35 = vpop.permute.xlu0 %621 }
 0x5ba   :  { %v4965_v37 = vadd.f32 %v622_v35, %v618_v26 }
 0x5bc   :  { %4085 = vtanh.f32 %v4965_v37  ;;  %v724_v57 = vrot.slane %v4965_v37, 6 }
 0x5c2   :  { %v4086_v20 = vpop.eup %4085 }
 0x5c3   :  { %v4968_v38 = vmul.f32 %v4086_v20, %v614_v29 }
 0x5c5   :  { %v628_v39 = vrot.slane %v4968_v38, 4 }
 0x5c7   :  { %629 = vrot.lane.b32.xlu1 %v628_v39, %s4515_s4 }
 0x639   :  { %v630_v40 = vpop.permute.xlu1 %629 }
 0x63a   :  { %3912 = vmatmul.msk.f32.vlgmr.msrb.gmra.mxu2 %vm256_vm6, %v630_v40  ;;  %3913 = vmatmul.msk.f32.vlgmr.msra.gmra.mxu3 %vm256_vm6, %v630_v40 }
 0x63b   :  { %1066 = vmatpush.msrb.mxu2 %v4638_v23  ;;  %1086 = vmatpush.msra.mxu3 %v4767_v47 }
 0x63d   :  { %1067 = vmatpush.msrb.mxu2 %v4643_v24  ;;  %1087 = vmatpush.msra.mxu3 %v4773_v49 }
 0x63f   :  { %1068 = vmatpush.msrb.mxu2 %v4655_v27  ;;  %1088 = vmatpush.msra.mxu3 %v4779_v51 }
 0x641   :  { %1069 = vmatpush.msrb.mxu2 %v4663_v28  ;;  %1089 = vmatpush.msra.mxu3 %v4785_v52 }
 0x643   :  { %1070 = vmatpush.msrb.mxu2 %v4679_v30  ;;  %1090 = vmatpush.msra.mxu3 %v4791_v53 }
 0x645   :  { %1071 = vmatpush.msrb.mxu2 %v4688_v32  ;;  %1091 = vmatpush.msra.mxu3 %v4797_v54 }
 0x647   :  { %1072 = vmatpush.msrb.mxu2 %v4696_v34  ;;  %1092 = vmatpush.msra.mxu3 %v4807_v59 }
 0x649   :  { %1073 = vmatpush.msrb.mxu2 %v4707_v36  ;;  %1093 = vmatpush.msra.mxu3 %v4817_v63 }
 0x6bd   :  { %v650_v23 = vpop.f32.mrf.mxu2  ;;  %v670_v24 = vpop.f32.mrf.mxu3 }
 0x6be   :  { %v675_v27 = vrot.slane %v650_v23, 2  ;;  %v676_v28 = vrot.slane %v670_v24, 2 }
 0x6c0   :  { %v679_v30 = vadd.f32 %v675_v27, %v4868_v10  ;;  %v680_v47 = vadd.f32 %v676_v28, %v4873_v22 }
 0x6c2   :  { %v3914_v49 = vmul.f32 -1.442695, %v679_v30  ;;  %v3915_v32 = vmul.f32 -1.442695, %v680_v47 }
 0x6c4   :  { %4087 = vpow2.f32 %v3914_v49 }
 0x6c5   :  { %4089 = vpow2.f32 %v3915_v32 }
 0x6ca   :  { %v4088_v51 = vpop.eup %4087 }
 0x6cb   :  { %v4090_v34 = vpop.eup %4089  ;;  %v689_v52 = vadd.f32 1.0, %v4088_v51 }
 0x6cc   :  { %v690_v53 = vadd.f32 1.0, %v4090_v34 }
 0x6cd   :  { %4091 = vrcp.f32 %v689_v52  ;;  %v702_v43 = vand.u32 2147483648, %v689_v52  ;;  %v700_v22 = vand.u32 2147483647, %v689_v52  ;;  %vm696_vm0 = vweird.f32 %v689_v52 }
 0x6ce   :  { %4093 = vrcp.f32 %v690_v53  ;;  %v717_v45 = vand.u32 2147483648, %v690_v53  ;;  %v715_v48 = vand.u32 2147483647, %v690_v53  ;;  %vm711_vm9 = vweird.f32 %v690_v53 }
 0x6cf   :  { %4095 = vtanh.f32 %v680_v47  ;;  %v703_v55 = vor.u32 1.1754944e-38, %v702_v43  ;;  %vm701_vm10 = vcmp.eq.f32.partialorder %v700_v22, 8.507059e+37 }
 0x6d0   :  { %v718_v60 = vor.u32 1.1754944e-38, %v717_v45  ;;  %vm716_vm12 = vcmp.eq.f32.partialorder %v715_v48, 8.507059e+37 }
 0x6d3   :  { %v4092_v36 = vpop.eup %4091 }
 0x6d4   :  { %v4094_v54 = vpop.eup %4093  ;;  %v692_v59 = vmul.f32 %v4092_v36, %v689_v52  ;;  %vm697_vm1 = vweird.f32 %v4092_v36 }
 0x6d5   :  { %v707_v63 = vmul.f32 %v4094_v54, %v690_v53  ;;  %vm712_vm2 = vweird.f32 %v4094_v54  ;;  %vm698_vm8 = vmor %vm696_vm0, %vm697_vm1  ;;  %v4096_v61 = vpop.eup %4095 }
 0x6d6   :  { %v693_v41 = vsub.f32 1.0, %v692_v59  ;;  %vm713_vm11 = vmor %vm711_vm9, %vm712_vm2 }
 0x6d7   :  { %v708_v10 = vsub.f32 1.0, %v707_v63 }
 0x6d8   :  { %v694_v44 = vmul.f32 %v4092_v36, %v693_v41 }
 0x6d9   :  { %v709_v46 = vmul.f32 %v4094_v54, %v708_v10 }
 0x6da   :  { %v695_v50 = vadd.f32 %v4092_v36, %v694_v44 }
 0x6db   :  { %v710_v56 = vadd.f32 %v4094_v54, %v709_v46 }
 0x6dc   :  { %v699_v58 = vsel %vm698_vm8, %v4092_v36, %v695_v50 }
 0x6dd   :  { %v704_v62 = vsel %vm701_vm10, %v703_v55, %v699_v58  ;;  %v714_v0 = vsel %vm713_vm11, %v4094_v54, %v710_v56 }
 0x6de   :  { %v719_v1 = vsel %vm716_vm12, %v718_v60, %v714_v0  ;;  %v726_v2 = vmul.f32 %v724_v57, %v704_v62 }
 0x6df   :  { %v722_v3 = vsel %vm313_vm13, %v4096_v61, %v719_v1 }
 0x6e0   :  { %v727_v4 = vmul.f32 %v722_v3, %v704_v62 }
 0x6e2   :  { %729 = vrot.lane.b32.xlu2 %v727_v4, %s4515_s4 }
 0x73c   :  { %v730_v5 = vpop.permute.xlu2 %729 }
 0x73d   :  { %v732_v6 = vadd.f32 %v730_v5, %v726_v2 }
 0x73f   :  { %4097 = vtanh.f32 %v732_v6  ;;  %v826_v59 = vrot.slane %v732_v6, 6 }
 0x745   :  { %v4098_v8 = vpop.eup %4097 }
 0x746   :  { %v4996_v12 = vmul.f32 %v4098_v8, %v722_v3 }
 0x748   :  { %v736_v14 = vrot.slane %v4996_v12, 6 }
 0x74a   :  { %737 = vrot.lane.b32.xlu0 %v736_v14, %s4515_s4 }
 0x7bc   :  { %v5000_v17 = vpop.permute.xlu0 %737 }
 0x7bd   :  { %3916 = vmatmul.msk.f32.vlgmr.msra.gmra.mxu0 %vm256_vm6, %v5000_v17  ;;  %3917 = vmatmul.msk.f32.vlgmr.msra.gmra.mxu1 %vm256_vm6, %v5000_v17 }
 0x83a   :  { %v758_v7 = vpop.f32.mrf.mxu0  ;;  %v778_v18 = vpop.f32.mrf.mxu1 }
 0x83b   :  { %v781_v21 = vadd.f32 %v758_v7, %v4866_v9  ;;  %v782_v26 = vadd.f32 %v778_v18, %v4871_v19 }
 0x83d   :  { %v3918_v29 = vmul.f32 -1.442695, %v781_v21  ;;  %v3919_v33 = vmul.f32 -1.442695, %v782_v26 }
 0x83f   :  { %4099 = vpow2.f32 %v3918_v29 }
 0x840   :  { %4101 = vpow2.f32 %v3919_v33 }
 0x845   :  { %v4100_v35 = vpop.eup %4099 }
 0x846   :  { %v4102_v37 = vpop.eup %4101  ;;  %v791_v20 = vadd.f32 1.0, %v4100_v35 }
 0x847   :  { %v792_v39 = vadd.f32 1.0, %v4102_v37 }
 0x848   :  { %4103 = vrcp.f32 %v791_v20  ;;  %v804_v47 = vand.u32 2147483648, %v791_v20  ;;  %v802_v32 = vand.u32 2147483647, %v791_v20  ;;  %vm798_vm1 = vweird.f32 %v791_v20 }
 0x849   :  { %4105 = vrcp.f32 %v792_v39  ;;  %v819_v51 = vand.u32 2147483648, %v792_v39  ;;  %v817_v52 = vand.u32 2147483647, %v792_v39  ;;  %vm813_vm0 = vweird.f32 %v792_v39 }
 0x84a   :  { %4107 = vtanh.f32 %v782_v26  ;;  %v805_v36 = vor.u32 1.1754944e-38, %v804_v47  ;;  %vm803_vm8 = vcmp.eq.f32.partialorder %v802_v32, 8.507059e+37 }
 0x84b   :  { %v820_v41 = vor.u32 1.1754944e-38, %v819_v51  ;;  %vm818_vm10 = vcmp.eq.f32.partialorder %v817_v52, 8.507059e+37 }
 0x84e   :  { %v4104_v40 = vpop.eup %4103 }
 0x84f   :  { %v4106_v23 = vpop.eup %4105  ;;  %v794_v24 = vmul.f32 %v4104_v40, %v791_v20  ;;  %vm799_vm14 = vweird.f32 %v4104_v40 }
 0x850   :  { %v809_v27 = vmul.f32 %v4106_v23, %v792_v39  ;;  %vm814_vm15 = vweird.f32 %v4106_v23  ;;  %vm800_vm2 = vmor %vm798_vm1, %vm799_vm14  ;;  %v4108_v43 = vpop.eup %4107 }
 0x851   :  { %v795_v28 = vsub.f32 1.0, %v794_v24  ;;  %vm815_vm9 = vmor %vm813_vm0, %vm814_vm15 }
 0x852   :  { %v810_v30 = vsub.f32 1.0, %v809_v27 }
 0x853   :  { %v796_v49 = vmul.f32 %v4104_v40, %v795_v28 }
 0x854   :  { %v811_v34 = vmul.f32 %v4106_v23, %v810_v30 }
 0x855   :  { %v797_v53 = vadd.f32 %v4104_v40, %v796_v49 }
 0x856   :  { %v812_v54 = vadd.f32 %v4106_v23, %v811_v34 }
 0x857   :  { %v801_v63 = vsel %vm800_vm2, %v4104_v40, %v797_v53 }
 0x858   :  { %v806_v10 = vsel %vm803_vm8, %v805_v36, %v801_v63  ;;  %v816_v44 = vsel %vm815_vm9, %v4106_v23, %v812_v54 }
 0x859   :  { %v821_v22 = vsel %vm818_vm10, %v820_v41, %v816_v44  ;;  %v828_v45 = vmul.f32 %v826_v59, %v806_v10  ;;  %v1225_v44 = vrot.slane %v4957_v31, 6 }
 0x85a   :  { %v824_v46 = vsel %vm313_vm13, %v4108_v43, %v821_v22  ;;  %v1236_v22 = vrot.slane %v4955_v11, 6 }
 0x85b   :  { %v829_v48 = vmul.f32 %v824_v46, %v806_v10 }
 0x85d   :  { %831 = vrot.lane.b32.xlu1 %v829_v48, %s4515_s4 }
 0x8cf   :  { %v832_v50 = vpop.permute.xlu1 %831 }
 0x8d0   :  { %v834_v55 = vadd.f32 %v832_v50, %v828_v45 }
 0x8d2   :  { %4109 = vtanh.f32 %v834_v55  ;;  %v933_v30 = vrot.slane %v834_v55, 6 }
 0x8d8   :  { %v4110_v56 = vpop.eup %4109 }
 0x8d9   :  { %v5011_v57 = vmul.f32 %v4110_v56, %v824_v46 }
 0x8db   :  { %838 = vrot.lane.b32.xlu2 %v5011_v57, %s4515_s4 }
 0x935   :  { %v5015_v58 = vpop.permute.xlu2 %838 }
 0x936   :  { %3920 = vmatmul.msk.f32.vlgmr.msra.gmra.mxu2 %vm256_vm6, %v5015_v58  ;;  %3921 = vmatmul.msk.f32.vlgmr.msrb.gmra.mxu3 %vm256_vm6, %v5015_v58 }
 0x9b9   :  { %v859_v60 = vpop.f32.mrf.mxu2  ;;  %v879_v61 = vpop.f32.mrf.mxu3 }
 0x9ba   :  { %v884_v62 = vrot.slane %v859_v60, 6  ;;  %v885_v0 = vrot.slane %v879_v61, 6 }
 0x9bc   :  { %v888_v1 = vadd.f32 %v884_v62, %v4866_v9  ;;  %v889_v2 = vadd.f32 %v885_v0, %v4871_v19 }
 0x9be   :  { %v3922_v3 = vmul.f32 -1.442695, %v888_v1  ;;  %v3923_v4 = vmul.f32 -1.442695, %v889_v2 }
 0x9c0   :  { %4111 = vpow2.f32 %v3922_v3 }
 0x9c1   :  { %4113 = vpow2.f32 %v3923_v4  ;;  %v200_v4 = vld [vmem:[#allocation2 + $0x70] sm:$0xff] }
 0x9c2   :  { %1271 = vmatpush.msra.mxu0 %v200_v4  ;;  %v5070_v4 = vld [vmem:[#allocation5 + $0x40] sm:$0xff] }
 0x9c6   :  { %v4112_v5 = vpop.eup %4111 }
 0x9c7   :  { %v4114_v6 = vpop.eup %4113  ;;  %v898_v8 = vadd.f32 1.0, %v4112_v5  ;;  %v201_v5 = vld [vmem:[#allocation2 + $0x78] sm:$0xff] }
 0x9c8   :  { %v899_v14 = vadd.f32 1.0, %v4114_v6  ;;  %v198_v6 = vld [vmem:[#allocation2 + $0x60] sm:$0xff]  ;;  %1294 = vmatpush.msra.mxu1 %v201_v5  ;;  %v5072_v5 = vld [vmem:[#allocation5 + $0x48] sm:$0xff] }
 0x9c9   :  { %4115 = vrcp.f32 %v898_v8  ;;  %v911_v33 = vand.u32 2147483648, %v898_v8  ;;  %v909_v20 = vand.u32 2147483647, %v898_v8  ;;  %vm905_vm14 = vweird.f32 %v898_v8  ;;  %1272 = vmatpush.msra.mxu0 %v198_v6 }
 0x9ca   :  { %4117 = vrcp.f32 %v899_v14  ;;  %v926_v39 = vand.u32 2147483648, %v899_v14  ;;  %v924_v23 = vand.u32 2147483647, %v899_v14  ;;  %vm920_vm1 = vweird.f32 %v899_v14 }
 0x9cb   :  { %4119 = vtanh.f32 %v889_v2  ;;  %v912_v27 = vor.u32 1.1754944e-38, %v911_v33  ;;  %vm910_vm2 = vcmp.eq.f32.partialorder %v909_v20, 8.507059e+37 }
 0x9cc   :  { %v927_v49 = vor.u32 1.1754944e-38, %v926_v39  ;;  %vm925_vm8 = vcmp.eq.f32.partialorder %v924_v23, 8.507059e+37 }
 0x9cf   :  { %v4116_v7 = vpop.eup %4115 }
 0x9d0   :  { %v4118_v18 = vpop.eup %4117  ;;  %v901_v21 = vmul.f32 %v4116_v7, %v898_v8  ;;  %vm906_vm11 = vweird.f32 %v4116_v7 }
 0x9d1   :  { %v916_v26 = vmul.f32 %v4118_v18, %v899_v14  ;;  %vm921_vm12 = vweird.f32 %v4118_v18  ;;  %vm907_vm15 = vmor %vm905_vm14, %vm906_vm11  ;;  %v4120_v32 = vpop.eup %4119  ;;  %v199_v14 = vld [vmem:[#allocation2 + $0x68] sm:$0xff] }
 0x9d2   :  { %v902_v29 = vsub.f32 1.0, %v901_v21  ;;  %vm922_vm0 = vmor %vm920_vm1, %vm921_vm12  ;;  %1295 = vmatpush.msra.mxu1 %v199_v14 }
 0x9d3   :  { %v917_v35 = vsub.f32 1.0, %v916_v26 }
 0x9d4   :  { %v903_v37 = vmul.f32 %v4116_v7, %v902_v29 }
 0x9d5   :  { %v918_v40 = vmul.f32 %v4118_v18, %v917_v35 }
 0x9d6   :  { %v904_v24 = vadd.f32 %v4116_v7, %v903_v37 }
 0x9d7   :  { %v919_v28 = vadd.f32 %v4118_v18, %v918_v40 }
 0x9d8   :  { %v908_v47 = vsel %vm907_vm15, %v4116_v7, %v904_v24 }
 0x9d9   :  { %v913_v51 = vsel %vm910_vm2, %v912_v27, %v908_v47  ;;  %v923_v34 = vsel %vm922_vm0, %v4118_v18, %v919_v28 }
 0x9da   :  { %v928_v52 = vsel %vm925_vm8, %v927_v49, %v923_v34  ;;  %v935_v53 = vmul.f32 %v933_v30, %v913_v51 }
 0x9db   :  { %v931_v36 = vsel %vm313_vm13, %v4120_v32, %v928_v52 }
 0x9dc   :  { %v936_v54 = vmul.f32 %v931_v36, %v913_v51 }
 0x9de   :  { %938 = vrot.lane.b32.xlu0 %v936_v54, %s4515_s4  ;;  %v1230_v54 = vrot.slane %v4957_v31, 2 }
 0xa50   :  { %v939_v59 = vpop.permute.xlu0 %938 }
 0xa51   :  { %v5026_v63 = vadd.f32 %v939_v59, %v935_v53  ;;  %v1241_v59 = vrot.slane %v4955_v11, 2 }
 0xa53   :  { %4121 = vtanh.f32 %v5026_v63  ;;  %v1041_v28 = vrot.slane %v5026_v63, 6  ;;  %v196_v63 = vld [vmem:[#allocation2 + $0x50] sm:$0xff] }
 0xa54   :  { %1273 = vmatpush.msra.mxu0 %v196_v63 }
 0xa59   :  { %v4122_v41 = vpop.eup %4121 }
 0xa5a   :  { %v5029_v43 = vmul.f32 %v4122_v41, %v931_v36  ;;  %v197_v41 = vld [vmem:[#allocation2 + $0x58] sm:$0xff] }
 0xa5b   :  { %1296 = vmatpush.msra.mxu1 %v197_v41 }
 0xa5c   :  { %v945_v10 = vrot.slane %v5029_v43, 2 }
 0xa5e   :  { %946 = vrot.lane.b32.xlu1 %v945_v10, %s4515_s4  ;;  %v194_v10 = vld [vmem:[#allocation2 + $0x40] sm:$0xff] }
 0xa5f   :  { %1274 = vmatpush.msra.mxu0 %v194_v10 }
 0xa66   :  { %1226 = vrot.lane.b32.xlu1 %v1225_v44, %s4514_s1  ;;  %v195_v44 = vld [vmem:[#allocation2 + $0x48] sm:$0xff] }
 0xa67   :  { %1297 = vmatpush.msra.mxu1 %v195_v44 }
 0xa6e   :  { %1237 = vrot.lane.b32.xlu1 %v1236_v22, %s4514_s1  ;;  %v192_v22 = vld [vmem:[#allocation2 + $0x30] sm:$0xff] }
 0xa6f   :  { %1275 = vmatpush.msra.mxu0 %v192_v22 }
 0xad0   :  { %v947_v45 = vpop.permute.xlu1 %946 }
 0xad1   :  { %3924 = vmatmul.msk.f32.vlgmr.msrb.gmra.mxu0 %vm256_vm6, %v947_v45  ;;  %3925 = vmatmul.msk.f32.vlgmr.msrb.gmra.mxu1 %vm256_vm6, %v947_v45  ;;  %v193_v45 = vld [vmem:[#allocation2 + $0x38] sm:$0xff] }
 0xad2   :  { %1298 = vmatpush.msra.mxu1 %v193_v45 }
 0xad8   :  { %v1227_v14 = vpop.permute.xlu1 %1226 }
 0xb4e   :  { %v967_v46 = vpop.f32.mrf.mxu0  ;;  %v987_v48 = vpop.f32.mrf.mxu1 }
 0xb4f   :  { %v992_v50 = vrot.slane %v967_v46, 4  ;;  %v993_v55 = vrot.slane %v987_v48, 4  ;;  %v190_v46 = vld [vmem:[#allocation2 + $0x20] sm:$0xff]  ;;  %v191_v48 = vld [vmem:[#allocation2 + $0x28] sm:$0xff] }
 0xb50   :  { %1276 = vmatpush.msra.mxu0 %v190_v46  ;;  %1299 = vmatpush.msra.mxu1 %v191_v48 }
 0xb51   :  { %v996_v56 = vadd.f32 %v992_v50, %v4866_v9  ;;  %v997_v60 = vadd.f32 %v993_v55, %v4871_v19  ;;  %v188_v50 = vld [vmem:[#allocation2 + $0x10] sm:$0xff]  ;;  %v189_v55 = vld [vmem:[#allocation2 + $0x18] sm:$0xff] }
 0xb52   :  { %1277 = vmatpush.msra.mxu0 %v188_v50  ;;  %1300 = vmatpush.msra.mxu1 %v189_v55 }
 0xb53   :  { %v3926_v61 = vmul.f32 -1.442695, %v996_v56  ;;  %v3927_v62 = vmul.f32 -1.442695, %v997_v60  ;;  %v186_v56 = vld [vmem:[#allocation2] sm:$0xff] }
 0xb54   :  { %1278 = vmatpush.msra.mxu0 %v186_v56 }
 0xb55   :  { %4123 = vpow2.f32 %v3926_v61  ;;  %v5052_v61 = vld [vmem:[#allocation5 + $0x70] sm:$0xff] }
 0xb56   :  { %4125 = vpow2.f32 %v3927_v62  ;;  %v5054_v62 = vld [vmem:[#allocation5 + $0x78] sm:$0xff]  ;;  %1317 = vmatpush.msra.mxu2 %v5052_v61  ;;  %1415 = vmatpush.msrb.mxu0 %v5052_v61 }
 0xb57   :  { %1337 = vmatpush.msrb.mxu3 %v5054_v62 }
 0xb5b   :  { %v4124_v0 = vpop.eup %4123 }
 0xb5c   :  { %v4126_v1 = vpop.eup %4125  ;;  %v1006_v2 = vadd.f32 1.0, %v4124_v0  ;;  %v5056_v0 = vld [vmem:[#allocation5 + $0x60] sm:$0xff] }
 0xb5d   :  { %v1007_v3 = vadd.f32 1.0, %v4126_v1  ;;  %v5060_v1 = vld [vmem:[#allocation5 + $0x68] sm:$0xff]  ;;  %1318 = vmatpush.msra.mxu2 %v5056_v0  ;;  %1416 = vmatpush.msrb.mxu0 %v5056_v0 }
 0xb5e   :  { %4127 = vrcp.f32 %v1006_v2  ;;  %v1019_v29 = vand.u32 2147483648, %v1006_v2  ;;  %v1017_v37 = vand.u32 2147483647, %v1006_v2  ;;  %vm1013_vm11 = vweird.f32 %v1006_v2  ;;  %1338 = vmatpush.msrb.mxu3 %v5060_v1 }
 0xb5f   :  { %4129 = vrcp.f32 %v1007_v3  ;;  %v1034_v20 = vand.u32 2147483648, %v1007_v3  ;;  %v1032_v40 = vand.u32 2147483647, %v1007_v3  ;;  %vm1028_vm14 = vweird.f32 %v1007_v3 }
 0xb60   :  { %4131 = vtanh.f32 %v997_v60  ;;  %v1020_v24 = vor.u32 1.1754944e-38, %v1019_v29  ;;  %vm1018_vm15 = vcmp.eq.f32.partialorder %v1017_v37, 8.507059e+37  ;;  %v187_v60 = vld [vmem:[#allocation2 + $0x8] sm:$0xff] }
 0xb61   :  { %v1035_v47 = vor.u32 1.1754944e-38, %v1034_v20  ;;  %vm1033_vm2 = vcmp.eq.f32.partialorder %v1032_v40, 8.507059e+37  ;;  %1301 = vmatpush.msra.mxu1 %v187_v60 }
 0xb63   :  { %1435 = vmatpush.msrb.mxu1 %v5054_v62 }
 0xb64   :  { %v4128_v8 = vpop.eup %4127 }
 0xb65   :  { %v4130_v7 = vpop.eup %4129  ;;  %v1009_v18 = vmul.f32 %v4128_v8, %v1006_v2  ;;  %vm1014_vm9 = vweird.f32 %v4128_v8  ;;  %v5062_v2 = vld [vmem:[#allocation5 + $0x50] sm:$0xff]  ;;  %1436 = vmatpush.msrb.mxu1 %v5060_v1 }
 0xb66   :  { %v1024_v21 = vmul.f32 %v4130_v7, %v1007_v3  ;;  %vm1029_vm10 = vweird.f32 %v4130_v7  ;;  %vm1015_vm12 = vmor %vm1013_vm11, %vm1014_vm9  ;;  %v4132_v49 = vpop.eup %4131  ;;  %v5064_v3 = vld [vmem:[#allocation5 + $0x58] sm:$0xff]  ;;  %1319 = vmatpush.msra.mxu2 %v5062_v2  ;;  %1417 = vmatpush.msrb.mxu0 %v5062_v2 }
 0xb67   :  { %v1010_v26 = vsub.f32 1.0, %v1009_v18  ;;  %vm1030_vm1 = vmor %vm1028_vm14, %vm1029_vm10  ;;  %1339 = vmatpush.msrb.mxu3 %v5064_v3  ;;  %1437 = vmatpush.msrb.mxu1 %v5064_v3 }
 0xb68   :  { %v1025_v33 = vsub.f32 1.0, %v1024_v21  ;;  %1320 = vmatpush.msra.mxu2 %v5070_v4  ;;  %1418 = vmatpush.msrb.mxu0 %v5070_v4  ;;  %v1229_v21 = vsel %vm224_vm3, %v4955_v11, %v1227_v14 }
 0xb69   :  { %v1011_v35 = vmul.f32 %v4128_v8, %v1010_v26  ;;  %1340 = vmatpush.msrb.mxu3 %v5072_v5  ;;  %1438 = vmatpush.msrb.mxu1 %v5072_v5 }
 0xb6a   :  { %v1026_v39 = vmul.f32 %v4130_v7, %v1025_v33 }
 0xb6b   :  { %v1012_v23 = vadd.f32 %v4128_v8, %v1011_v35 }
 0xb6c   :  { %v1027_v27 = vadd.f32 %v4130_v7, %v1026_v39  ;;  %v1238_v39 = vpop.permute.xlu1 %1237 }
 0xb6d   :  { %v1016_v30 = vsel %vm1015_vm12, %v4128_v8, %v1012_v23 }
 0xb6e   :  { %v1021_v32 = vsel %vm1018_vm15, %v1020_v24, %v1016_v30  ;;  %v1031_v51 = vsel %vm1030_vm1, %v4130_v7, %v1027_v27  ;;  %v5110_v30 = vld [vmem:[#allocation5 + $0x30] sm:$0xff] }
 0xb6f   :  { %v1036_v34 = vsel %vm1033_vm2, %v1035_v47, %v1031_v51  ;;  %v1043_v52 = vmul.f32 %v1041_v28, %v1021_v32  ;;  %v5112_v47 = vld [vmem:[#allocation5 + $0x38] sm:$0xff]  ;;  %1321 = vmatpush.msra.mxu2 %v5110_v30  ;;  %1419 = vmatpush.msrb.mxu0 %v5110_v30 }
 0xb70   :  { %v5044_v53 = vsel %vm313_vm13, %v4132_v49, %v1036_v34  ;;  %v5114_v49 = vld [vmem:[#allocation5 + $0x20] sm:$0xff]  ;;  %1341 = vmatpush.msrb.mxu3 %v5112_v47  ;;  %v5122_v51 = vld [vmem:[#allocation5 + $0x18] sm:$0xff]  ;;  %1439 = vmatpush.msrb.mxu1 %v5112_v47 }
 0xb71   :  { %v1044_v36 = vmul.f32 %v5044_v53, %v1021_v32  ;;  %v5120_v32 = vld [vmem:[#allocation5 + $0x10] sm:$0xff]  ;;  %1322 = vmatpush.msra.mxu2 %v5114_v49  ;;  %v5128_v34 = vld [vmem:[#allocation5] sm:$0xff]  ;;  %1420 = vmatpush.msrb.mxu0 %v5114_v49 }
 0xb73   :  { %1046 = vrot.lane.b32.xlu2 %v1044_v36, %s4515_s4  ;;  %1323 = vmatpush.msra.mxu2 %v5120_v32 }
 0xb74   :  { %1421 = vmatpush.msrb.mxu0 %v5120_v32 }
 0xb75   :  { %1324 = vmatpush.msra.mxu2 %v5128_v34 }
 0xb76   :  { %1422 = vmatpush.msrb.mxu0 %v5128_v34 }
 0xb7b   :  { %1231 = vrot.lane.b32.xlu2 %v1230_v54, %s4514_s1 }
 0xb83   :  { %1242 = vrot.lane.b32.xlu2 %v1241_v59, %s4514_s1 }
 0xbcd   :  { %v1047_v6 = vpop.permute.xlu2 %1046 }
 0xbce   :  { %v5084_v8 = vadd.f32 %v1047_v6, %v1043_v52  ;;  %v5130_v52 = vld [vmem:[#allocation5 + $0x8] sm:$0xff] }
 0xbd0   :  { %4133 = vtanh.f32 %v5084_v8 }
 0xbd5   :  { %v1232_v7 = vpop.permute.xlu2 %1231 }
 0xbd6   :  { %v4134_v18 = vpop.eup %4133  ;;  %v1234_v26 = vsel %vm224_vm3, %v4955_v11, %v1232_v7  ;;  %v1240_v11 = vsel %vm224_vm3, %v4957_v31, %v1238_v39 }
 0xbd7   :  { %v1246_v29 = vsel %vm242_vm4, %v1229_v21, %v1234_v26  ;;  %v5093_v33 = vmul.f32 %v4134_v18, %v5044_v53 }
 0xbd8   :  { %v1247_v35 = vsel %vm244_vm5, %v1246_v29, %v1229_v21 }
 0xbd9   :  { %v1248_v37 = vsel %vm246_vm7, %v1247_v35, %v1234_v26  ;;  %v1053_v20 = vrot.slane %v5093_v33, 4 }
 0xbda   :  { %3932 = vmatmul.msk.f32.vlgmr.msra.gmra.mxu0 %vm256_vm6, %v1248_v37  ;;  %3934 = vmatmul.msk.f32.vlgmr.msra.gmra.mxu1 %vm256_vm6, %v1248_v37 }
 0xbdb   :  { %1054 = vrot.lane.b32.xlu0 %v1053_v20, %s4515_s4  ;;  %1631 = vmatpush.msra.mxu0 %v5052_v61 }
 0xbdd   :  { %v1243_v40 = vpop.permute.xlu2 %1242  ;;  %1632 = vmatpush.msra.mxu0 %v5056_v0 }
 0xbde   :  { %v1245_v23 = vsel %vm224_vm3, %v4957_v31, %v1243_v40  ;;  %v5118_v31 = vld [vmem:[#allocation5 + $0x28] sm:$0xff] }
 0xbdf   :  { %v1249_v24 = vsel %vm242_vm4, %v1240_v11, %v1245_v23  ;;  %1342 = vmatpush.msrb.mxu3 %v5118_v31  ;;  %1440 = vmatpush.msrb.mxu1 %v5118_v31 }
 0xbe0   :  { %v1250_v27 = vsel %vm244_vm5, %v1249_v24, %v1240_v11  ;;  %1633 = vmatpush.msra.mxu0 %v5062_v2 }
 0xbe1   :  { %v1251_v28 = vsel %vm246_vm7, %v1250_v27, %v1245_v23  ;;  %1343 = vmatpush.msrb.mxu3 %v5122_v51  ;;  %1441 = vmatpush.msrb.mxu1 %v5122_v51 }
 0xbe2   :  { %3933 = vmatmul.msk.f32.gmra.mxu0 %vm256_vm6, %v1251_v28  ;;  %3935 = vmatmul.msk.f32.gmra.mxu1 %vm256_vm6, %v1251_v28  ;;  %v1149_v28 = vrot.slane %v5084_v8, 6 }
 0xbe3   :  { %1344 = vmatpush.msrb.mxu3 %v5130_v52  ;;  %1442 = vmatpush.msrb.mxu1 %v5130_v52 }
 0xbe4   :  { %1634 = vmatpush.msra.mxu0 %v5070_v4 }
 0xbe5   :  { %1651 = vmatpush.msra.mxu1 %v5054_v62 }
 0xbe6   :  { %1635 = vmatpush.msra.mxu0 %v5110_v30 }
 0xbe7   :  { %1652 = vmatpush.msra.mxu1 %v5060_v1 }
 0xbe8   :  { %1636 = vmatpush.msra.mxu0 %v5114_v49 }
 0xbe9   :  { %1653 = vmatpush.msra.mxu1 %v5064_v3 }
 0xbea   :  { %1637 = vmatpush.msra.mxu0 %v5120_v32 }
 0xbeb   :  { %1654 = vmatpush.msra.mxu1 %v5072_v5 }
 0xbec   :  { %1638 = vmatpush.msra.mxu0 %v5128_v34 }
 0xbed   :  { %1655 = vmatpush.msra.mxu1 %v5112_v47 }
 0xbef   :  { %1656 = vmatpush.msra.mxu1 %v5118_v31 }
 0xbf1   :  { %1657 = vmatpush.msra.mxu1 %v5122_v51 }
 0xbf3   :  { %1658 = vmatpush.msra.mxu1 %v5130_v52 }
 0xc4d   :  { %v1055_v53 = vpop.permute.xlu0 %1054 }
 0xc4e   :  { %3928 = vmatmul.msk.f32.vlgmr.msrb.gmra.mxu2 %vm256_vm6, %v1055_v53  ;;  %3929 = vmatmul.msk.f32.vlgmr.msra.gmra.mxu3 %vm256_vm6, %v1055_v53 }
 0xc4f   :  { %1523 = vmatpush.msrb.mxu2 %v5052_v61  ;;  %1543 = vmatpush.msra.mxu3 %v5054_v62 }
 0xc51   :  { %1524 = vmatpush.msrb.mxu2 %v5056_v0  ;;  %1544 = vmatpush.msra.mxu3 %v5060_v1 }
 0xc53   :  { %1525 = vmatpush.msrb.mxu2 %v5062_v2  ;;  %1545 = vmatpush.msra.mxu3 %v5064_v3 }
 0xc55   :  { %1526 = vmatpush.msrb.mxu2 %v5070_v4  ;;  %1546 = vmatpush.msra.mxu3 %v5072_v5 }
 0xc56   :  { %1325 = vmatmul.f32.vlgmr.msra.gmra.mxu2 %v4513_v13  ;;  %1345 = vmatmul.f32.vlgmr.msrb.gmra.mxu3 %v4513_v13  ;;  %v218_v13 = vld [vmem:[%s6215_s7] sm:$0x3] }
 0xc57   :  { %1527 = vmatpush.msrb.mxu2 %v5110_v30  ;;  %1547 = vmatpush.msra.mxu3 %v5112_v47  ;;  %v5199_v63 = vperm.slane %v218_v13, 0  ;;  %v5201_v41 = vperm.slane %v218_v13, 1  ;;  %v1280_v44 = vpop.f32.mrf.mxu0  ;;  %v1303_v22 = vpop.f32.mrf.mxu1 }
 0xc59   :  { %1528 = vmatpush.msrb.mxu2 %v5114_v49  ;;  %1548 = vmatpush.msra.mxu3 %v5118_v31  ;;  %v5205_v46 = vadd.f32 %v1280_v44, %v5199_v63  ;;  %v5208_v48 = vadd.f32 %v1303_v22, %v5201_v41 }
 0xc5b   :  { %1529 = vmatpush.msrb.mxu2 %v5120_v32  ;;  %1549 = vmatpush.msra.mxu3 %v5122_v51 }
 0xc5d   :  { %1530 = vmatpush.msrb.mxu2 %v5128_v34  ;;  %1550 = vmatpush.msra.mxu3 %v5130_v52 }
 0xc5f   :  { %1739 = vmatpush.msra.mxu2 %v5052_v61  ;;  %1759 = vmatpush.msrb.mxu3 %v5054_v62 }
 0xc61   :  { %1740 = vmatpush.msra.mxu2 %v5056_v0  ;;  %1760 = vmatpush.msrb.mxu3 %v5060_v1 }
 0xc63   :  { %1741 = vmatpush.msra.mxu2 %v5062_v2  ;;  %1761 = vmatpush.msrb.mxu3 %v5064_v3 }
 0xc65   :  { %1742 = vmatpush.msra.mxu2 %v5070_v4  ;;  %1762 = vmatpush.msrb.mxu3 %v5072_v5 }
 0xc67   :  { %1743 = vmatpush.msra.mxu2 %v5110_v30  ;;  %1763 = vmatpush.msrb.mxu3 %v5112_v47 }
 0xc69   :  { %1744 = vmatpush.msra.mxu2 %v5114_v49  ;;  %1764 = vmatpush.msrb.mxu3 %v5118_v31 }
 0xc6b   :  { %1745 = vmatpush.msra.mxu2 %v5120_v32  ;;  %1765 = vmatpush.msrb.mxu3 %v5122_v51 }
 0xc6d   :  { %1746 = vmatpush.msra.mxu2 %v5128_v34  ;;  %1766 = vmatpush.msrb.mxu3 %v5130_v52 }
 0xcd1   :  { %v1075_v36 = vpop.f32.mrf.mxu2  ;;  %v5197_v54 = vpop.f32.mrf.mxu3 }
 0xcd2   :  { %v1100_v59 = vrot.slane %v1075_v36, 2 }
 0xcd4   :  { %v1104_v10 = vadd.f32 %v1100_v59, %v4866_v9 }
 0xcd6   :  { %v3930_v45 = vmul.f32 -1.442695, %v1104_v10 }
 0xcd8   :  { %4135 = vpow2.f32 %v3930_v45 }
 0xcd9   :  { %v5210_v50 = vpop.f32.mrf.mxu2  ;;  %v5212_v55 = vpop.f32.mrf.mxu3 }
 0xcda   :  { %v1349_v56 = vadd.f32 %v5210_v50, %v5205_v46  ;;  %v1350_v9 = vadd.f32 %v5212_v55, %v5208_v48 }
 0xcdc   :  { %v3936_v60 = vmul.f32 -1.442695, %v1349_v56  ;;  %v3937_v6 = vmul.f32 -1.442695, %v1350_v9 }
 0xcde   :  { %v4136_v14 = vpop.eup %4135  ;;  %4137 = vpow2.f32 %v3936_v60 }
 0xcdf   :  { %v1114_v7 = vadd.f32 1.0, %v4136_v14  ;;  %4139 = vpow2.f32 %v3937_v6 }
 0xce1   :  { %4141 = vrcp.f32 %v1114_v7  ;;  %v1125_v39 = vand.u32 2147483647, %v1114_v7  ;;  %v1127_v40 = vand.u32 2147483648, %v1114_v7  ;;  %vm1121_vm8 = vweird.f32 %v1114_v7 }
 0xce3   :  { %vm1126_vm10 = vcmp.eq.f32.partialorder %v1125_v39, 8.507059e+37  ;;  %v1128_v59 = vor.u32 1.1754944e-38, %v1127_v40 }
 0xce4   :  { %v4138_v18 = vpop.eup %4137 }
 0xce5   :  { %v4140_v21 = vpop.eup %4139  ;;  %v1359_v26 = vadd.f32 1.0, %v4138_v18 }
 0xce6   :  { %v1360_v29 = vadd.f32 1.0, %v4140_v21 }
 0xce7   :  { %v4142_v35 = vpop.eup %4141  ;;  %4143 = vrcp.f32 %v1359_v26  ;;  %v1370_v10 = vand.u32 2147483647, %v1359_v26  ;;  %v1372_v44 = vand.u32 2147483648, %v1359_v26  ;;  %vm1366_vm14 = vweird.f32 %v1359_v26 }
 0xce8   :  { %4145 = vrcp.f32 %v1360_v29  ;;  %v1117_v37 = vmul.f32 %v4142_v35, %v1114_v7  ;;  %vm1122_vm0 = vweird.f32 %v4142_v35  ;;  %v1387_v60 = vand.u32 2147483648, %v1360_v29 }
 0xce9   :  { %4147 = vtanh.f32 %v1350_v9  ;;  %vm1123_vm9 = vmor %vm1121_vm8, %vm1122_vm0  ;;  %v1385_v8 = vand.u32 2147483647, %v1360_v29  ;;  %v1373_v7 = vor.u32 1.1754944e-38, %v1372_v44  ;;  %vm1381_vm1 = vweird.f32 %v1360_v29 }
 0xcea   :  { %v1118_v20 = vsub.f32 1.0, %v1117_v37  ;;  %vm1371_vm2 = vcmp.eq.f32.partialorder %v1370_v10, 8.507059e+37 }
 0xceb   :  { %vm1386_vm8 = vcmp.eq.f32.partialorder %v1385_v8, 8.507059e+37 }
 0xcec   :  { %v1119_v23 = vmul.f32 %v4142_v35, %v1118_v20 }
 0xced   :  { %v4144_v11 = vpop.eup %4143 }
 0xcee   :  { %v4146_v24 = vpop.eup %4145  ;;  %v1362_v27 = vmul.f32 %v4144_v11, %v1359_v26  ;;  %v1120_v13 = vadd.f32 %v4142_v35, %v1119_v23  ;;  %vm1367_vm11 = vweird.f32 %v4144_v11 }
 0xcef   :  { %v1377_v53 = vmul.f32 %v4146_v24, %v1360_v29  ;;  %vm1382_vm12 = vweird.f32 %v4146_v24  ;;  %vm1368_vm15 = vmor %vm1366_vm14, %vm1367_vm11  ;;  %v4148_v37 = vpop.eup %4147 }
 0xcf0   :  { %v1363_v36 = vsub.f32 1.0, %v1362_v27  ;;  %v1124_v45 = vsel %vm1123_vm9, %v4142_v35, %v1120_v13  ;;  %vm1383_vm0 = vmor %vm1381_vm1, %vm1382_vm12  ;;  %v1388_v35 = vor.u32 1.1754944e-38, %v1387_v60 }
 0xcf1   :  { %v1378_v22 = vsub.f32 1.0, %v1377_v53  ;;  %v5219_v6 = vsel %vm1126_vm10, %v1128_v59, %v1124_v45  ;;  %v5258_v59 = vpop.f32.mrf.mxu1 }
 0xcf2   :  { %v1364_v56 = vmul.f32 %v4144_v11, %v1363_v36  ;;  %v5222_v18 = vmul.f32 %v1149_v28, %v5219_v6  ;;  %v5256_v36 = vpop.f32.mrf.mxu0 }
 0xcf3   :  { %v1379_v14 = vmul.f32 %v4146_v24, %v1378_v22 }
 0xcf4   :  { %v1365_v9 = vadd.f32 %v4144_v11, %v1364_v56 }
 0xcf5   :  { %v1380_v21 = vadd.f32 %v4146_v24, %v1379_v14 }
 0xcf6   :  { %v1369_v20 = vsel %vm1368_vm15, %v4144_v11, %v1365_v9 }
 0xcf7   :  { %v1374_v39 = vsel %vm1371_vm2, %v1373_v7, %v1369_v20  ;;  %v1384_v40 = vsel %vm1383_vm0, %v4146_v24, %v1380_v21 }
 0xcf8   :  { %v1389_v23 = vsel %vm1386_vm8, %v1388_v35, %v1384_v40  ;;  %v1393_v26 = vmul.f32 0.0, %v1374_v39 }
 0xcf9   :  { %v1392_v27 = vsel %vm313_vm13, %v4148_v37, %v1389_v23 }
 0xcfa   :  { %v1394_v28 = vmul.f32 %v1392_v27, %v1374_v39 }
 0xcfc   :  { %1396 = vrot.lane.b32.xlu0 %v1394_v28, %s4515_s4 }
 0xd6e   :  { %v1397_v53 = vpop.permute.xlu0 %1396 }
 0xd6f   :  { %v5227_v13 = vadd.f32 %v1397_v53, %v1393_v26 }
 0xd71   :  { %4149 = vtanh.f32 %v5227_v13 }
 0xd77   :  { %v4150_v29 = vpop.eup %4149 }
 0xd78   :  { %v5230_v11 = vmul.f32 %v4150_v29, %v1392_v27 }
 0xd7a   :  { %1403 = vrot.lane.b32.xlu0 %v5230_v11, %s4515_s4 }
 0xdec   :  { %v5234_v24 = vpop.permute.xlu0 %1403 }
 0xded   :  { %3938 = vmatmul.msk.f32.vlgmr.msrb.gmra.mxu0 %vm256_vm6, %v5234_v24  ;;  %3939 = vmatmul.msk.f32.vlgmr.msrb.gmra.mxu1 %vm256_vm6, %v5234_v24 }
 0xdee   :  { %1840 = vmatpush.msrb.mxu0 %v5052_v61  ;;  %1860 = vmatpush.msrb.mxu1 %v5054_v62 }
 0xdf0   :  { %1841 = vmatpush.msrb.mxu0 %v5056_v0  ;;  %1861 = vmatpush.msrb.mxu1 %v5060_v1 }
 0xdf2   :  { %1842 = vmatpush.msrb.mxu0 %v5062_v2  ;;  %1862 = vmatpush.msrb.mxu1 %v5064_v3 }
 0xdf4   :  { %1843 = vmatpush.msrb.mxu0 %v5070_v4  ;;  %1863 = vmatpush.msrb.mxu1 %v5072_v5 }
 0xdf6   :  { %1844 = vmatpush.msrb.mxu0 %v5110_v30  ;;  %1864 = vmatpush.msrb.mxu1 %v5112_v47 }
 0xdf8   :  { %1845 = vmatpush.msrb.mxu0 %v5114_v49  ;;  %1865 = vmatpush.msrb.mxu1 %v5118_v31 }
 0xdfa   :  { %1846 = vmatpush.msrb.mxu0 %v5120_v32  ;;  %1866 = vmatpush.msrb.mxu1 %v5122_v51 }
 0xdfc   :  { %1847 = vmatpush.msrb.mxu0 %v5128_v34  ;;  %1867 = vmatpush.msrb.mxu1 %v5130_v52 }
 0xe6a   :  { %v1424_v10 = vpop.f32.mrf.mxu0  ;;  %v1444_v44 = vpop.f32.mrf.mxu1 }
 0xe6b   :  { %v1449_v22 = vrot.slane %v1424_v10, 6  ;;  %v1450_v45 = vrot.slane %v1444_v44, 6 }
 0xe6d   :  { %v1453_v56 = vadd.f32 %v1449_v22, %v5205_v46  ;;  %v1454_v60 = vadd.f32 %v1450_v45, %v5208_v48 }
 0xe6f   :  { %v3940_v14 = vmul.f32 -1.442695, %v1453_v56  ;;  %v3941_v8 = vmul.f32 -1.442695, %v1454_v60 }
 0xe71   :  { %4151 = vpow2.f32 %v3940_v14  ;;  %v1498_v14 = vrot.slane %v5227_v13, 6 }
 0xe72   :  { %4153 = vpow2.f32 %v3941_v8 }
 0xe77   :  { %v4152_v9 = vpop.eup %4151 }
 0xe78   :  { %v4154_v7 = vpop.eup %4153  ;;  %v1463_v21 = vadd.f32 1.0, %v4152_v9 }
 0xe79   :  { %v1464_v37 = vadd.f32 1.0, %v4154_v7 }
 0xe7a   :  { %4155 = vrcp.f32 %v1463_v21  ;;  %v1476_v27 = vand.u32 2147483648, %v1463_v21  ;;  %v1474_v53 = vand.u32 2147483647, %v1463_v21  ;;  %vm1470_vm11 = vweird.f32 %v1463_v21 }
 0xe7b   :  { %4157 = vrcp.f32 %v1464_v37  ;;  %v1491_v29 = vand.u32 2147483648, %v1464_v37  ;;  %v1489_v44 = vand.u32 2147483647, %v1464_v37  ;;  %vm1485_vm14 = vweird.f32 %v1464_v37 }
 0xe7c   :  { %4159 = vtanh.f32 %v1454_v60  ;;  %v1477_v45 = vor.u32 1.1754944e-38, %v1476_v27  ;;  %vm1475_vm15 = vcmp.eq.f32.partialorder %v1474_v53, 8.507059e+37 }
 0xe7d   :  { %v1492_v60 = vor.u32 1.1754944e-38, %v1491_v29  ;;  %vm1490_vm2 = vcmp.eq.f32.partialorder %v1489_v44, 8.507059e+37 }
 0xe80   :  { %v4156_v20 = vpop.eup %4155 }
 0xe81   :  { %v4158_v35 = vpop.eup %4157  ;;  %v1466_v39 = vmul.f32 %v4156_v20, %v1463_v21  ;;  %vm1471_vm9 = vweird.f32 %v4156_v20 }
 0xe82   :  { %v1481_v40 = vmul.f32 %v4158_v35, %v1464_v37  ;;  %vm1486_vm10 = vweird.f32 %v4158_v35  ;;  %vm1472_vm12 = vmor %vm1470_vm11, %vm1471_vm9  ;;  %v4160_v9 = vpop.eup %4159 }
 0xe83   :  { %v1467_v23 = vsub.f32 1.0, %v1466_v39  ;;  %vm1487_vm1 = vmor %vm1485_vm14, %vm1486_vm10 }
 0xe84   :  { %v1482_v28 = vsub.f32 1.0, %v1481_v40 }
 0xe85   :  { %v1468_v26 = vmul.f32 %v4156_v20, %v1467_v23 }
 0xe86   :  { %v1483_v10 = vmul.f32 %v4158_v35, %v1482_v28 }
 0xe87   :  { %v1469_v22 = vadd.f32 %v4156_v20, %v1468_v26 }
 0xe88   :  { %v1484_v56 = vadd.f32 %v4158_v35, %v1483_v10 }
 0xe89   :  { %v1473_v8 = vsel %vm1472_vm12, %v4156_v20, %v1469_v22 }
 0xe8a   :  { %v1478_v7 = vsel %vm1475_vm15, %v1477_v45, %v1473_v8  ;;  %v1488_v39 = vsel %vm1487_vm1, %v4158_v35, %v1484_v56 }
 0xe8b   :  { %v1493_v40 = vsel %vm1490_vm2, %v1492_v60, %v1488_v39  ;;  %v1500_v23 = vmul.f32 %v1498_v14, %v1478_v7 }
 0xe8c   :  { %v1496_v28 = vsel %vm313_vm13, %v4160_v9, %v1493_v40 }
 0xe8d   :  { %v1501_v21 = vmul.f32 %v1496_v28, %v1478_v7 }
 0xe8f   :  { %1503 = vrot.lane.b32.xlu1 %v1501_v21, %s4515_s4 }
 0xf01   :  { %v1504_v27 = vpop.permute.xlu1 %1503 }
 0xf02   :  { %v5266_v37 = vadd.f32 %v1504_v27, %v1500_v23 }
 0xf04   :  { %4161 = vtanh.f32 %v5266_v37 }
 0xf0a   :  { %v4162_v13 = vpop.eup %4161 }
 0xf0b   :  { %v5269_v20 = vmul.f32 %v4162_v13, %v1496_v28 }
 0xf0d   :  { %v1510_v26 = vrot.slane %v5269_v20, 2 }
 0xf0f   :  { %1511 = vrot.lane.b32.xlu2 %v1510_v26, %s4515_s4 }
 0xf69   :  { %v1512_v35 = vpop.permute.xlu2 %1511 }
 0xf6a   :  { %3942 = vmatmul.msk.f32.vlgmr.msrb.gmra.mxu2 %vm256_vm6, %v1512_v35  ;;  %3943 = vmatmul.msk.f32.vlgmr.msra.gmra.mxu3 %vm256_vm6, %v1512_v35 }
 0xf6b   :  { %1948 = vmatpush.msrb.mxu2 %v5052_v61  ;;  %1968 = vmatpush.msra.mxu3 %v5054_v62 }
 0xf6d   :  { %1949 = vmatpush.msrb.mxu2 %v5056_v0  ;;  %1969 = vmatpush.msra.mxu3 %v5060_v1 }
 0xf6f   :  { %1950 = vmatpush.msrb.mxu2 %v5062_v2  ;;  %1970 = vmatpush.msra.mxu3 %v5064_v3 }
 0xf71   :  { %1951 = vmatpush.msrb.mxu2 %v5070_v4  ;;  %1971 = vmatpush.msra.mxu3 %v5072_v5 }
 0xf73   :  { %1952 = vmatpush.msrb.mxu2 %v5110_v30  ;;  %1972 = vmatpush.msra.mxu3 %v5112_v47 }
 0xf75   :  { %1953 = vmatpush.msrb.mxu2 %v5114_v49  ;;  %1973 = vmatpush.msra.mxu3 %v5118_v31 }
 0xf77   :  { %1954 = vmatpush.msrb.mxu2 %v5120_v32  ;;  %1974 = vmatpush.msra.mxu3 %v5122_v51 }
 0xf79   :  { %1955 = vmatpush.msrb.mxu2 %v5128_v34  ;;  %1975 = vmatpush.msra.mxu3 %v5130_v52 }
 0xfed   :  { %v1532_v53 = vpop.f32.mrf.mxu2  ;;  %v1552_v29 = vpop.f32.mrf.mxu3 }
 0xfee   :  { %v1557_v10 = vrot.slane %v1532_v53, 4  ;;  %v1558_v44 = vrot.slane %v1552_v29, 4 }
 0xff0   :  { %v1561_v22 = vadd.f32 %v1557_v10, %v5205_v46  ;;  %v1562_v45 = vadd.f32 %v1558_v44, %v5208_v48 }
 0xff2   :  { %v3944_v56 = vmul.f32 -1.442695, %v1561_v22  ;;  %v3945_v14 = vmul.f32 -1.442695, %v1562_v45 }
 0xff4   :  { %4163 = vpow2.f32 %v3944_v56 }
 0xff5   :  { %4165 = vpow2.f32 %v3945_v14  ;;  %v1606_v14 = vrot.slane %v5266_v37, 6 }
 0xffa   :  { %v4164_v8 = vpop.eup %4163 }
 0xffb   :  { %v4166_v60 = vpop.eup %4165  ;;  %v1571_v9 = vadd.f32 1.0, %v4164_v8 }
 0xffc   :  { %v1572_v7 = vadd.f32 1.0, %v4166_v60 }
 0xffd   :  { %4167 = vrcp.f32 %v1571_v9  ;;  %v1584_v27 = vand.u32 2147483648, %v1571_v9  ;;  %v1582_v35 = vand.u32 2147483647, %v1571_v9  ;;  %vm1578_vm9 = vweird.f32 %v1571_v9 }
 0xffe   :  { %4169 = vrcp.f32 %v1572_v7  ;;  %v1599_v53 = vand.u32 2147483648, %v1572_v7  ;;  %v1597_v10 = vand.u32 2147483647, %v1572_v7  ;;  %vm1593_vm11 = vweird.f32 %v1572_v7 }
 0xfff   :  { %4171 = vtanh.f32 %v1562_v45  ;;  %v1585_v22 = vor.u32 1.1754944e-38, %v1584_v27  ;;  %vm1583_vm12 = vcmp.eq.f32.partialorder %v1582_v35, 8.507059e+37 }
0x1000   :  { %v1600_v45 = vor.u32 1.1754944e-38, %v1599_v53  ;;  %vm1598_vm15 = vcmp.eq.f32.partialorder %v1597_v10, 8.507059e+37 }
0x1003   :  { %v4168_v39 = vpop.eup %4167 }
0x1004   :  { %v4170_v40 = vpop.eup %4169  ;;  %v1574_v23 = vmul.f32 %v4168_v39, %v1571_v9  ;;  %vm1579_vm0 = vweird.f32 %v4168_v39 }
0x1005   :  { %v1589_v28 = vmul.f32 %v4170_v40, %v1572_v7  ;;  %vm1594_vm8 = vweird.f32 %v4170_v40  ;;  %vm1580_vm10 = vmor %vm1578_vm9, %vm1579_vm0  ;;  %v4172_v60 = vpop.eup %4171 }
0x1006   :  { %v1575_v21 = vsub.f32 1.0, %v1574_v23  ;;  %vm1595_vm14 = vmor %vm1593_vm11, %vm1594_vm8 }
0x1007   :  { %v1590_v13 = vsub.f32 1.0, %v1589_v28 }
0x1008   :  { %v1576_v26 = vmul.f32 %v4168_v39, %v1575_v21 }
0x1009   :  { %v1591_v29 = vmul.f32 %v4170_v40, %v1590_v13 }
0x100a   :  { %v1577_v44 = vadd.f32 %v4168_v39, %v1576_v26 }
0x100b   :  { %v1592_v56 = vadd.f32 %v4170_v40, %v1591_v29 }
0x100c   :  { %v1581_v8 = vsel %vm1580_vm10, %v4168_v39, %v1577_v44 }
0x100d   :  { %v1586_v23 = vsel %vm1583_vm12, %v1585_v22, %v1581_v8  ;;  %v1596_v28 = vsel %vm1595_vm14, %v4170_v40, %v1592_v56 }
0x100e   :  { %v1601_v21 = vsel %vm1598_vm15, %v1600_v45, %v1596_v28  ;;  %v1608_v13 = vmul.f32 %v1606_v14, %v1586_v23 }
0x100f   :  { %v1604_v26 = vsel %vm313_vm13, %v4172_v60, %v1601_v21 }
0x1010   :  { %v1609_v9 = vmul.f32 %v1604_v26, %v1586_v23 }
0x1012   :  { %1611 = vrot.lane.b32.xlu0 %v1609_v9, %s4515_s4 }
0x1084   :  { %v1612_v27 = vpop.permute.xlu0 %1611 }
0x1085   :  { %v5297_v7 = vadd.f32 %v1612_v27, %v1608_v13 }
0x1087   :  { %4173 = vtanh.f32 %v5297_v7  ;;  %v1714_v60 = vrot.slane %v5297_v7, 6 }
0x108d   :  { %v4174_v37 = vpop.eup %4173 }
0x108e   :  { %v5300_v39 = vmul.f32 %v4174_v37, %v1604_v26 }
0x1090   :  { %v1618_v35 = vrot.slane %v5300_v39, 4 }
0x1092   :  { %1619 = vrot.lane.b32.xlu1 %v1618_v35, %s4515_s4 }
0x1104   :  { %v1620_v40 = vpop.permute.xlu1 %1619 }
0x1105   :  { %3946 = vmatmul.msk.f32.vlgmr.msra.gmra.mxu0 %vm256_vm6, %v1620_v40  ;;  %3947 = vmatmul.msk.f32.vlgmr.msra.gmra.mxu1 %vm256_vm6, %v1620_v40 }
0x1106   :  { %2056 = vmatpush.msra.mxu0 %v5052_v61  ;;  %2076 = vmatpush.msra.mxu1 %v5054_v62 }
0x1108   :  { %2057 = vmatpush.msra.mxu0 %v5056_v0  ;;  %2077 = vmatpush.msra.mxu1 %v5060_v1 }
0x110a   :  { %2058 = vmatpush.msra.mxu0 %v5062_v2  ;;  %2078 = vmatpush.msra.mxu1 %v5064_v3 }
0x110c   :  { %2059 = vmatpush.msra.mxu0 %v5070_v4  ;;  %2079 = vmatpush.msra.mxu1 %v5072_v5 }
0x110e   :  { %2060 = vmatpush.msra.mxu0 %v5110_v30  ;;  %2080 = vmatpush.msra.mxu1 %v5112_v47 }
0x1110   :  { %2061 = vmatpush.msra.mxu0 %v5114_v49  ;;  %2081 = vmatpush.msra.mxu1 %v5118_v31 }
0x1112   :  { %2062 = vmatpush.msra.mxu0 %v5120_v32  ;;  %2082 = vmatpush.msra.mxu1 %v5122_v51 }
0x1114   :  { %2063 = vmatpush.msra.mxu0 %v5128_v34  ;;  %2083 = vmatpush.msra.mxu1 %v5130_v52 }
0x1182   :  { %v1640_v61 = vpop.f32.mrf.mxu0  ;;  %v1660_v62 = vpop.f32.mrf.mxu1 }
0x1183   :  { %v1665_v0 = vrot.slane %v1640_v61, 2  ;;  %v1666_v1 = vrot.slane %v1660_v62, 2 }
0x1185   :  { %v1669_v2 = vadd.f32 %v1665_v0, %v5205_v46  ;;  %v1670_v3 = vadd.f32 %v1666_v1, %v5208_v48 }
0x1187   :  { %v3948_v4 = vmul.f32 -1.442695, %v1669_v2  ;;  %v3949_v5 = vmul.f32 -1.442695, %v1670_v3  ;;  %v5340_v2 = vadd.f32 %v5256_v36, %v5199_v63 }
0x1189   :  { %4175 = vpow2.f32 %v3948_v4 }
0x118a   :  { %4177 = vpow2.f32 %v3949_v5 }
0x118f   :  { %v4176_v30 = vpop.eup %4175 }
0x1190   :  { %v4178_v47 = vpop.eup %4177  ;;  %v1679_v49 = vadd.f32 1.0, %v4176_v30 }
0x1191   :  { %v1680_v31 = vadd.f32 1.0, %v4178_v47 }
0x1192   :  { %4179 = vrcp.f32 %v1679_v49  ;;  %v1692_v29 = vand.u32 2147483648, %v1679_v49  ;;  %v1690_v48 = vand.u32 2147483647, %v1679_v49  ;;  %vm1686_vm0 = vweird.f32 %v1679_v49 }
0x1193   :  { %4181 = vrcp.f32 %v1680_v31  ;;  %v1707_v44 = vand.u32 2147483648, %v1680_v31  ;;  %v1705_v56 = vand.u32 2147483647, %v1680_v31  ;;  %vm1701_vm9 = vweird.f32 %v1680_v31 }
0x1194   :  { %4183 = vtanh.f32 %v1670_v3  ;;  %v1693_v8 = vor.u32 1.1754944e-38, %v1692_v29  ;;  %vm1691_vm10 = vcmp.eq.f32.partialorder %v1690_v48, 8.507059e+37  ;;  %v5344_v3 = vadd.f32 %v5258_v59, %v5201_v41 }
0x1195   :  { %v1708_v28 = vor.u32 1.1754944e-38, %v1707_v44  ;;  %vm1706_vm12 = vcmp.eq.f32.partialorder %v1705_v56, 8.507059e+37 }
0x1198   :  { %v4180_v32 = vpop.eup %4179 }
0x1199   :  { %v4182_v51 = vpop.eup %4181  ;;  %v1682_v34 = vmul.f32 %v4180_v32, %v1679_v49  ;;  %vm1687_vm1 = vweird.f32 %v4180_v32 }
0x119a   :  { %v1697_v52 = vmul.f32 %v4182_v51, %v1680_v31  ;;  %vm1702_vm2 = vweird.f32 %v4182_v51  ;;  %vm1688_vm8 = vmor %vm1686_vm0, %vm1687_vm1  ;;  %v4184_v21 = vpop.eup %4183 }
0x119b   :  { %v1683_v53 = vsub.f32 1.0, %v1682_v34  ;;  %vm1703_vm11 = vmor %vm1701_vm9, %vm1702_vm2 }
0x119c   :  { %v1698_v46 = vsub.f32 1.0, %v1697_v52 }
0x119d   :  { %v1684_v10 = vmul.f32 %v4180_v32, %v1683_v53 }
0x119e   :  { %v1699_v22 = vmul.f32 %v4182_v51, %v1698_v46 }
0x119f   :  { %v1685_v14 = vadd.f32 %v4180_v32, %v1684_v10 }
0x11a0   :  { %v1700_v45 = vadd.f32 %v4182_v51, %v1699_v22 }
0x11a1   :  { %v1689_v23 = vsel %vm1688_vm8, %v4180_v32, %v1685_v14 }
0x11a2   :  { %v1694_v13 = vsel %vm1691_vm10, %v1693_v8, %v1689_v23  ;;  %v1704_v26 = vsel %vm1703_vm11, %v4182_v51, %v1700_v45 }
0x11a3   :  { %v1709_v9 = vsel %vm1706_vm12, %v1708_v28, %v1704_v26  ;;  %v1716_v27 = vmul.f32 %v1714_v60, %v1694_v13 }
0x11a4   :  { %v1712_v37 = vsel %vm313_vm13, %v4184_v21, %v1709_v9 }
0x11a5   :  { %v1717_v35 = vmul.f32 %v1712_v37, %v1694_v13 }
0x11a7   :  { %1719 = vrot.lane.b32.xlu2 %v1717_v35, %s4515_s4 }
0x1201   :  { %v1720_v40 = vpop.permute.xlu2 %1719 }
0x1202   :  { %v1722_v61 = vadd.f32 %v1720_v40, %v1716_v27 }
0x1204   :  { %4185 = vtanh.f32 %v1722_v61  ;;  %v1816_v28 = vrot.slane %v1722_v61, 6 }
0x120a   :  { %v4186_v7 = vpop.eup %4185 }
0x120b   :  { %v5328_v62 = vmul.f32 %v4186_v7, %v1712_v37 }
0x120d   :  { %v1726_v0 = vrot.slane %v5328_v62, 6 }
0x120f   :  { %1727 = vrot.lane.b32.xlu0 %v1726_v0, %s4515_s4 }
0x1281   :  { %v5332_v1 = vpop.permute.xlu0 %1727 }
0x1282   :  { %3950 = vmatmul.msk.f32.vlgmr.msra.gmra.mxu2 %vm256_vm6, %v5332_v1  ;;  %3951 = vmatmul.msk.f32.vlgmr.msrb.gmra.mxu3 %vm256_vm6, %v5332_v1 }
0x1305   :  { %v1748_v4 = vpop.f32.mrf.mxu2  ;;  %v1768_v5 = vpop.f32.mrf.mxu3 }
0x1306   :  { %v1771_v30 = vadd.f32 %v1748_v4, %v5340_v2  ;;  %v1772_v47 = vadd.f32 %v1768_v5, %v5344_v3 }
0x1308   :  { %v3952_v49 = vmul.f32 -1.442695, %v1771_v30  ;;  %v3953_v31 = vmul.f32 -1.442695, %v1772_v47 }
0x130a   :  { %4187 = vpow2.f32 %v3952_v49 }
0x130b   :  { %4189 = vpow2.f32 %v3953_v31 }
0x1310   :  { %v4188_v32 = vpop.eup %4187 }
0x1311   :  { %v4190_v51 = vpop.eup %4189  ;;  %v1781_v34 = vadd.f32 1.0, %v4188_v32 }
0x1312   :  { %v1782_v52 = vadd.f32 1.0, %v4190_v51 }
0x1313   :  { %4191 = vrcp.f32 %v1781_v34  ;;  %v1794_v48 = vand.u32 2147483648, %v1781_v34  ;;  %v1792_v22 = vand.u32 2147483647, %v1781_v34  ;;  %vm1788_vm1 = vweird.f32 %v1781_v34 }
0x1314   :  { %4193 = vrcp.f32 %v1782_v52  ;;  %v1809_v56 = vand.u32 2147483648, %v1782_v52  ;;  %v1807_v8 = vand.u32 2147483647, %v1782_v52  ;;  %vm1803_vm0 = vweird.f32 %v1782_v52 }
0x1315   :  { %4195 = vtanh.f32 %v1772_v47  ;;  %v1795_v60 = vor.u32 1.1754944e-38, %v1794_v48  ;;  %vm1793_vm8 = vcmp.eq.f32.partialorder %v1792_v22, 8.507059e+37 }
0x1316   :  { %v1810_v13 = vor.u32 1.1754944e-38, %v1809_v56  ;;  %vm1808_vm10 = vcmp.eq.f32.partialorder %v1807_v8, 8.507059e+37 }
0x1319   :  { %v4192_v36 = vpop.eup %4191 }
0x131a   :  { %v4194_v53 = vpop.eup %4193  ;;  %v1784_v59 = vmul.f32 %v4192_v36, %v1781_v34  ;;  %vm1789_vm14 = vweird.f32 %v4192_v36 }
0x131b   :  { %v1799_v29 = vmul.f32 %v4194_v53, %v1782_v52  ;;  %vm1804_vm15 = vweird.f32 %v4194_v53  ;;  %vm1790_vm2 = vmor %vm1788_vm1, %vm1789_vm14  ;;  %v4196_v26 = vpop.eup %4195 }
0x131c   :  { %v1785_v46 = vsub.f32 1.0, %v1784_v59  ;;  %vm1805_vm9 = vmor %vm1803_vm0, %vm1804_vm15 }
0x131d   :  { %v1800_v10 = vsub.f32 1.0, %v1799_v29 }
0x131e   :  { %v1786_v44 = vmul.f32 %v4192_v36, %v1785_v46 }
0x131f   :  { %v1801_v14 = vmul.f32 %v4194_v53, %v1800_v10 }
0x1320   :  { %v1787_v45 = vadd.f32 %v4192_v36, %v1786_v44 }
0x1321   :  { %v1802_v23 = vadd.f32 %v4194_v53, %v1801_v14 }
0x1322   :  { %v1791_v21 = vsel %vm1790_vm2, %v4192_v36, %v1787_v45 }
0x1323   :  { %v1796_v9 = vsel %vm1793_vm8, %v1795_v60, %v1791_v21  ;;  %v1806_v27 = vsel %vm1805_vm9, %v4194_v53, %v1802_v23 }
0x1324   :  { %v1811_v37 = vsel %vm1808_vm10, %v1810_v13, %v1806_v27  ;;  %v1818_v35 = vmul.f32 %v1816_v28, %v1796_v9 }
0x1325   :  { %v1814_v40 = vsel %vm313_vm13, %v4196_v26, %v1811_v37 }
0x1326   :  { %v1819_v7 = vmul.f32 %v1814_v40, %v1796_v9 }
0x1328   :  { %1821 = vrot.lane.b32.xlu1 %v1819_v7, %s4515_s4 }
0x139a   :  { %v1822_v0 = vpop.permute.xlu1 %1821 }
0x139b   :  { %v1824_v4 = vadd.f32 %v1822_v0, %v1818_v35 }
0x139d   :  { %4197 = vtanh.f32 %v1824_v4  ;;  %v1923_v27 = vrot.slane %v1824_v4, 6 }
0x13a3   :  { %v4198_v61 = vpop.eup %4197 }
0x13a4   :  { %v5351_v5 = vmul.f32 %v4198_v61, %v1814_v40 }
0x13a6   :  { %1828 = vrot.lane.b32.xlu2 %v5351_v5, %s4515_s4 }
0x1400   :  { %v5355_v30 = vpop.permute.xlu2 %1828 }
0x1401   :  { %3954 = vmatmul.msk.f32.vlgmr.msrb.gmra.mxu0 %vm256_vm6, %v5355_v30  ;;  %3955 = vmatmul.msk.f32.vlgmr.msrb.gmra.mxu1 %vm256_vm6, %v5355_v30 }
0x147e   :  { %v1849_v47 = vpop.f32.mrf.mxu0  ;;  %v1869_v49 = vpop.f32.mrf.mxu1 }
0x147f   :  { %v1874_v31 = vrot.slane %v1849_v47, 6  ;;  %v1875_v32 = vrot.slane %v1869_v49, 6 }
0x1481   :  { %v1878_v51 = vadd.f32 %v1874_v31, %v5340_v2  ;;  %v1879_v34 = vadd.f32 %v1875_v32, %v5344_v3 }
0x1483   :  { %v3956_v52 = vmul.f32 -1.442695, %v1878_v51  ;;  %v3957_v36 = vmul.f32 -1.442695, %v1879_v34 }
0x1485   :  { %4199 = vpow2.f32 %v3956_v52 }
0x1486   :  { %4201 = vpow2.f32 %v3957_v36 }
0x148b   :  { %v4200_v53 = vpop.eup %4199 }
0x148c   :  { %v4202_v59 = vpop.eup %4201  ;;  %v1888_v29 = vadd.f32 1.0, %v4200_v53  ;;  %v1101_v53 = vrot.slane %v5197_v54, 2 }
0x148d   :  { %v1889_v46 = vadd.f32 1.0, %v4202_v59 }
0x148e   :  { %4203 = vrcp.f32 %v1888_v29  ;;  %v1901_v14 = vand.u32 2147483648, %v1888_v29  ;;  %v1899_v60 = vand.u32 2147483647, %v1888_v29  ;;  %vm1895_vm14 = vweird.f32 %v1888_v29 }
0x148f   :  { %4205 = vrcp.f32 %v1889_v46  ;;  %v1916_v23 = vand.u32 2147483648, %v1889_v46  ;;  %v1914_v21 = vand.u32 2147483647, %v1889_v46  ;;  %vm1910_vm1 = vweird.f32 %v1889_v46 }
0x1490   :  { %4207 = vtanh.f32 %v1879_v34  ;;  %v1902_v26 = vor.u32 1.1754944e-38, %v1901_v14  ;;  %vm1900_vm2 = vcmp.eq.f32.partialorder %v1899_v60, 8.507059e+37  ;;  %v1105_v59 = vadd.f32 %v1101_v53, %v4871_v19 }
0x1491   :  { %v1917_v35 = vor.u32 1.1754944e-38, %v1916_v23  ;;  %vm1915_vm8 = vcmp.eq.f32.partialorder %v1914_v21, 8.507059e+37 }
0x1494   :  { %v4204_v10 = vpop.eup %4203 }
0x1495   :  { %v4206_v48 = vpop.eup %4205  ;;  %v1891_v44 = vmul.f32 %v4204_v10, %v1888_v29  ;;  %vm1896_vm11 = vweird.f32 %v4204_v10  ;;  %v3931_v29 = vmul.f32 -1.442695, %v1105_v59 }
0x1496   :  { %v1906_v22 = vmul.f32 %v4206_v48, %v1889_v46  ;;  %vm1911_vm12 = vweird.f32 %v4206_v48  ;;  %vm1897_vm15 = vmor %vm1895_vm14, %vm1896_vm11  ;;  %v4208_v40 = vpop.eup %4207 }
0x1497   :  { %v1892_v56 = vsub.f32 1.0, %v1891_v44  ;;  %vm1912_vm0 = vmor %vm1910_vm1, %vm1911_vm12 }
0x1498   :  { %v1907_v8 = vsub.f32 1.0, %v1906_v22 }
0x1499   :  { %v1893_v45 = vmul.f32 %v4204_v10, %v1892_v56 }
0x149a   :  { %v1908_v28 = vmul.f32 %v4206_v48, %v1907_v8 }
0x149b   :  { %v1894_v13 = vadd.f32 %v4204_v10, %v1893_v45 }
0x149c   :  { %v1909_v9 = vadd.f32 %v4206_v48, %v1908_v28 }
0x149d   :  { %v1898_v37 = vsel %vm1897_vm15, %v4204_v10, %v1894_v13 }
0x149e   :  { %v1903_v7 = vsel %vm1900_vm2, %v1902_v26, %v1898_v37  ;;  %v1913_v0 = vsel %vm1912_vm0, %v4206_v48, %v1909_v9 }
0x149f   :  { %v1918_v61 = vsel %vm1915_vm8, %v1917_v35, %v1913_v0  ;;  %v1925_v47 = vmul.f32 %v1923_v27, %v1903_v7 }
0x14a0   :  { %v1921_v49 = vsel %vm313_vm13, %v4208_v40, %v1918_v61 }
0x14a1   :  { %v1926_v31 = vmul.f32 %v1921_v49, %v1903_v7 }
0x14a3   :  { %1928 = vrot.lane.b32.xlu0 %v1926_v31, %s4515_s4 }
0x1515   :  { %v1929_v32 = vpop.permute.xlu0 %1928 }
0x1516   :  { %v5366_v51 = vadd.f32 %v1929_v32, %v1925_v47 }
0x1518   :  { %4209 = vtanh.f32 %v5366_v51 }
0x1519   :  { %4211 = vpow2.f32 %v3931_v29 }
0x151e   :  { %v4210_v4 = vpop.eup %4209 }
0x151f   :  { %v5369_v34 = vmul.f32 %v4210_v4, %v1921_v49  ;;  %v4212_v22 = vpop.eup %4211 }
0x1520   :  { %v1115_v8 = vadd.f32 1.0, %v4212_v22 }
0x1521   :  { %v1935_v52 = vrot.slane %v5369_v34, 2 }
0x1522   :  { %vm1136_vm11 = vweird.f32 %v1115_v8 }
0x1523   :  { %1936 = vrot.lane.b32.xlu1 %v1935_v52, %s4515_s4 }
0x152b   :  { %2157 = vrot.lane.b32.xlu1 %v5269_v20, %s4515_s4 }
0x1595   :  { %v1937_v36 = vpop.permute.xlu1 %1936 }
0x1596   :  { %3958 = vmatmul.msk.f32.vlgmr.msrb.gmra.mxu2 %vm256_vm6, %v1937_v36  ;;  %3959 = vmatmul.msk.f32.vlgmr.msra.gmra.mxu3 %vm256_vm6, %v1937_v36  ;;  %v1142_v36 = vand.u32 2147483648, %v1115_v8 }
0x1619   :  { %v1957_v46 = vpop.f32.mrf.mxu2  ;;  %v1977_v10 = vpop.f32.mrf.mxu3 }
0x161a   :  { %v1982_v48 = vrot.slane %v1957_v46, 4  ;;  %v1983_v44 = vrot.slane %v1977_v10, 4  ;;  %v2031_v10 = vrot.slane %v5366_v51, 6 }
0x161c   :  { %v1986_v56 = vadd.f32 %v1982_v48, %v5340_v2  ;;  %v1987_v14 = vadd.f32 %v1983_v44, %v5344_v3 }
0x161e   :  { %v3960_v45 = vmul.f32 -1.442695, %v1986_v56  ;;  %v3961_v60 = vmul.f32 -1.442695, %v1987_v14 }
0x1620   :  { %4213 = vpow2.f32 %v3960_v45  ;;  %v1140_v45 = vand.u32 2147483647, %v1115_v8 }
0x1621   :  { %4215 = vpow2.f32 %v3961_v60 }
0x1622   :  { %4217 = vrcp.f32 %v1115_v8 }
0x1626   :  { %v4214_v54 = vpop.eup %4213 }
0x1627   :  { %v4216_v23 = vpop.eup %4215  ;;  %v1996_v19 = vadd.f32 1.0, %v4214_v54 }
0x1628   :  { %v4218_v28 = vpop.eup %4217  ;;  %v1997_v21 = vadd.f32 1.0, %v4216_v23 }
0x1629   :  { %4219 = vrcp.f32 %v1996_v19  ;;  %v1132_v13 = vmul.f32 %v4218_v28, %v1115_v8  ;;  %v2009_v7 = vand.u32 2147483648, %v1996_v19  ;;  %v2007_v49 = vand.u32 2147483647, %v1996_v19 }
0x162a   :  { %4221 = vrcp.f32 %v1997_v21  ;;  %v2024_v31 = vand.u32 2147483648, %v1997_v21  ;;  %v2022_v4 = vand.u32 2147483647, %v1997_v21  ;;  %vm2003_vm12 = vweird.f32 %v1996_v19 }
0x162b   :  { %v1133_v9 = vsub.f32 1.0, %v1132_v13  ;;  %4223 = vtanh.f32 %v1987_v14  ;;  %vm1137_vm14 = vweird.f32 %v4218_v28  ;;  %v2010_v53 = vor.u32 1.1754944e-38, %v2009_v7 }
0x162c   :  { %vm2018_vm1 = vweird.f32 %v1997_v21  ;;  %vm2008_vm2 = vcmp.eq.f32.partialorder %v2007_v49, 8.507059e+37  ;;  %v2025_v44 = vor.u32 1.1754944e-38, %v2024_v31  ;;  %vm2023_vm8 = vcmp.eq.f32.partialorder %v2022_v4, 8.507059e+37 }
0x162d   :  { %v1134_v61 = vmul.f32 %v4218_v28, %v1133_v9  ;;  %4225 = vtanh.f32 %v1105_v59  ;;  %v2187_v7 = vrot.slane %v5300_v39, 2 }
0x162f   :  { %v4220_v26 = vpop.eup %4219  ;;  %v1135_v46 = vadd.f32 %v4218_v28, %v1134_v61  ;;  %v1205_v61 = vrot.slane %v4933_v25, 6 }
0x1630   :  { %v4222_v27 = vpop.eup %4221  ;;  %v1999_v37 = vmul.f32 %v4220_v26, %v1996_v19  ;;  %vm2004_vm9 = vweird.f32 %v4220_v26 }
0x1631   :  { %v2014_v35 = vmul.f32 %v4222_v27, %v1997_v21  ;;  %vm2019_vm10 = vweird.f32 %v4222_v27  ;;  %vm2005_vm15 = vmor %vm2003_vm12, %vm2004_vm9  ;;  %v4224_v22 = vpop.eup %4223  ;;  %v1143_v21 = vor.u32 1.1754944e-38, %v1142_v36  ;;  %vm1141_vm12 = vcmp.eq.f32.partialorder %v1140_v45, 8.507059e+37 }
0x1632   :  { %v2000_v40 = vsub.f32 1.0, %v1999_v37  ;;  %vm2020_vm0 = vmor %vm2018_vm1, %vm2019_vm10 }
0x1633   :  { %v2015_v0 = vsub.f32 1.0, %v2014_v35  ;;  %vm1138_vm9 = vmor %vm1136_vm11, %vm1137_vm14 }
0x1634   :  { %v2001_v47 = vmul.f32 %v4220_v26, %v2000_v40  ;;  %v1139_v51 = vsel %vm1138_vm9, %v4218_v28, %v1135_v46  ;;  %vm2230_vm9 = vcmask 1040384  }
0x1635   :  { %v2016_v32 = vmul.f32 %v4222_v27, %v2015_v0  ;;  %v1144_v13 = vsel %vm1141_vm12, %v1143_v21, %v1139_v51  ;;  %v1170_v0 = vrot.slane %v5093_v33, 2  ;;  %vm2233_vm12 = vcmask 1042432  }
0x1636   :  { %v2002_v52 = vadd.f32 %v4220_v26, %v2001_v47 }
0x1637   :  { %v2017_v29 = vadd.f32 %v4222_v27, %v2016_v32 }
0x1638   :  { %v2006_v48 = vsel %vm2005_vm15, %v4220_v26, %v2002_v52  ;;  %v4226_v26 = vpop.eup %4225 }
0x1639   :  { %v2011_v56 = vsel %vm2008_vm2, %v2010_v53, %v2006_v48  ;;  %v2021_v14 = vsel %vm2020_vm0, %v4222_v27, %v2017_v29  ;;  %v5390_v9 = vsel %vm313_vm13, %v4226_v26, %v1144_v13 }
0x163a   :  { %v2026_v60 = vsel %vm2023_vm8, %v2025_v44, %v2021_v14  ;;  %v2033_v54 = vmul.f32 %v2031_v10, %v2011_v56  ;;  %v1152_v59 = vmul.f32 %v5390_v9, %v5219_v6  ;;  %v2176_v6 = vrot.slane %v5351_v5, 2 }
0x163b   :  { %v2029_v23 = vsel %vm313_vm13, %v4224_v22, %v2026_v60  ;;  %v1186_v5 = vrot.slane %v5011_v57, 2 }
0x163c   :  { %v2034_v19 = vmul.f32 %v2029_v23, %v2011_v56 }
0x163e   :  { %2036 = vrot.lane.b32.xlu2 %v2034_v19, %s4515_s4 }
0x1646   :  { %1154 = vrot.lane.b32.xlu2 %v1152_v59, %s4515_s4 }
0x1698   :  { %v2037_v8 = vpop.permute.xlu2 %2036 }
0x1699   :  { %v5395_v27 = vadd.f32 %v2037_v8, %v2033_v54 }
0x169b   :  { %4227 = vtanh.f32 %v5395_v27  ;;  %v2139_v21 = vrot.slane %v5395_v27, 6  ;;  %v2168_v27 = vrot.slane %v5369_v34, 6 }
0x16a0   :  { %v1155_v13 = vpop.permute.xlu2 %1154 }
0x16a1   :  { %v4228_v28 = vpop.eup %4227 }
0x16a2   :  { %v2041_v37 = vmul.f32 %v4228_v28, %v2029_v23 }
0x16a4   :  { %v2160_v35 = vrot.slane %v2041_v37, 2  ;;  %v2043_v40 = vrot.slane %v2041_v37, 4 }
0x16a6   :  { %2161 = vrot.lane.b32.xlu2 %v2160_v35, %s4515_s4  ;;  %2044 = vrot.lane.b32.xlu0 %v2043_v40, %s4515_s4 }
0x16ae   :  { %2173 = vrot.lane.b32.xlu2 %v5328_v62, %s4515_s4  ;;  %2165 = vrot.lane.b32.xlu0 %v5300_v39, %s4515_s4  ;;  %v2195_v62 = vrot.slane %v5269_v20, 6  ;;  %v1197_v39 = vrot.slane %v4968_v38, 2 }
0x16b6   :  { %1167 = vrot.lane.b32.xlu2 %v4933_v25, %s4515_s4  ;;  %2177 = vrot.lane.b32.xlu0 %v2176_v6, %s4515_s4  ;;  %v1157_v6 = vadd.f32 %v1155_v13, %v5222_v18  ;;  %v1178_v18 = vrot.slane %v5029_v43, 6  ;;  %v1193_v13 = vsel %vm224_vm3, %v5015_v58, %v5000_v17 }
0x16be   :  { %2188 = vrot.lane.b32.xlu2 %v2187_v7, %s4515_s4  ;;  %1171 = vrot.lane.b32.xlu0 %v1170_v0, %s4515_s4 }
0x16c6   :  { %2192 = vrot.lane.b32.xlu2 %v2041_v37, %s4515_s4  ;;  %1175 = vrot.lane.b32.xlu0 %v4968_v38, %s4515_s4 }
0x16ce   :  { %2196 = vrot.lane.b32.xlu0 %v2195_v62, %s4515_s4  ;;  %1187 = vrot.lane.b32.xlu2 %v1186_v5, %s4515_s4 }
0x16d6   :  { %1198 = vrot.lane.b32.xlu0 %v1197_v39, %s4515_s4  ;;  %1194 = vrot.lane.b32.xlu2 %v5029_v43, %s4515_s4 }
0x16de   :  { %1206 = vrot.lane.b32.xlu2 %v1205_v61, %s4515_s4  ;;  %v2203_v61 = vrot.slane %v5230_v11, 2 }
0x1700   :  { %v2162_v11 = vpop.permute.xlu2 %2161 }
0x1718   :  { %v2045_v47 = vpop.permute.xlu0 %2044 }
0x1719   :  { %3962 = vmatmul.msk.f32.vlgmr.msra.gmra.mxu0 %vm256_vm6, %v2045_v47  ;;  %3963 = vmatmul.msk.f32.vlgmr.msra.gmra.mxu1 %vm256_vm6, %v2045_v47  ;;  %v2158_v47 = vpop.permute.xlu1 %2157 }
0x1796   :  { %v2065_v57 = vpop.f32.mrf.mxu0  ;;  %v2085_v20 = vpop.f32.mrf.mxu1 }
0x1797   :  { %v2090_v49 = vrot.slane %v2065_v57, 2  ;;  %v2091_v31 = vrot.slane %v2085_v20, 2 }
0x1799   :  { %v2094_v38 = vadd.f32 %v2090_v49, %v5340_v2  ;;  %v2095_v32 = vadd.f32 %v2091_v31, %v5344_v3  ;;  %v2166_v49 = vpop.permute.xlu0 %2165  ;;  %v2174_v31 = vpop.permute.xlu2 %2173 }
0x179b   :  { %v3964_v4 = vmul.f32 -1.442695, %v2094_v38  ;;  %v3965_v52 = vmul.f32 -1.442695, %v2095_v32 }
0x179d   :  { %4229 = vpow2.f32 %v3964_v4 }
0x179e   :  { %4231 = vpow2.f32 %v3965_v52 }
0x17a3   :  { %v4230_v25 = vpop.eup %4229 }
0x17a4   :  { %v4232_v36 = vpop.eup %4231  ;;  %v2104_v53 = vadd.f32 1.0, %v4230_v25 }
0x17a5   :  { %v2105_v29 = vadd.f32 1.0, %v4232_v36 }
0x17a6   :  { %4233 = vrcp.f32 %v2104_v53  ;;  %v2117_v56 = vand.u32 2147483648, %v2104_v53  ;;  %v2115_v3 = vand.u32 2147483647, %v2104_v53  ;;  %vm2111_vm14 = vweird.f32 %v2104_v53 }
0x17a7   :  { %4235 = vrcp.f32 %v2105_v29  ;;  %v2132_v45 = vand.u32 2147483648, %v2105_v29  ;;  %v2130_v54 = vand.u32 2147483647, %v2105_v29  ;;  %vm2126_vm1 = vweird.f32 %v2105_v29 }
0x17a8   :  { %4237 = vtanh.f32 %v2095_v32  ;;  %v2118_v51 = vor.u32 1.1754944e-38, %v2117_v56  ;;  %vm2116_vm2 = vcmp.eq.f32.partialorder %v2115_v3, 8.507059e+37  ;;  %v1168_v32 = vpop.permute.xlu2 %1167 }
0x17a9   :  { %v2133_v59 = vor.u32 1.1754944e-38, %v2132_v45  ;;  %vm2131_vm8 = vcmp.eq.f32.partialorder %v2130_v54, 8.507059e+37  ;;  %4239 = vtanh.f32 %v1157_v6 }
0x17ac   :  { %v4234_v46 = vpop.eup %4233 }
0x17ad   :  { %v4236_v10 = vpop.eup %4235  ;;  %v2107_v48 = vmul.f32 %v4234_v46, %v2104_v53  ;;  %vm2112_vm10 = vweird.f32 %v4234_v46 }
0x17ae   :  { %v2122_v44 = vmul.f32 %v4236_v10, %v2105_v29  ;;  %vm2127_vm11 = vweird.f32 %v4236_v10  ;;  %vm2113_vm15 = vmor %vm2111_vm14, %vm2112_vm10  ;;  %v4238_v8 = vpop.eup %4237  ;;  %vm2236_vm10 = vcmask 1044480   ;;  %vm2290_vm14 = vcmask 64512  }
0x17af   :  { %v2108_v22 = vsub.f32 1.0, %v2107_v48  ;;  %vm2128_vm0 = vmor %vm2126_vm1, %vm2127_vm11  ;;  %v4240_v62 = vpop.eup %4239  ;;  %vm2239_vm11 = vcmask 1046528  }
0x17b0   :  { %v2123_v2 = vsub.f32 1.0, %v2122_v44  ;;  %v1159_v5 = vmul.f32 %v4240_v62, %v5390_v9  ;;  %v1213_v9 = vrot.slane %v4891_v15, 2  ;;  %v2178_v15 = vpop.permute.xlu0 %2177  ;;  %v2189_v25 = vpop.permute.xlu2 %2188 }
0x17b1   :  { %v2109_v14 = vmul.f32 %v4234_v46, %v2108_v22 }
0x17b2   :  { %v2124_v60 = vmul.f32 %v4236_v10, %v2123_v2  ;;  %v1162_v39 = vrot.slane %v1159_v5, 6 }
0x17b3   :  { %v2110_v23 = vadd.f32 %v4234_v46, %v2109_v14 }
0x17b4   :  { %v2125_v19 = vadd.f32 %v4236_v10, %v2124_v60 }
0x17b5   :  { %v2114_v26 = vsel %vm2113_vm15, %v4234_v46, %v2110_v23 }
0x17b6   :  { %v2119_v28 = vsel %vm2116_vm2, %v2118_v51, %v2114_v26  ;;  %v2129_v37 = vsel %vm2128_vm0, %v4236_v10, %v2125_v19  ;;  %v2183_v26 = vsel %vm224_vm3, %v5355_v30, %v5332_v1 }
0x17b7   :  { %v2134_v35 = vsel %vm2131_vm8, %v2133_v59, %v2129_v37  ;;  %v2141_v40 = vmul.f32 %v2139_v21, %v2119_v28 }
0x17b8   :  { %v2137_v7 = vsel %vm313_vm13, %v4238_v8, %v2134_v35  ;;  %v1172_v4 = vpop.permute.xlu0 %1171  ;;  %v2193_v29 = vpop.permute.xlu2 %2192  ;;  %v2164_v8 = vsel %vm224_vm3, %v2158_v47, %v2162_v11 }
0x17b9   :  { %v2142_v0 = vmul.f32 %v2137_v7, %v2119_v28  ;;  %v1174_v14 = vsel %vm224_vm3, %v1168_v32, %v1172_v4  ;;  %v2180_v28 = vsel %vm224_vm3, %v2174_v31, %v2178_v15 }
0x17bb   :  { %2144 = vrot.lane.b32.xlu1 %v2142_v0, %s4515_s4 }
0x17c0   :  { %v1176_v36 = vpop.permute.xlu0 %1175  ;;  %v1188_v48 = vpop.permute.xlu2 %1187 }
0x17c3   :  { %2169 = vrot.lane.b32.xlu1 %v2168_v27, %s4515_s4 }
0x17c8   :  { %v2197_v46 = vpop.permute.xlu0 %2196  ;;  %v1195_v60 = vpop.permute.xlu2 %1194 }
0x17c9   :  { %v2199_v37 = vsel %vm224_vm3, %v2193_v29, %v2197_v46 }
0x17cb   :  { %1163 = vrot.lane.b32.xlu1 %v1162_v39, %s4515_s4 }
0x17d0   :  { %v1199_v44 = vpop.permute.xlu0 %1198  ;;  %v1207_v30 = vpop.permute.xlu2 %1206 }
0x17d1   :  { %v1201_v6 = vsel %vm224_vm3, %v1195_v60, %v1199_v44 }
0x17d3   :  { %2184 = vrot.lane.b32.xlu1 %v5369_v34, %s4515_s4 }
0x17db   :  { %1179 = vrot.lane.b32.xlu1 %v1178_v18, %s4515_s4 }
0x17e3   :  { %1183 = vrot.lane.b32.xlu1 %v4996_v12, %s4515_s4 }
0x17eb   :  { %2204 = vrot.lane.b32.xlu1 %v2203_v61, %s4515_s4  ;;  %v1221_v61 = vsel %vm242_vm4, %v1193_v13, %v1201_v6  ;;  %v4357_v6 = vld [vmem:[#allocation2 + $0x78] sm:$0xff] }
0x17f3   :  { %1202 = vrot.lane.b32.xlu1 %v5093_v33, %s4515_s4 }
0x17fb   :  { %1214 = vrot.lane.b32.xlu1 %v1213_v9, %s4515_s4 }
0x182d   :  { %v2145_v34 = vpop.permute.xlu1 %2144 }
0x182e   :  { %v2147_v57 = vadd.f32 %v2145_v34, %v2141_v40 }
0x1830   :  { %4241 = vtanh.f32 %v2147_v57 }
0x1835   :  { %v2170_v33 = vpop.permute.xlu1 %2169 }
0x1836   :  { %v4242_v43 = vpop.eup %4241  ;;  %v2172_v17 = vsel %vm224_vm3, %v2166_v49, %v2170_v33 }
0x1837   :  { %v2149_v20 = vmul.f32 %v4242_v43, %v2137_v7 }
0x1839   :  { %2200 = vrot.lane.b32.xlu0 %v2149_v20, %s4515_s4  ;;  %v2152_v12 = vrot.slane %v2149_v20, 6 }
0x183d   :  { %v1164_v38 = vpop.permute.xlu1 %1163 }
0x183e   :  { %v1166_v22 = vsel %vm224_vm3, %v4896_v16, %v1164_v38 }
0x183f   :  { %v1218_v45 = vsel %vm242_vm4, %v1166_v22, %v1174_v14 }
0x1841   :  { %2153 = vrot.lane.b32.xlu0 %v2152_v12, %s4515_s4 }
0x1845   :  { %v2185_v52 = vpop.permute.xlu1 %2184 }
0x1846   :  { %v2191_v16 = vsel %vm224_vm3, %v2185_v52, %v2189_v25 }
0x1847   :  { %v2211_v58 = vsel %vm242_vm4, %v2183_v26, %v2191_v16 }
0x1848   :  { %v2212_v9 = vsel %vm244_vm5, %v2211_v58, %v2199_v37  ;;  %v4359_v58 = vld [vmem:[#allocation2 + $0x58] sm:$0xff] }
0x1849   :  { %1210 = vrot.lane.b32.xlu0 %v1159_v5, %s4515_s4 }
0x184d   :  { %v1180_v53 = vpop.permute.xlu1 %1179 }
0x184e   :  { %v1182_v2 = vsel %vm224_vm3, %v1176_v36, %v1180_v53 }
0x184f   :  { %v1219_v54 = vsel %vm244_vm5, %v1218_v45, %v1182_v2 }
0x1855   :  { %v1184_v10 = vpop.permute.xlu1 %1183 }
0x1856   :  { %v1190_v3 = vsel %vm224_vm3, %v1184_v10, %v1188_v48 }
0x1857   :  { %v5461_v51 = vsel %vm246_vm7, %v1219_v54, %v1190_v3 }
0x1858   :  { %v2215_v19 = vrot.slane %v5461_v51, 1  ;;  %v2217_v59 = vrot.slane %v5461_v51, 2  ;;  %v2219_v7 = vrot.slane %v5461_v51, 3 }
0x185a   :  { %v2231_v35 = vsel %vm2230_vm9, %v5461_v51, %v2215_v19  ;;  %v2443_v5 = vsel %vm2230_vm9, %v2215_v19, %v2217_v59 }
0x185b   :  { %v2232_v62 = vsel %vm242_vm4, %v2231_v35, %v2217_v59  ;;  %v2444_v12 = vsel %vm242_vm4, %v2443_v5, %v2219_v7 }
0x185c   :  { %v2234_v49 = vsel %vm2233_vm12, %v2232_v62, %v2219_v7  ;;  %v4362_v7 = vld [vmem:[#allocation2 + $0x28] sm:$0xff] }
0x185d   :  { %v2205_v56 = vpop.permute.xlu1 %2204 }
0x1865   :  { %v1203_v21 = vpop.permute.xlu1 %1202 }
0x1866   :  { %v1209_v39 = vsel %vm224_vm3, %v1203_v21, %v1207_v30  ;;  %v4361_v30 = vld [vmem:[#allocation2 + $0x38] sm:$0xff] }
0x1867   :  { %v1222_v11 = vsel %vm244_vm5, %v1221_v61, %v1209_v39 }
0x186d   :  { %v1215_v38 = vpop.permute.xlu1 %1214 }
0x18ab   :  { %v2201_v23 = vpop.permute.xlu0 %2200 }
0x18ac   :  { %v2207_v0 = vsel %vm224_vm3, %v2201_v23, %v2205_v56 }
0x18ad   :  { %v2213_v34 = vsel %vm246_vm7, %v2212_v9, %v2207_v0  ;;  %v4363_v0 = vld [vmem:[#allocation2 + $0x18] sm:$0xff] }
0x18ae   :  { %v2249_v32 = vrot.slane %v2213_v34, 4  ;;  %v2251_v4 = vrot.slane %v2213_v34, 5  ;;  %v2253_v53 = vrot.slane %v2213_v34, 6  ;;  %v2255_v44 = vrot.slane %v2213_v34, 7 }
0x18b3   :  { %v2154_v40 = vpop.permute.xlu0 %2153 }
0x18b4   :  { %v2156_v1 = vsel %vm224_vm3, %v5234_v24, %v2154_v40  ;;  %v2441_v24 = vrot.slane %v5461_v51, 4 }
0x18b5   :  { %v2208_v27 = vsel %vm242_vm4, %v2156_v1, %v2164_v8  ;;  %v4360_v1 = vld [vmem:[#allocation2 + $0x48] sm:$0xff] }
0x18b6   :  { %v2209_v18 = vsel %vm244_vm5, %v2208_v27, %v2172_v17  ;;  %v2445_v51 = vsel %vm2233_vm12, %v2444_v12, %v2441_v24  ;;  %v4358_v17 = vld [vmem:[#allocation2 + $0x68] sm:$0xff] }
0x18b7   :  { %v2210_v47 = vsel %vm246_vm7, %v2209_v18, %v2180_v28  ;;  %v4364_v27 = vld [vmem:[#allocation2 + $0x8] sm:$0xff] }
0x18b8   :  { %v2242_v57 = vrot.slane %v2210_v47, 1  ;;  %v2244_v43 = vrot.slane %v2210_v47, 2  ;;  %v2246_v20 = vrot.slane %v2210_v47, 3  ;;  %v2450_v31 = vrot.slane %v2210_v47, 4 }
0x18ba   :  { %v2257_v33 = vsel %vm2230_vm9, %v2210_v47, %v2242_v57  ;;  %v2452_v15 = vsel %vm2230_vm9, %v2242_v57, %v2244_v43 }
0x18bb   :  { %v1211_v52 = vpop.permute.xlu0 %1210  ;;  %v2258_v25 = vsel %vm242_vm4, %v2257_v33, %v2244_v43  ;;  %v2453_v36 = vsel %vm242_vm4, %v2452_v15, %v2246_v20 }
0x18bc   :  { %v1217_v29 = vsel %vm224_vm3, %v1211_v52, %v1215_v38  ;;  %v2259_v46 = vsel %vm2233_vm12, %v2258_v25, %v2246_v20  ;;  %v2454_v10 = vsel %vm2233_vm12, %v2453_v36, %v2450_v31 }
0x18bd   :  { %v1223_v48 = vsel %vm246_vm7, %v1222_v11, %v1217_v29  ;;  %v2260_v22 = vsel %vm244_vm5, %v2259_v46, %v2249_v32  ;;  %v2455_v56 = vsel %vm244_vm5, %v2454_v10, %v2251_v4 }
0x18be   :  { %v2222_v2 = vrot.slane %v1223_v48, 4  ;;  %v2224_v14 = vrot.slane %v1223_v48, 5  ;;  %v2226_v3 = vrot.slane %v1223_v48, 6  ;;  %v2261_v45 = vsel %vm2236_vm10, %v2260_v22, %v2251_v4  ;;  %v4365_v22 = vld [vmem:[#allocation2 + $0x70] sm:$0xff] }
0x18bf   :  { %v2262_v60 = vsel %vm246_vm7, %v2261_v45, %v2253_v53  ;;  %v2456_v54 = vsel %vm2236_vm10, %v2455_v56, %v2253_v53  ;;  %v2228_v23 = vrot.slane %v1223_v48, 7  ;;  %v4366_v56 = vld [vmem:[#allocation2 + $0x60] sm:$0xff] }
0x18c0   :  { %v5512_v19 = vsel %vm2239_vm11, %v2262_v60, %v2255_v44  ;;  %v2457_v16 = vsel %vm246_vm7, %v2456_v54, %v2255_v44  ;;  %v2235_v21 = vsel %vm244_vm5, %v2234_v49, %v2222_v2  ;;  %v2446_v13 = vsel %vm244_vm5, %v2445_v51, %v2224_v14  ;;  %v4367_v2 = vld [vmem:[#allocation2 + $0x50] sm:$0xff]  ;;  %v4368_v45 = vld [vmem:[#allocation2 + $0x40] sm:$0xff] }
0x18c1   :  { %3966 = vmatpush.xpose.msk.msra.mxu2 %vm256_vm6, %v5512_v19  ;;  %2389 = vmatpush.msrb.mxu0 %v5512_v19  ;;  %v5521_v26 = vsel %vm2239_vm11, %v2457_v16, %v2213_v34  ;;  %v2237_v59 = vsel %vm2236_vm10, %v2235_v21, %v2224_v14  ;;  %v2447_v8 = vsel %vm2236_vm10, %v2446_v13, %v2226_v3  ;;  %v4369_v54 = vld [vmem:[#allocation2 + $0x30] sm:$0xff]  ;;  %v4372_v16 = vld [vmem:[#allocation2] sm:$0xff] }
0x18c2   :  { %3970 = vmatpush.xpose.msk.msrb.mxu3 %vm256_vm6, %v5521_v26  ;;  %v2238_v28 = vsel %vm246_vm7, %v2237_v59, %v2226_v3  ;;  %v2448_v37 = vsel %vm246_vm7, %v2447_v8, %v2228_v23  ;;  %v4371_v51 = vld [vmem:[#allocation2 + $0x10] sm:$0xff] }
0x18c3   :  { %2583 = vmatpush.msra.mxu0 %v5521_v26  ;;  %v5531_v35 = vsel %vm2239_vm11, %v2238_v28, %v2228_v23  ;;  %v5534_v40 = vsel %vm2239_vm11, %v2448_v37, %v1223_v48  ;;  %v4370_v23 = vld [vmem:[#allocation2 + $0x20] sm:$0xff] }
0x18c4   :  { %3967 = vmatmul.msk.f32.vlgmr.msra.gmra.mxu2 %vm256_vm6, %v5531_v35  ;;  %2606 = vmatpush.msrb.mxu1 %v5534_v40 }
0x18c5   :  { %2412 = vmatpush.msrb.mxu2 %v5531_v35  ;;  %3971 = vmatmul.msk.f32.vlgmr.msrb.gmra.mxu3 %vm256_vm6, %v5534_v40 }
0x18c6   :  { %2898 = vmatpush.msra.mxu1 %v4357_v6 }
0x18c8   :  { %2899 = vmatpush.msra.mxu1 %v4358_v17 }
0x18ca   :  { %2900 = vmatpush.msra.mxu1 %v4359_v58 }
0x18cc   :  { %2901 = vmatpush.msra.mxu1 %v4360_v1 }
0x18ce   :  { %2902 = vmatpush.msra.mxu1 %v4361_v30 }
0x18d0   :  { %2903 = vmatpush.msra.mxu1 %v4362_v7 }
0x18d2   :  { %2904 = vmatpush.msra.mxu1 %v4363_v0 }
0x18d4   :  { %2905 = vmatpush.msra.mxu1 %v4364_v27 }
0x1947   :  { %v2287_v62 = vpop.f32.mrf.mxu2 }
0x1948   :  { %v2482_v5 = vpop.f32.mrf.mxu3  ;;  %2315 = vxpose.xlu2.b32.start.end [1/1] (short) (narrow) %v2287_v62, 8  ;;  %v2291_v39 = vsel %vm2290_vm14, %v2287_v62, -inf }
0x1949   :  { %2509 = vxpose.xlu1.b32.start.end [1/1] (short) (narrow) %v2482_v5, 8  ;;  %2292 = vmax.xlane.f32.xlu0 %v2291_v39  ;;  %v2485_v18 = vsel %vm2290_vm14, %v2482_v5, -inf }
0x19b9   :  { %2486 = vmax.xlane.f32.xlu2 %v2485_v18 }
0x19bc   :  { %v2293_v61 = vpop.xlane.xlu0 %2292 }
0x19bd   :  { %v2294_v24 = vsub.f32 %v2287_v62, %v2293_v61 }
0x19bf   :  { %v2295_v9 = vmul.f32 1.442695, %v2294_v24  ;;  %v5562_v24 = vld [vmem:[#allocation5 + $0x70] sm:$0xff] }
0x19c1   :  { %4243 = vpow2.f32 %v2295_v9  ;;  %v5565_v9 = vld [vmem:[#allocation5 + $0x60] sm:$0xff] }
0x19c7   :  { %v4244_v47 = vpop.eup %4243 }
0x19c8   :  { %v2297_v34 = vsel %vm2290_vm14, %v4244_v47, 0.0 }
0x19c9   :  { %2298 = vadd.xlane.f32.xlu1 %v2297_v34  ;;  %v5571_v34 = vld [vmem:[#allocation5 + $0x40] sm:$0xff] }
0x19e1   :  { %v2331_v57 = vpop.trf.xlu2 }
0x19e2   :  { %v2347_v43 = vsel %vm2290_vm14, %v2331_v57, -inf }
0x19e3   :  { %2348 = vmax.xlane.f32.xlu0 %v2347_v43  ;;  %v5577_v43 = vld [vmem:[#allocation5 + $0x20] sm:$0xff] }
0x19ed   :  { %v2525_v20 = vpop.trf.xlu1 }
0x19ee   :  { %v2541_v12 = vsel %vm2290_vm14, %v2525_v20, -inf }
0x19ef   :  { %2542 = vmax.xlane.f32.xlu0 %v2541_v12  ;;  %v5582_v12 = vld [vmem:[#allocation5 + $0x10] sm:$0xff] }
0x1a2c   :  { %v2487_v11 = vpop.xlane.xlu2 %2486 }
0x1a2d   :  { %v2488_v49 = vsub.f32 %v2482_v5, %v2487_v11 }
0x1a2f   :  { %v2489_v33 = vmul.f32 1.442695, %v2488_v49  ;;  %v5587_v49 = vld [vmem:[#allocation5] sm:$0xff] }
0x1a31   :  { %4245 = vpow2.f32 %v2489_v33 }
0x1a37   :  { %v5547_v31 = vpop.eup %4245 }
0x1a38   :  { %v2491_v15 = vsel %vm2290_vm14, %v5547_v31, 0.0 }
0x1a39   :  { %2492 = vadd.xlane.f32.xlu0 %v2491_v15  ;;  %v2650_v15 = vld [vmem:[%s6216_s8 + $0x78] sm:$0xff] }
0x1a3a   :  { %2671 = vmatpush.msra.mxu2 %v2650_v15  ;;  %v5662_v15 = vld [vmem:[#allocation5 + $0x58] sm:$0xff] }
0x1a3c   :  { %v2299_v38 = vpop.xlane.xlu1 %2298 }
0x1a3d   :  { %4247 = vrcp.f32 %v2299_v38  ;;  %v2311_v25 = vand.u32 2147483648, %v2299_v38  ;;  %v2309_v53 = vand.u32 2147483647, %v2299_v38  ;;  %vm2305_vm1 = vweird.f32 %v2299_v38 }
0x1a3f   :  { %v2312_v46 = vor.u32 1.1754944e-38, %v2311_v25  ;;  %vm2310_vm0 = vcmp.eq.f32.partialorder %v2309_v53, 8.507059e+37  ;;  %v2664_v25 = vld [vmem:[%s6216_s8 + $0xe8] sm:$0xff]  ;;  %v2663_v53 = vld [vmem:[%s6216_s8 + $0xe0] sm:$0xff] }
0x1a43   :  { %v4248_v32 = vpop.eup %4247 }
0x1a44   :  { %v2301_v4 = vmul.f32 %v4248_v32, %v2299_v38  ;;  %vm2306_vm15 = vweird.f32 %v4248_v32  ;;  %v2666_v38 = vld [vmem:[%s6216_s8 + $0xf8] sm:$0xff] }
0x1a45   :  { %vm2307_vm2 = vmor %vm2305_vm1, %vm2306_vm15  ;;  %2700 = vmatpush.msra.mxu3 %v2666_v38  ;;  %v5665_v38 = vld [vmem:[#allocation5 + $0x48] sm:$0xff] }
0x1a46   :  { %v2302_v52 = vsub.f32 1.0, %v2301_v4  ;;  %v2665_v4 = vld [vmem:[%s6216_s8 + $0xf0] sm:$0xff] }
0x1a47   :  { %2701 = vmatpush.msra.mxu3 %v2665_v4  ;;  %v5674_v4 = vld [vmem:[#allocation5 + $0x18] sm:$0xff] }
0x1a48   :  { %v2303_v36 = vmul.f32 %v4248_v32, %v2302_v52  ;;  %v2648_v52 = vld [vmem:[%s6216_s8 + $0x68] sm:$0xff] }
0x1a49   :  { %2702 = vmatpush.msra.mxu3 %v2664_v25  ;;  %v2640_v25 = vld [vmem:[%s6216_s8 + $0x28] sm:$0xff] }
0x1a4a   :  { %v2304_v29 = vadd.f32 %v4248_v32, %v2303_v36  ;;  %v2647_v36 = vld [vmem:[%s6216_s8 + $0x60] sm:$0xff] }
0x1a4b   :  { %2703 = vmatpush.msra.mxu3 %v2663_v53  ;;  %v2639_v53 = vld [vmem:[%s6216_s8 + $0x20] sm:$0xff] }
0x1a4c   :  { %v2308_v10 = vsel %vm2307_vm2, %v4248_v32, %v2304_v29  ;;  %v2649_v32 = vld [vmem:[%s6216_s8 + $0x70] sm:$0xff]  ;;  %v2646_v29 = vld [vmem:[%s6216_s8 + $0x58] sm:$0xff] }
0x1a4d   :  { %v2313_v48 = vsel %vm2310_vm0, %v2312_v46, %v2308_v10  ;;  %2672 = vmatpush.msra.mxu2 %v2649_v32  ;;  %v2662_v46 = vld [vmem:[%s6216_s8 + $0xd8] sm:$0xff] }
0x1a4e   :  { %v2314_v44 = vmul.f32 %v4244_v47, %v2313_v48  ;;  %v5568_v47 = vld [vmem:[#allocation5 + $0x50] sm:$0xff]  ;;  %2704 = vmatpush.msra.mxu3 %v2662_v46  ;;  %v5668_v32 = vld [vmem:[#allocation5 + $0x38] sm:$0xff] }
0x1a4f   :  { %2673 = vmatpush.msra.mxu2 %v2648_v52  ;;  %v5677_v52 = vld [vmem:[#allocation5 + $0x8] sm:$0xff]  ;;  %v2638_v46 = vld [vmem:[%s6216_s8 + $0x18] sm:$0xff] }
0x1a50   :  { %3968 = vmatmul.msk.f32.vlgmr.msrb.gmra.mxu0 %vm2290_vm14, %v2314_v44  ;;  %v2645_v44 = vld [vmem:[%s6216_s8 + $0x50] sm:$0xff] }
0x1a51   :  { %2869 = vmatpush.msrb.mxu0 %v4365_v22  ;;  %2674 = vmatpush.msra.mxu2 %v2647_v36  ;;  %v2661_v22 = vld [vmem:[%s6216_s8 + $0xd0] sm:$0xff]  ;;  %v2656_v36 = vld [vmem:[%s6216_s8 + $0xa8] sm:$0xff] }
0x1a52   :  { %2705 = vmatpush.msra.mxu3 %v2661_v22  ;;  %v2636_v22 = vld [vmem:[%s6216_s8 + $0x8] sm:$0xff] }
0x1a53   :  { %2870 = vmatpush.msrb.mxu0 %v4366_v56  ;;  %2675 = vmatpush.msra.mxu2 %v2646_v29  ;;  %v2655_v29 = vld [vmem:[%s6216_s8 + $0xa0] sm:$0xff] }
0x1a55   :  { %2871 = vmatpush.msrb.mxu0 %v4367_v2  ;;  %v2644_v2 = vld [vmem:[%s6216_s8 + $0x48] sm:$0xff]  ;;  %2676 = vmatpush.msra.mxu2 %v2645_v44  ;;  %v2653_v44 = vld [vmem:[%s6216_s8 + $0x90] sm:$0xff] }
0x1a56   :  { %v2349_v14 = vpop.xlane.xlu0 %2348 }
0x1a57   :  { %v2350_v3 = vsub.f32 %v2331_v57, %v2349_v14  ;;  %2872 = vmatpush.msrb.mxu0 %v4368_v45  ;;  %v5574_v57 = vld [vmem:[#allocation5 + $0x30] sm:$0xff]  ;;  %v2660_v14 = vld [vmem:[%s6216_s8 + $0xc8] sm:$0xff]  ;;  %2677 = vmatpush.msra.mxu2 %v2644_v2  ;;  %v2635_v2 = vld [vmem:[%s6216_s8] sm:$0xff] }
0x1a58   :  { %2706 = vmatpush.msra.mxu3 %v2660_v14  ;;  %v2651_v14 = vld [vmem:[%s6216_s8 + $0x80] sm:$0xff] }
0x1a59   :  { %v2351_v60 = vmul.f32 1.442695, %v2350_v3  ;;  %2873 = vmatpush.msrb.mxu0 %v4369_v54 }
0x1a5b   :  { %4249 = vpow2.f32 %v2351_v60  ;;  %2874 = vmatpush.msrb.mxu0 %v4370_v23  ;;  %v2643_v23 = vld [vmem:[%s6216_s8 + $0x40] sm:$0xff] }
0x1a5c   :  { %2678 = vmatpush.msra.mxu2 %v2643_v23 }
0x1a5d   :  { %2875 = vmatpush.msrb.mxu0 %v4371_v51  ;;  %v2659_v51 = vld [vmem:[%s6216_s8 + $0xc0] sm:$0xff] }
0x1a5e   :  { %2707 = vmatpush.msra.mxu3 %v2659_v51 }
0x1a5f   :  { %2876 = vmatpush.msrb.mxu0 %v4372_v16 }
0x1a61   :  { %v5552_v21 = vpop.eup %4249 }
0x1a62   :  { %v2543_v13 = vpop.xlane.xlu0 %2542  ;;  %v2353_v59 = vsel %vm2290_vm14, %v5552_v21, 0.0 }
0x1a63   :  { %v2544_v8 = vsub.f32 %v2525_v20, %v2543_v13  ;;  %2354 = vadd.xlane.f32.xlu0 %v2353_v59  ;;  %v2642_v13 = vld [vmem:[%s6216_s8 + $0x38] sm:$0xff] }
0x1a64   :  { %v2658_v59 = vld [vmem:[%s6216_s8 + $0xb8] sm:$0xff]  ;;  %2679 = vmatpush.msra.mxu2 %v2642_v13 }
0x1a65   :  { %v2545_v28 = vmul.f32 1.442695, %v2544_v8  ;;  %2708 = vmatpush.msra.mxu3 %v2658_v59 }
0x1a67   :  { %4251 = vpow2.f32 %v2545_v28 }
0x1a6d   :  { %v5556_v37 = vpop.eup %4251 }
0x1a6e   :  { %v2547_v6 = vsel %vm2290_vm14, %v5556_v37, 0.0 }
0x1a6f   :  { %2548 = vadd.xlane.f32.xlu0 %v2547_v6  ;;  %v2641_v6 = vld [vmem:[%s6216_s8 + $0x30] sm:$0xff] }
0x1a70   :  { %2680 = vmatpush.msra.mxu2 %v2641_v6 }
0x1a72   :  { %2681 = vmatpush.msra.mxu2 %v2640_v25 }
0x1a74   :  { %2682 = vmatpush.msra.mxu2 %v2639_v53 }
0x1a76   :  { %2683 = vmatpush.msra.mxu2 %v2638_v46 }
0x1aac   :  { %v2493_v17 = vpop.xlane.xlu0 %2492 }
0x1aad   :  { %4253 = vrcp.f32 %v2493_v17  ;;  %v2505_v7 = vand.u32 2147483648, %v2493_v17  ;;  %v2503_v27 = vand.u32 2147483647, %v2493_v17  ;;  %vm2499_vm15 = vweird.f32 %v2493_v17 }
0x1aaf   :  { %v2506_v5 = vor.u32 1.1754944e-38, %v2505_v7  ;;  %vm2504_vm2 = vcmp.eq.f32.partialorder %v2503_v27, 8.507059e+37 }
0x1ab3   :  { %v4254_v58 = vpop.eup %4253 }
0x1ab4   :  { %v2495_v1 = vmul.f32 %v4254_v58, %v2493_v17  ;;  %vm2500_vm8 = vweird.f32 %v4254_v58  ;;  %v2657_v17 = vld [vmem:[%s6216_s8 + $0xb0] sm:$0xff] }
0x1ab5   :  { %vm2501_vm1 = vmor %vm2499_vm15, %vm2500_vm8  ;;  %2709 = vmatpush.msra.mxu3 %v2657_v17 }
0x1ab6   :  { %v2496_v30 = vsub.f32 1.0, %v2495_v1 }
0x1ab7   :  { %2710 = vmatpush.msra.mxu3 %v2656_v36 }
0x1ab8   :  { %v2497_v0 = vmul.f32 %v4254_v58, %v2496_v30 }
0x1ab9   :  { %2711 = vmatpush.msra.mxu3 %v2655_v29 }
0x1aba   :  { %v2498_v62 = vadd.f32 %v4254_v58, %v2497_v0 }
0x1abc   :  { %v2502_v39 = vsel %vm2501_vm1, %v4254_v58, %v2498_v62 }
0x1abd   :  { %v2507_v18 = vsel %vm2504_vm2, %v2506_v5, %v2502_v39 }
0x1abe   :  { %v2508_v61 = vmul.f32 %v5547_v31, %v2507_v18 }
0x1ac0   :  { %3972 = vmatmul.msk.f32.vlgmr.msra.gmra.mxu0 %vm2290_vm14, %v2508_v61 }
0x1ac1   :  { %2985 = vmatpush.msra.mxu0 %v5562_v24 }
0x1ac3   :  { %2986 = vmatpush.msra.mxu0 %v5565_v9 }
0x1ac5   :  { %2987 = vmatpush.msra.mxu0 %v5568_v47 }
0x1ac7   :  { %2988 = vmatpush.msra.mxu0 %v5571_v34 }
0x1ac9   :  { %2989 = vmatpush.msra.mxu0 %v5574_v57 }
0x1acb   :  { %2990 = vmatpush.msra.mxu0 %v5577_v43 }
0x1acd   :  { %v5580_v20 = vpop.f32.mrf.mxu0  ;;  %2991 = vmatpush.msra.mxu0 %v5582_v12 }
0x1ace   :  { %v2418_v11 = vmul.f32 %v5580_v20, %v5531_v35  ;;  %v2417_v23 = vsub.f32 %v5531_v35, %v5580_v20 }
0x1acf   :  { %2992 = vmatpush.msra.mxu0 %v5587_v49 }
0x1ad0   :  { %v4024_v33 = vpack.i.bf16 %v2418_v11, %v5580_v20 }
0x1ad2   :  { %4025 = vrot.lane.b32.xlu0 %v4024_v33, %s4515_s4  ;;  %v5656_v33 = vld [vmem:[#allocation5 + $0x78] sm:$0xff] }
0x1ad6   :  { %v2355_v31 = vpop.xlane.xlu0 %2354 }
0x1ad7   :  { %4255 = vrcp.f32 %v2355_v31  ;;  %v2367_v3 = vand.u32 2147483648, %v2355_v31  ;;  %v2365_v60 = vand.u32 2147483647, %v2355_v31  ;;  %vm2361_vm8 = vweird.f32 %v2355_v31 }
0x1ad9   :  { %v2368_v8 = vor.u32 1.1754944e-38, %v2367_v3  ;;  %vm2366_vm1 = vcmp.eq.f32.partialorder %v2365_v60, 8.507059e+37 }
0x1add   :  { %v4256_v10 = vpop.eup %4255 }
0x1ade   :  { %v2357_v48 = vmul.f32 %v4256_v10, %v2355_v31  ;;  %vm2362_vm0 = vweird.f32 %v4256_v10  ;;  %v5659_v31 = vld [vmem:[#allocation5 + $0x68] sm:$0xff] }
0x1adf   :  { %vm2363_vm15 = vmor %vm2361_vm8, %vm2362_vm0 }
0x1ae0   :  { %v2358_v56 = vsub.f32 1.0, %v2357_v48  ;;  %v2637_v48 = vld [vmem:[%s6216_s8 + $0x10] sm:$0xff] }
0x1ae1   :  { %2684 = vmatpush.msra.mxu2 %v2637_v48 }
0x1ae2   :  { %v2359_v45 = vmul.f32 %v4256_v10, %v2358_v56  ;;  %v2549_v54 = vpop.xlane.xlu0 %2548  ;;  %v2652_v56 = vld [vmem:[%s6216_s8 + $0x88] sm:$0xff] }
0x1ae3   :  { %4257 = vrcp.f32 %v2549_v54  ;;  %v2561_v27 = vand.u32 2147483648, %v2549_v54  ;;  %v2559_v5 = vand.u32 2147483647, %v2549_v54  ;;  %vm2555_vm0 = vweird.f32 %v2549_v54  ;;  %2685 = vmatpush.msra.mxu2 %v2636_v22 }
0x1ae4   :  { %v2360_v16 = vadd.f32 %v4256_v10, %v2359_v45 }
0x1ae5   :  { %v2562_v18 = vor.u32 1.1754944e-38, %v2561_v27  ;;  %2686 = vmatpush.msra.mxu2 %v2635_v2 }
0x1ae6   :  { %v2364_v28 = vsel %vm2363_vm15, %v4256_v10, %v2360_v16  ;;  %vm2560_vm15 = vcmp.eq.f32.partialorder %v2559_v5, 8.507059e+37  ;;  %v2654_v10 = vld [vmem:[%s6216_s8 + $0x98] sm:$0xff] }
0x1ae7   :  { %v2369_v58 = vsel %vm2366_vm1, %v2368_v8, %v2364_v28  ;;  %2712 = vmatpush.msra.mxu3 %v2654_v10 }
0x1ae8   :  { %v2370_v1 = vmul.f32 %v5552_v21, %v2369_v58 }
0x1ae9   :  { %v4258_v30 = vpop.eup %4257  ;;  %2713 = vmatpush.msra.mxu3 %v2653_v44 }
0x1aea   :  { %v2551_v7 = vmul.f32 %v4258_v30, %v2549_v54  ;;  %3969 = vmatmul.msk.f32.vlgmr.msrb.gmra.mxu2 %vm2290_vm14, %v2370_v1  ;;  %vm2556_vm2 = vweird.f32 %v4258_v30 }
0x1aeb   :  { %vm2557_vm8 = vmor %vm2555_vm0, %vm2556_vm2  ;;  %2714 = vmatpush.msra.mxu3 %v2652_v56  ;;  %3093 = vmatpush.msrb.mxu2 %v5562_v24 }
0x1aec   :  { %v2552_v0 = vsub.f32 1.0, %v2551_v7 }
0x1aed   :  { %2715 = vmatpush.msra.mxu3 %v2651_v14  ;;  %3094 = vmatpush.msrb.mxu2 %v5565_v9 }
0x1aee   :  { %v2553_v62 = vmul.f32 %v4258_v30, %v2552_v0 }
0x1aef   :  { %3113 = vmatpush.msrb.mxu3 %v5656_v33  ;;  %3095 = vmatpush.msrb.mxu2 %v5568_v47 }
0x1af0   :  { %v2554_v39 = vadd.f32 %v4258_v30, %v2553_v62 }
0x1af1   :  { %3114 = vmatpush.msrb.mxu3 %v5659_v31  ;;  %3096 = vmatpush.msrb.mxu2 %v5571_v34 }
0x1af2   :  { %v2558_v61 = vsel %vm2557_vm8, %v4258_v30, %v2554_v39 }
0x1af3   :  { %v2563_v11 = vsel %vm2560_vm15, %v2562_v18, %v2558_v61  ;;  %3115 = vmatpush.msrb.mxu3 %v5662_v15  ;;  %3097 = vmatpush.msrb.mxu2 %v5574_v57 }
0x1af4   :  { %v2564_v21 = vmul.f32 %v5556_v37, %v2563_v11  ;;  %v5671_v37 = vld [vmem:[#allocation5 + $0x28] sm:$0xff] }
0x1af5   :  { %3116 = vmatpush.msrb.mxu3 %v5665_v38  ;;  %3098 = vmatpush.msrb.mxu2 %v5577_v43 }
0x1af6   :  { %3973 = vmatmul.msk.f32.vlgmr.msrb.gmra.mxu1 %vm2290_vm14, %v2564_v21 }
0x1af7   :  { %3005 = vmatpush.msrb.mxu1 %v5656_v33  ;;  %3117 = vmatpush.msrb.mxu3 %v5668_v32 }
0x1af8   :  { %3099 = vmatpush.msrb.mxu2 %v5582_v12 }
0x1af9   :  { %3006 = vmatpush.msrb.mxu1 %v5659_v31  ;;  %3118 = vmatpush.msrb.mxu3 %v5671_v37 }
0x1afa   :  { %3100 = vmatpush.msrb.mxu2 %v5587_v49 }
0x1afb   :  { %3007 = vmatpush.msrb.mxu1 %v5662_v15  ;;  %3119 = vmatpush.msrb.mxu3 %v5674_v4 }
0x1afd   :  { %3008 = vmatpush.msrb.mxu1 %v5665_v38  ;;  %3120 = vmatpush.msrb.mxu3 %v5677_v52 }
0x1aff   :  { %3009 = vmatpush.msrb.mxu1 %v5668_v32 }
0x1b01   :  { %3010 = vmatpush.msrb.mxu1 %v5671_v37 }
0x1b03   :  { %3011 = vmatpush.msrb.mxu1 %v5674_v4 }
0x1b05   :  { %3012 = vmatpush.msrb.mxu1 %v5677_v52 }
0x1b3d   :  { %v2585_v3 = vpop.f32.mrf.mxu0 }
0x1b3e   :  { %v2612_v45 = vmul.f32 %v2585_v3, %v5534_v40  ;;  %v2611_v1 = vsub.f32 %v5534_v40, %v2585_v3 }
0x1b40   :  { %v4029_v60 = vpack.i.bf16 %v2612_v45, %v2585_v3 }
0x1b42   :  { %4030 = vrot.lane.b32.xlu0 %v4029_v60, %s4515_s4 }
0x1b44   :  { %v4026_v54 = vpop.permute.xlu0 %4025 }
0x1b45   :  { %v4028_v51 = vunpack.i.h.bf16 %v4026_v54  ;;  %v4027_v16 = vunpack.i.l.bf16 %v4026_v54 }
0x1b47   :  { %v2427_v13 = vsel %vm256_vm6, %v5531_v35, %v4027_v16  ;;  %v2428_v59 = vsel %vm256_vm6, %v2417_v23, %v4028_v51 }
0x1b48   :  { %2687 = vmatmul.f32.vlgmr.msra.gmra.mxu2 %v2427_v13  ;;  %2716 = vmatmul.f32.vlgmr.msra.gmra.mxu3 %v2428_v59 }
0x1b49   :  { %3302 = vmatpush.msra.mxu2 %v5562_v24  ;;  %3322 = vmatpush.msra.mxu3 %v5656_v33 }
0x1b4b   :  { %3303 = vmatpush.msra.mxu2 %v5565_v9  ;;  %3323 = vmatpush.msra.mxu3 %v5659_v31 }
0x1b4d   :  { %3304 = vmatpush.msra.mxu2 %v5568_v47  ;;  %3324 = vmatpush.msra.mxu3 %v5662_v15 }
0x1b4f   :  { %3305 = vmatpush.msra.mxu2 %v5571_v34  ;;  %3325 = vmatpush.msra.mxu3 %v5665_v38 }
0x1b51   :  { %3306 = vmatpush.msra.mxu2 %v5574_v57  ;;  %3326 = vmatpush.msra.mxu3 %v5668_v32 }
0x1b53   :  { %3307 = vmatpush.msra.mxu2 %v5577_v43  ;;  %3327 = vmatpush.msra.mxu3 %v5671_v37 }
0x1b55   :  { %3308 = vmatpush.msra.mxu2 %v5582_v12  ;;  %3328 = vmatpush.msra.mxu3 %v5674_v4 }
0x1b57   :  { %3309 = vmatpush.msra.mxu2 %v5587_v49  ;;  %3329 = vmatpush.msra.mxu3 %v5677_v52 }
0x1b6d   :  { %v2414_v35 = vpop.f32.mrf.mxu2 }
0x1b6e   :  { %v2430_v20 = vmul.f32 %v2414_v35, %v5512_v19  ;;  %v2429_v5 = vsub.f32 %v5512_v19, %v2414_v35 }
0x1b70   :  { %v4034_v8 = vpack.i.bf16 %v2430_v20, %v2414_v35 }
0x1b72   :  { %4035 = vrot.lane.b32.xlu0 %v4034_v8, %s4515_s4 }
0x1b73   :  { %v2608_v28 = vpop.f32.mrf.mxu1 }
0x1b74   :  { %v2624_v6 = vmul.f32 %v2608_v28, %v5521_v26  ;;  %v2623_v25 = vsub.f32 %v5521_v26, %v2608_v28 }
0x1b76   :  { %v4039_v17 = vpack.i.bf16 %v2624_v6, %v2608_v28 }
0x1b7a   :  { %4040 = vrot.lane.b32.xlu0 %v4039_v17, %s4515_s4 }
0x1bb4   :  { %v4031_v58 = vpop.permute.xlu0 %4030 }
0x1bb5   :  { %v4033_v30 = vunpack.i.h.bf16 %v4031_v58  ;;  %v4032_v7 = vunpack.i.l.bf16 %v4031_v58 }
0x1bb7   :  { %v2621_v0 = vsel %vm256_vm6, %v5534_v40, %v4032_v7  ;;  %v2622_v27 = vsel %vm256_vm6, %v2611_v1, %v4033_v30 }
0x1bb8   :  { %2690 = vmatmul.f32.gmra.mxu2 %v2621_v0  ;;  %2719 = vmatmul.f32.gmra.mxu3 %v2622_v27 }
0x1bcb   :  { %v2688_v46 = vpop.f32.mrf.mxu2  ;;  %v2717_v10 = vpop.f32.mrf.mxu3 }
0x1be4   :  { %v4036_v62 = vpop.permute.xlu0 %4035 }
0x1be5   :  { %v4038_v39 = vunpack.i.h.bf16 %v4036_v62  ;;  %v4037_v18 = vunpack.i.l.bf16 %v4036_v62 }
0x1be7   :  { %v2439_v61 = vsel %vm256_vm6, %v5512_v19, %v4037_v18  ;;  %v2440_v11 = vsel %vm256_vm6, %v2429_v5, %v4038_v39  ;;  %v4049_v19 = vld [vmem:[%s6217_s9] ss:$0 sm:$0xff] }
0x1be8   :  { %2693 = vmatmul.f32.gmra.mxu2 %v2439_v61  ;;  %2722 = vmatmul.f32.gmra.mxu3 %v2440_v11  ;;  %v2689_v56 = vadd.f32 %v4049_v19, %v2688_v46 }
0x1bea   :  { %v2718_v14 = vadd.f32 %v2717_v10, %v2689_v56 }
0x1bec   :  { %v4041_v21 = vpop.permute.xlu0 %4040  ;;  %v2729_v54 = vmax.f32 %v2718_v14, 0.0 }
0x1bed   :  { %v4043_v40 = vunpack.i.h.bf16 %v4041_v21  ;;  %v4042_v36 = vunpack.i.l.bf16 %v4041_v21 }
0x1bee   :  { %v2779_v13 = vrot.slane %v2729_v54, 4  ;;  %v2793_v35 = vrot.slane %v2729_v54, 6  ;;  %v2801_v8 = vrot.slane %v2729_v54, 3  ;;  %v2751_v7 = vrot.slane %v2729_v54, 2 }
0x1bef   :  { %v2633_v53 = vsel %vm256_vm6, %v5521_v26, %v4042_v36  ;;  %v2634_v29 = vsel %vm256_vm6, %v2623_v25, %v4043_v40  ;;  %v2757_v0 = vrot.slane %v2729_v54, 7  ;;  %v2743_v27 = vrot.slane %v2729_v54, 5 }
0x1bf0   :  { %2696 = vmatmul.f32.gmra.mxu2 %v2633_v53  ;;  %2725 = vmatmul.f32.gmra.mxu3 %v2634_v29  ;;  %v2787_v61 = vrot.slane %v2729_v54, 1 }
0x1c3b   :  { %v2691_v48 = vpop.f32.mrf.mxu2  ;;  %v2720_v44 = vpop.f32.mrf.mxu3 }
0x1c3c   :  { %v2692_v22 = vadd.f32 %v4049_v19, %v2691_v48 }
0x1c3e   :  { %v2721_v2 = vadd.f32 %v2720_v44, %v2692_v22 }
0x1c40   :  { %v2730_v60 = vmax.f32 %v2721_v2, 0.0 }
0x1c42   :  { %v2781_v16 = vrot.slane %v2730_v60, 3  ;;  %v2795_v20 = vrot.slane %v2730_v60, 5  ;;  %v2753_v17 = vrot.slane %v2730_v60, 1  ;;  %v2734_v58 = vrot.slane %v2730_v60, 7 }
0x1c43   :  { %v2803_v18 = vrot.slane %v2730_v60, 2  ;;  %v2759_v21 = vrot.slane %v2730_v60, 6  ;;  %v2745_v40 = vrot.slane %v2730_v60, 4 }
0x1c44   :  { %v2807_v1 = vsel %vm2230_vm9, %v2779_v13, %v2781_v16  ;;  %v2814_v11 = vsel %vm2230_vm9, %v2793_v35, %v2795_v20  ;;  %v2772_v29 = vsel %vm2230_vm9, %v2751_v7, %v2753_v17  ;;  %v2765_v46 = vsel %vm2230_vm9, %v2729_v54, %v2734_v58 }
0x1c6b   :  { %v2694_v3 = vpop.f32.mrf.mxu2  ;;  %v2723_v45 = vpop.f32.mrf.mxu3 }
0x1c6c   :  { %v2695_v26 = vadd.f32 %v4049_v19, %v2694_v3 }
0x1c6e   :  { %v2724_v23 = vadd.f32 %v2723_v45, %v2695_v26 }
0x1c70   :  { %v2731_v51 = vmax.f32 %v2724_v23, 0.0 }
0x1c72   :  { %v2783_v28 = vrot.slane %v2731_v51, 2  ;;  %v2797_v39 = vrot.slane %v2731_v51, 4  ;;  %v2737_v25 = vrot.slane %v2731_v51, 6  ;;  %v2805_v53 = vrot.slane %v2731_v51, 1 }
0x1c73   :  { %v2697_v59 = vpop.f32.mrf.mxu2  ;;  %v2726_v30 = vpop.f32.mrf.mxu3  ;;  %v2761_v10 = vrot.slane %v2731_v51, 5  ;;  %v2773_v48 = vsel %vm242_vm4, %v2772_v29, %v2731_v51  ;;  %v2789_v44 = vrot.slane %v2731_v51, 7 }
0x1c74   :  { %v2698_v6 = vadd.f32 %v4049_v19, %v2697_v59  ;;  %v2808_v62 = vsel %vm242_vm4, %v2807_v1, %v2783_v28  ;;  %v2747_v19 = vrot.slane %v2731_v51, 3  ;;  %v2815_v56 = vsel %vm242_vm4, %v2814_v11, %v2797_v39 }
0x1c75   :  { %v2766_v26 = vsel %vm242_vm4, %v2765_v46, %v2737_v25 }
0x1c76   :  { %v2727_v5 = vadd.f32 %v2726_v30, %v2698_v6 }
0x1c78   :  { %v2732_v36 = vmax.f32 %v2727_v5, 0.0 }
0x1c7a   :  { %v2799_v22 = vrot.slane %v2732_v36, 3  ;;  %v2755_v2 = vrot.slane %v2732_v36, 7  ;;  %v2740_v14 = vrot.slane %v2732_v36, 5  ;;  %v2763_v3 = vrot.slane %v2732_v36, 4 }
0x1c7b   :  { %v2749_v45 = vrot.slane %v2732_v36, 2  ;;  %v2785_v23 = vrot.slane %v2732_v36, 1  ;;  %v2791_v59 = vrot.slane %v2732_v36, 6 }
0x1c7c   :  { %v2816_v16 = vsel %vm2233_vm12, %v2815_v56, %v2799_v22  ;;  %v2774_v13 = vsel %vm2233_vm12, %v2773_v48, %v2755_v2  ;;  %v2767_v54 = vsel %vm2233_vm12, %v2766_v26, %v2740_v14 }
0x1c7d   :  { %v2817_v35 = vsel %vm244_vm5, %v2816_v16, %v2801_v8  ;;  %v2775_v51 = vsel %vm244_vm5, %v2774_v13, %v2757_v0  ;;  %v2768_v20 = vsel %vm244_vm5, %v2767_v54, %v2743_v27  ;;  %v2809_v28 = vsel %vm2233_vm12, %v2808_v62, %v2785_v23 }
0x1c7e   :  { %v2818_v6 = vsel %vm2236_vm10, %v2817_v35, %v2803_v18  ;;  %v2776_v17 = vsel %vm2236_vm10, %v2775_v51, %v2759_v21  ;;  %v2769_v58 = vsel %vm2236_vm10, %v2768_v20, %v2745_v40  ;;  %v2810_v1 = vsel %vm244_vm5, %v2809_v28, %v2787_v61 }
0x1c7f   :  { %v2819_v30 = vsel %vm246_vm7, %v2818_v6, %v2805_v53  ;;  %v2777_v7 = vsel %vm246_vm7, %v2776_v17, %v2761_v10  ;;  %v2770_v8 = vsel %vm246_vm7, %v2769_v58, %v2747_v19  ;;  %v2811_v0 = vsel %vm2236_vm10, %v2810_v1, %v2730_v60 }
0x1c80   :  { %v5798_v27 = vsel %vm2239_vm11, %v2819_v30, %v2732_v36  ;;  %v5801_v62 = vsel %vm2239_vm11, %v2777_v7, %v2763_v3  ;;  %v2771_v5 = vsel %vm2239_vm11, %v2770_v8, %v2749_v45  ;;  %v2812_v39 = vsel %vm246_vm7, %v2811_v0, %v2789_v44 }
0x1c81   :  { %v2822_v18 = vrot.slane %v5798_v27, 4  ;;  %v2834_v61 = vrot.slane %v5801_v62, 4  ;;  %v2840_v11 = vrot.slane %v2771_v5, 4  ;;  %v5808_v21 = vsel %vm2239_vm11, %v2812_v39, %v2791_v59 }
0x1c83   :  { %2823 = vrot.lane.b32.xlu0 %v2822_v18, %s4514_s1  ;;  %2835 = vrot.lane.b32.xlu2 %v2834_v61, %s4514_s1 }
0x1c84   :  { %2841 = vrot.lane.b32.xlu1 %v2840_v11, %s4514_s1 }
0x1cf5   :  { %v2824_v60 = vpop.permute.xlu0 %2823 }
0x1cf6   :  { %v2826_v25 = vsel %vm224_vm3, %v2771_v5, %v2824_v60  ;;  %v2828_v5 = vrot.slane %v5808_v21, 4 }
0x1cf7   :  { %3974 = vmatmul.msk.f32.vlgmr.msrb.gmra.mxu0 %vm256_vm6, %v2826_v25  ;;  %3978 = vmatmul.msk.f32.vlgmr.msra.gmra.mxu1 %vm256_vm6, %v2826_v25 }
0x1cf8   :  { %3194 = vmatpush.msrb.mxu0 %v5562_v24  ;;  %3214 = vmatpush.msra.mxu1 %v5656_v33 }
0x1cfa   :  { %3195 = vmatpush.msrb.mxu0 %v5565_v9  ;;  %3215 = vmatpush.msra.mxu1 %v5659_v31 }
0x1cfc   :  { %3196 = vmatpush.msrb.mxu0 %v5568_v47  ;;  %3216 = vmatpush.msra.mxu1 %v5662_v15 }
0x1cfe   :  { %3197 = vmatpush.msrb.mxu0 %v5571_v34  ;;  %3217 = vmatpush.msra.mxu1 %v5665_v38 }
0x1d00   :  { %3198 = vmatpush.msrb.mxu0 %v5574_v57  ;;  %3218 = vmatpush.msra.mxu1 %v5668_v32 }
0x1d02   :  { %3199 = vmatpush.msrb.mxu0 %v5577_v43  ;;  %3219 = vmatpush.msra.mxu1 %v5671_v37 }
0x1d04   :  { %3200 = vmatpush.msrb.mxu0 %v5582_v12  ;;  %3220 = vmatpush.msra.mxu1 %v5674_v4 }
0x1d06   :  { %3201 = vmatpush.msrb.mxu0 %v5587_v49  ;;  %3221 = vmatpush.msra.mxu1 %v5677_v52 }
0x1d74   :  { %v2878_v40 = vpop.f32.mrf.mxu0  ;;  %v2907_v36 = vpop.f32.mrf.mxu1 }
0x1d75   :  { %v5833_v53 = vadd.f32 %v2878_v40, %v5199_v63  ;;  %v5836_v29 = vadd.f32 %v2907_v36, %v5201_v41  ;;  %v2836_v36 = vpop.permute.xlu2 %2835 }
0x1d77   :  { %v2919_v46 = vadd.f32 %v5833_v53, %v5210_v50  ;;  %v2920_v10 = vadd.f32 %v5836_v29, %v5212_v55 }
0x1d79   :  { %v3982_v48 = vmul.f32 -1.442695, %v2919_v46  ;;  %v3983_v19 = vmul.f32 -1.442695, %v2920_v10  ;;  %v2838_v46 = vsel %vm224_vm3, %v5808_v21, %v2836_v36 }
0x1d7b   :  { %4259 = vpow2.f32 %v3982_v48 }
0x1d7c   :  { %4261 = vpow2.f32 %v3983_v19 }
0x1d81   :  { %v4260_v44 = vpop.eup %4259 }
0x1d82   :  { %v4262_v22 = vpop.eup %4261  ;;  %v2929_v56 = vadd.f32 1.0, %v4260_v44 }
0x1d83   :  { %v2930_v2 = vadd.f32 1.0, %v4262_v22 }
0x1d84   :  { %4263 = vrcp.f32 %v2929_v56  ;;  %v2942_v50 = vand.u32 2147483648, %v2929_v56  ;;  %v2940_v55 = vand.u32 2147483647, %v2929_v56  ;;  %vm2936_vm9 = vweird.f32 %v2929_v56 }
0x1d85   :  { %4265 = vrcp.f32 %v2930_v2  ;;  %v2957_v54 = vand.u32 2147483648, %v2930_v2  ;;  %v2955_v35 = vand.u32 2147483647, %v2930_v2  ;;  %vm2951_vm10 = vweird.f32 %v2930_v2 }
0x1d86   :  { %4267 = vtanh.f32 %v2920_v10  ;;  %v2943_v20 = vor.u32 1.1754944e-38, %v2942_v50  ;;  %vm2941_vm11 = vcmp.eq.f32.partialorder %v2940_v55, 8.507059e+37  ;;  %v2842_v10 = vpop.permute.xlu1 %2841 }
0x1d87   :  { %v2958_v17 = vor.u32 1.1754944e-38, %v2957_v54  ;;  %vm2956_vm1 = vcmp.eq.f32.partialorder %v2955_v35, 8.507059e+37 }
0x1d8a   :  { %v4264_v14 = vpop.eup %4263 }
0x1d8b   :  { %v4266_v3 = vpop.eup %4265  ;;  %v2932_v45 = vmul.f32 %v4264_v14, %v2929_v56  ;;  %vm2937_vm4 = vweird.f32 %v4264_v14 }
0x1d8c   :  { %v2947_v26 = vmul.f32 %v4266_v3, %v2930_v2  ;;  %vm2952_vm7 = vweird.f32 %v4266_v3  ;;  %vm2938_vm12 = vmor %vm2936_vm9, %vm2937_vm4  ;;  %v4268_v58 = vpop.eup %4267 }
0x1d8d   :  { %v2933_v23 = vsub.f32 1.0, %v2932_v45  ;;  %vm2953_vm14 = vmor %vm2951_vm10, %vm2952_vm7 }
0x1d8e   :  { %v2948_v16 = vsub.f32 1.0, %v2947_v26 }
0x1d8f   :  { %v2934_v13 = vmul.f32 %v4264_v14, %v2933_v23 }
0x1d90   :  { %v2949_v59 = vmul.f32 %v4266_v3, %v2948_v16 }
0x1d91   :  { %v2935_v51 = vadd.f32 %v4264_v14, %v2934_v13 }
0x1d92   :  { %v2950_v28 = vadd.f32 %v4266_v3, %v2949_v59 }
0x1d93   :  { %v2939_v6 = vsel %vm2938_vm12, %v4264_v14, %v2935_v51 }
0x1d94   :  { %v2944_v1 = vsel %vm2941_vm11, %v2943_v20, %v2939_v6  ;;  %v2954_v30 = vsel %vm2953_vm14, %v4266_v3, %v2950_v28 }
0x1d95   :  { %v2959_v7 = vsel %vm2956_vm1, %v2958_v17, %v2954_v30  ;;  %v2963_v39 = vmul.f32 0.0, %v2944_v1 }
0x1d96   :  { %v2962_v8 = vsel %vm313_vm13, %v4268_v58, %v2959_v7 }
0x1d97   :  { %v2964_v0 = vmul.f32 %v2962_v8, %v2944_v1 }
0x1d99   :  { %2966 = vrot.lane.b32.xlu0 %v2964_v0, %s4515_s4 }
0x1da1   :  { %2829 = vrot.lane.b32.xlu0 %v2828_v5, %s4514_s1 }
0x1e0b   :  { %v2967_v18 = vpop.permute.xlu0 %2966 }
0x1e0c   :  { %v5847_v61 = vadd.f32 %v2967_v18, %v2963_v39 }
0x1e0e   :  { %4269 = vtanh.f32 %v5847_v61  ;;  %v3068_v39 = vrot.slane %v5847_v61, 4 }
0x1e13   :  { %v2830_v11 = vpop.permute.xlu0 %2829 }
0x1e14   :  { %v4270_v60 = vpop.eup %4269  ;;  %v2832_v25 = vsel %vm224_vm3, %v5801_v62, %v2830_v11  ;;  %v2844_v62 = vsel %vm224_vm3, %v5798_v27, %v2842_v10 }
0x1e15   :  { %3975 = vmatmul.msk.f32.gmra.mxu0 %vm256_vm6, %v2832_v25  ;;  %3979 = vmatmul.msk.f32.gmra.mxu1 %vm256_vm6, %v2832_v25  ;;  %v5854_v40 = vmul.f32 %v4270_v60, %v2962_v8 }
0x1e17   :  { %2973 = vrot.lane.b32.xlu0 %v5854_v40, %s4515_s4 }
0x1e1d   :  { %3976 = vmatmul.msk.f32.gmra.mxu0 %vm256_vm6, %v2838_v46  ;;  %3980 = vmatmul.msk.f32.gmra.mxu1 %vm256_vm6, %v2838_v46 }
0x1e25   :  { %3977 = vmatmul.msk.f32.gmra.mxu0 %vm256_vm6, %v2844_v62  ;;  %3981 = vmatmul.msk.f32.gmra.mxu1 %vm256_vm6, %v2844_v62 }
0x1e89   :  { %v5866_v48 = vpop.permute.xlu0 %2973 }
0x1e8a   :  { %3984 = vmatmul.msk.f32.vlgmr.msra.gmra.mxu0 %vm256_vm6, %v5866_v48  ;;  %3985 = vmatmul.msk.f32.vlgmr.msrb.gmra.mxu1 %vm256_vm6, %v5866_v48 }
0x1e8b   :  { %3403 = vmatpush.msra.mxu0 %v5562_v24  ;;  %3423 = vmatpush.msrb.mxu1 %v5656_v33 }
0x1e8d   :  { %3404 = vmatpush.msra.mxu0 %v5565_v9  ;;  %3424 = vmatpush.msrb.mxu1 %v5659_v31 }
0x1e8f   :  { %3405 = vmatpush.msra.mxu0 %v5568_v47  ;;  %3425 = vmatpush.msrb.mxu1 %v5662_v15 }
0x1e91   :  { %3406 = vmatpush.msra.mxu0 %v5571_v34  ;;  %3426 = vmatpush.msrb.mxu1 %v5665_v38 }
0x1e92   :  { %v5888_v27 = vpop.f32.mrf.mxu0  ;;  %v5890_v21 = vpop.f32.mrf.mxu1 }
0x1e93   :  { %3407 = vmatpush.msra.mxu0 %v5574_v57  ;;  %3427 = vmatpush.msrb.mxu1 %v5668_v32 }
0x1e95   :  { %3408 = vmatpush.msra.mxu0 %v5577_v43  ;;  %3428 = vmatpush.msrb.mxu1 %v5671_v37 }
0x1e97   :  { %3409 = vmatpush.msra.mxu0 %v5582_v12  ;;  %3429 = vmatpush.msrb.mxu1 %v5674_v4 }
0x1e99   :  { %3410 = vmatpush.msra.mxu0 %v5587_v49  ;;  %3430 = vmatpush.msrb.mxu1 %v5677_v52 }
0x1e9a   :  { %v5892_v19 = vpop.f32.mrf.mxu0  ;;  %v5894_v44 = vpop.f32.mrf.mxu1 }
0x1ea2   :  { %v5896_v22 = vpop.f32.mrf.mxu0  ;;  %v5898_v56 = vpop.f32.mrf.mxu1 }
0x1f07   :  { %v2994_v2 = vpop.f32.mrf.mxu0  ;;  %v3014_v14 = vpop.f32.mrf.mxu1 }
0x1f08   :  { %v3019_v3 = vrot.slane %v2994_v2, 4  ;;  %v3020_v45 = vrot.slane %v3014_v14, 4 }
0x1f0a   :  { %v3023_v26 = vadd.f32 %v3019_v3, %v5833_v53  ;;  %v3024_v23 = vadd.f32 %v3020_v45, %v5836_v29 }
0x1f0c   :  { %v3986_v50 = vmul.f32 -1.442695, %v3023_v26  ;;  %v3987_v16 = vmul.f32 -1.442695, %v3024_v23 }
0x1f0e   :  { %4271 = vpow2.f32 %v3986_v50 }
0x1f0f   :  { %4273 = vpow2.f32 %v3987_v16 }
0x1f14   :  { %v4272_v13 = vpop.eup %4271 }
0x1f15   :  { %v4274_v55 = vpop.eup %4273  ;;  %v3033_v54 = vadd.f32 1.0, %v4272_v13 }
0x1f16   :  { %v3034_v59 = vadd.f32 1.0, %v4274_v55 }
0x1f17   :  { %4275 = vrcp.f32 %v3033_v54  ;;  %v3046_v17 = vand.u32 2147483648, %v3033_v54  ;;  %v3044_v29 = vand.u32 2147483647, %v3033_v54  ;;  %vm3040_vm8 = vweird.f32 %v3033_v54 }
0x1f18   :  { %4277 = vrcp.f32 %v3034_v59  ;;  %v3061_v1 = vand.u32 2147483648, %v3034_v59  ;;  %v3059_v7 = vand.u32 2147483647, %v3034_v59  ;;  %vm3055_vm4 = vweird.f32 %v3034_v59 }
0x1f19   :  { %4279 = vtanh.f32 %v3024_v23  ;;  %v3047_v0 = vor.u32 1.1754944e-38, %v3046_v17  ;;  %vm3045_vm7 = vcmp.eq.f32.partialorder %v3044_v29, 8.507059e+37 }
0x1f1a   :  { %v3062_v11 = vor.u32 1.1754944e-38, %v3061_v1  ;;  %vm3060_vm12 = vcmp.eq.f32.partialorder %v3059_v7, 8.507059e+37 }
0x1f1d   :  { %v4276_v35 = vpop.eup %4275 }
0x1f1e   :  { %v4278_v51 = vpop.eup %4277  ;;  %v3036_v20 = vmul.f32 %v4276_v35, %v3033_v54  ;;  %vm3041_vm2 = vweird.f32 %v4276_v35 }
0x1f1f   :  { %v3051_v28 = vmul.f32 %v4278_v51, %v3034_v59  ;;  %vm3056_vm0 = vweird.f32 %v4278_v51  ;;  %vm3042_vm15 = vmor %vm3040_vm8, %vm3041_vm2  ;;  %v4280_v60 = vpop.eup %4279 }
0x1f20   :  { %v3037_v6 = vsub.f32 1.0, %v3036_v20  ;;  %vm3057_vm9 = vmor %vm3055_vm4, %vm3056_vm0 }
0x1f21   :  { %v3052_v53 = vsub.f32 1.0, %v3051_v28 }
0x1f22   :  { %v3038_v58 = vmul.f32 %v4276_v35, %v3037_v6 }
0x1f23   :  { %v3053_v30 = vmul.f32 %v4278_v51, %v3052_v53 }
0x1f24   :  { %v3039_v8 = vadd.f32 %v4276_v35, %v3038_v58 }
0x1f25   :  { %v3054_v5 = vadd.f32 %v4278_v51, %v3053_v30 }
0x1f26   :  { %v3043_v18 = vsel %vm3042_vm15, %v4276_v35, %v3039_v8 }
0x1f27   :  { %v3048_v25 = vsel %vm3045_vm7, %v3047_v0, %v3043_v18  ;;  %v3058_v36 = vsel %vm3057_vm9, %v4278_v51, %v3054_v5 }
0x1f28   :  { %v3063_v46 = vsel %vm3060_vm12, %v3062_v11, %v3058_v36  ;;  %v3070_v10 = vmul.f32 %v3068_v39, %v3048_v25 }
0x1f29   :  { %v3066_v62 = vsel %vm313_vm13, %v4280_v60, %v3063_v46 }
0x1f2a   :  { %v3071_v2 = vmul.f32 %v3066_v62, %v3048_v25 }
0x1f2c   :  { %3073 = vrot.lane.b32.xlu0 %v3071_v2, %s4515_s4 }
0x1f9e   :  { %v3074_v14 = vpop.permute.xlu0 %3073 }
0x1f9f   :  { %v5906_v3 = vadd.f32 %v3074_v14, %v3070_v10 }
0x1fa1   :  { %4281 = vtanh.f32 %v5906_v3  ;;  %v3170_v7 = vrot.slane %v5906_v3, 4  ;;  %v4389_v3 = vld [vmem:[#allocation5 + $0x70] sm:$0xff] }
0x1fa7   :  { %v4282_v61 = vpop.eup %4281 }
0x1fa8   :  { %v5909_v45 = vmul.f32 %v4282_v61, %v3066_v62  ;;  %v4390_v61 = vld [vmem:[#allocation5 + $0x60] sm:$0xff] }
0x1faa   :  { %v3080_v26 = vrot.slane %v5909_v45, 4 }
0x1fac   :  { %3081 = vrot.lane.b32.xlu0 %v3080_v26, %s4515_s4  ;;  %v4391_v26 = vld [vmem:[#allocation5 + $0x50] sm:$0xff] }
0x201e   :  { %v5913_v23 = vpop.permute.xlu0 %3081 }
0x201f   :  { %3988 = vmatmul.msk.f32.vlgmr.msrb.gmra.mxu2 %vm256_vm6, %v5913_v23  ;;  %3989 = vmatmul.msk.f32.vlgmr.msrb.gmra.mxu3 %vm256_vm6, %v5913_v23 }
0x2020   :  { %3511 = vmatpush.msrb.mxu2 %v5562_v24  ;;  %3531 = vmatpush.msrb.mxu3 %v5656_v33  ;;  %v5937_v24 = vadd.f32 %v5888_v27, %v5199_v63 }
0x2022   :  { %3512 = vmatpush.msrb.mxu2 %v5565_v9  ;;  %3532 = vmatpush.msrb.mxu3 %v5659_v31  ;;  %v5941_v9 = vadd.f32 %v5890_v21, %v5201_v41 }
0x2024   :  { %3513 = vmatpush.msrb.mxu2 %v5568_v47  ;;  %3533 = vmatpush.msrb.mxu3 %v5662_v15 }
0x2026   :  { %3514 = vmatpush.msrb.mxu2 %v5571_v34  ;;  %3534 = vmatpush.msrb.mxu3 %v5665_v38 }
0x2028   :  { %3515 = vmatpush.msrb.mxu2 %v5574_v57  ;;  %3535 = vmatpush.msrb.mxu3 %v5668_v32 }
0x202a   :  { %3516 = vmatpush.msrb.mxu2 %v5577_v43  ;;  %3536 = vmatpush.msrb.mxu3 %v5671_v37 }
0x202c   :  { %3517 = vmatpush.msrb.mxu2 %v5582_v12  ;;  %3537 = vmatpush.msrb.mxu3 %v5674_v4 }
0x202e   :  { %3518 = vmatpush.msrb.mxu2 %v5587_v49  ;;  %3538 = vmatpush.msrb.mxu3 %v5677_v52 }
0x20a2   :  { %v3102_v47 = vpop.f32.mrf.mxu2  ;;  %v3122_v34 = vpop.f32.mrf.mxu3 }
0x20a3   :  { %v3125_v57 = vadd.f32 %v3102_v47, %v5937_v24  ;;  %v3126_v43 = vadd.f32 %v3122_v34, %v5941_v9  ;;  %v4392_v47 = vld [vmem:[#allocation5 + $0x40] sm:$0xff]  ;;  %v4393_v34 = vld [vmem:[#allocation5 + $0x30] sm:$0xff] }
0x20a5   :  { %v3990_v12 = vmul.f32 -1.442695, %v3125_v57  ;;  %v3991_v50 = vmul.f32 -1.442695, %v3126_v43  ;;  %v4394_v57 = vld [vmem:[#allocation5 + $0x20] sm:$0xff] }
0x20a7   :  { %4283 = vpow2.f32 %v3990_v12 }
0x20a8   :  { %4285 = vpow2.f32 %v3991_v50 }
0x20ad   :  { %v4284_v49 = vpop.eup %4283 }
0x20ae   :  { %v4286_v16 = vpop.eup %4285  ;;  %v3135_v13 = vadd.f32 1.0, %v4284_v49 }
0x20af   :  { %v3136_v55 = vadd.f32 1.0, %v4286_v16 }
0x20b0   :  { %4287 = vrcp.f32 %v3135_v13  ;;  %v3148_v20 = vand.u32 2147483648, %v3135_v13  ;;  %v3146_v6 = vand.u32 2147483647, %v3135_v13  ;;  %vm3142_vm14 = vweird.f32 %v3135_v13 }
0x20b1   :  { %4289 = vrcp.f32 %v3136_v55  ;;  %v3163_v17 = vand.u32 2147483648, %v3136_v55  ;;  %v3161_v58 = vand.u32 2147483647, %v3136_v55  ;;  %vm3157_vm2 = vweird.f32 %v3136_v55 }
0x20b2   :  { %4291 = vtanh.f32 %v3126_v43  ;;  %v3149_v1 = vor.u32 1.1754944e-38, %v3148_v20  ;;  %vm3147_vm0 = vcmp.eq.f32.partialorder %v3146_v6, 8.507059e+37 }
0x20b3   :  { %v3164_v0 = vor.u32 1.1754944e-38, %v3163_v17  ;;  %vm3162_vm15 = vcmp.eq.f32.partialorder %v3161_v58, 8.507059e+37 }
0x20b6   :  { %v4288_v27 = vpop.eup %4287 }
0x20b7   :  { %v4290_v54 = vpop.eup %4289  ;;  %v3138_v21 = vmul.f32 %v4288_v27, %v3135_v13  ;;  %vm3143_vm10 = vweird.f32 %v4288_v27 }
0x20b8   :  { %v3153_v59 = vmul.f32 %v4290_v54, %v3136_v55  ;;  %vm3158_vm11 = vweird.f32 %v4290_v54  ;;  %vm3144_vm1 = vmor %vm3142_vm14, %vm3143_vm10  ;;  %v4292_v5 = vpop.eup %4291 }
0x20b9   :  { %v3139_v35 = vsub.f32 1.0, %v3138_v21  ;;  %vm3159_vm8 = vmor %vm3157_vm2, %vm3158_vm11 }
0x20ba   :  { %v3154_v51 = vsub.f32 1.0, %v3153_v59 }
0x20bb   :  { %v3140_v28 = vmul.f32 %v4288_v27, %v3139_v35 }
0x20bc   :  { %v3155_v53 = vmul.f32 %v4290_v54, %v3154_v51 }
0x20bd   :  { %v3141_v29 = vadd.f32 %v4288_v27, %v3140_v28 }
0x20be   :  { %v3156_v30 = vadd.f32 %v4290_v54, %v3155_v53 }
0x20bf   :  { %v3145_v8 = vsel %vm3144_vm1, %v4288_v27, %v3141_v29 }
0x20c0   :  { %v3150_v39 = vsel %vm3147_vm0, %v3149_v1, %v3145_v8  ;;  %v3160_v18 = vsel %vm3159_vm8, %v4290_v54, %v3156_v30 }
0x20c1   :  { %v3165_v11 = vsel %vm3162_vm15, %v3164_v0, %v3160_v18  ;;  %v3172_v60 = vmul.f32 %v3170_v7, %v3150_v39 }
0x20c2   :  { %v3168_v25 = vsel %vm313_vm13, %v4292_v5, %v3165_v11 }
0x20c3   :  { %v3173_v36 = vmul.f32 %v3168_v25, %v3150_v39 }
0x20c5   :  { %3175 = vrot.lane.b32.xlu2 %v3173_v36, %s4515_s4 }
0x211f   :  { %v3176_v46 = vpop.permute.xlu2 %3175 }
0x2120   :  { %v5949_v10 = vadd.f32 %v3176_v46, %v3172_v60 }
0x2122   :  { %4293 = vtanh.f32 %v5949_v10  ;;  %v3277_v29 = vrot.slane %v5949_v10, 4 }
0x2128   :  { %v4294_v62 = vpop.eup %4293 }
0x2129   :  { %v5952_v2 = vmul.f32 %v4294_v62, %v3168_v25 }
0x212b   :  { %3182 = vrot.lane.b32.xlu0 %v5952_v2, %s4515_s4 }
0x219d   :  { %v5956_v14 = vpop.permute.xlu0 %3182 }
0x219e   :  { %3992 = vmatmul.msk.f32.vlgmr.msrb.gmra.mxu0 %vm256_vm6, %v5956_v14  ;;  %3993 = vmatmul.msk.f32.vlgmr.msra.gmra.mxu1 %vm256_vm6, %v5956_v14 }
0x219f   :  { %3612 = vmatpush.msrb.mxu0 %v4389_v3  ;;  %3632 = vmatpush.msra.mxu1 %v5656_v33  ;;  %v4395_v33 = vld [vmem:[#allocation5 + $0x10] sm:$0xff]  ;;  %v4397_v3 = vld [vmem:[%s6216_s8 + $0x78] sm:$0xff] }
0x21a1   :  { %3613 = vmatpush.msrb.mxu0 %v4390_v61  ;;  %3633 = vmatpush.msra.mxu1 %v5659_v31  ;;  %v4396_v31 = vld [vmem:[#allocation5] sm:$0xff]  ;;  %v4398_v61 = vld [vmem:[%s6216_s8 + $0xf8] sm:$0xff] }
0x21a3   :  { %3614 = vmatpush.msrb.mxu0 %v4391_v26  ;;  %3634 = vmatpush.msra.mxu1 %v5662_v15  ;;  %v4399_v26 = vld [vmem:[%s6216_s8 + $0x70] sm:$0xff] }
0x21a5   :  { %3615 = vmatpush.msrb.mxu0 %v4392_v47  ;;  %3635 = vmatpush.msra.mxu1 %v5665_v38  ;;  %v4400_v47 = vld [vmem:[%s6216_s8 + $0xf0] sm:$0xff] }
0x21a7   :  { %3616 = vmatpush.msrb.mxu0 %v4393_v34  ;;  %3636 = vmatpush.msra.mxu1 %v5668_v32  ;;  %v4401_v34 = vld [vmem:[%s6216_s8 + $0x68] sm:$0xff] }
0x21a9   :  { %3617 = vmatpush.msrb.mxu0 %v4394_v57  ;;  %3637 = vmatpush.msra.mxu1 %v5671_v37  ;;  %v4402_v57 = vld [vmem:[%s6216_s8 + $0xe8] sm:$0xff] }
0x21ab   :  { %3618 = vmatpush.msrb.mxu0 %v4395_v33  ;;  %3638 = vmatpush.msra.mxu1 %v5674_v4  ;;  %v4403_v33 = vld [vmem:[%s6216_s8 + $0x60] sm:$0xff] }
0x21ad   :  { %3619 = vmatpush.msrb.mxu0 %v4396_v31  ;;  %3639 = vmatpush.msra.mxu1 %v5677_v52  ;;  %v4404_v31 = vld [vmem:[%s6216_s8 + $0xe0] sm:$0xff] }
0x221b   :  { %v3203_v15 = vpop.f32.mrf.mxu0  ;;  %v3223_v43 = vpop.f32.mrf.mxu1 }
0x221c   :  { %v3228_v12 = vrot.slane %v3203_v15, 4  ;;  %v3229_v38 = vrot.slane %v3223_v43, 4  ;;  %v4405_v15 = vld [vmem:[%s6216_s8 + $0x58] sm:$0xff] }
0x221d   :  { %v4406_v43 = vld [vmem:[%s6216_s8 + $0xd8] sm:$0xff] }
0x221e   :  { %v3232_v50 = vadd.f32 %v3228_v12, %v5937_v24  ;;  %v3233_v32 = vadd.f32 %v3229_v38, %v5941_v9  ;;  %v4407_v12 = vld [vmem:[%s6216_s8 + $0x50] sm:$0xff] }
0x221f   :  { %v4408_v38 = vld [vmem:[%s6216_s8 + $0xd0] sm:$0xff] }
0x2220   :  { %v3994_v49 = vmul.f32 -1.442695, %v3232_v50  ;;  %v3995_v16 = vmul.f32 -1.442695, %v3233_v32  ;;  %v4409_v50 = vld [vmem:[%s6216_s8 + $0x48] sm:$0xff] }
0x2222   :  { %4295 = vpow2.f32 %v3994_v49  ;;  %v4411_v49 = vld [vmem:[%s6216_s8 + $0x40] sm:$0xff] }
0x2223   :  { %4297 = vpow2.f32 %v3995_v16  ;;  %v4412_v16 = vld [vmem:[%s6216_s8 + $0xc0] sm:$0xff] }
0x2228   :  { %v4296_v37 = vpop.eup %4295 }
0x2229   :  { %v4298_v13 = vpop.eup %4297  ;;  %v3242_v55 = vadd.f32 1.0, %v4296_v37  ;;  %v4413_v37 = vld [vmem:[%s6216_s8 + $0x38] sm:$0xff] }
0x222a   :  { %v3243_v4 = vadd.f32 1.0, %v4298_v13  ;;  %v4414_v13 = vld [vmem:[%s6216_s8 + $0xb8] sm:$0xff] }
0x222b   :  { %4299 = vrcp.f32 %v3242_v55  ;;  %v3255_v35 = vand.u32 2147483648, %v3242_v55  ;;  %v3253_v9 = vand.u32 2147483647, %v3242_v55  ;;  %vm3249_vm9 = vweird.f32 %v3242_v55 }
0x222c   :  { %4301 = vrcp.f32 %v3243_v4  ;;  %v3270_v20 = vand.u32 2147483648, %v3243_v4  ;;  %v3268_v6 = vand.u32 2147483647, %v3243_v4  ;;  %vm3264_vm10 = vweird.f32 %v3243_v4 }
0x222d   :  { %4303 = vtanh.f32 %v3233_v32  ;;  %v3256_v53 = vor.u32 1.1754944e-38, %v3255_v35  ;;  %vm3254_vm11 = vcmp.eq.f32.partialorder %v3253_v9, 8.507059e+37  ;;  %v4410_v32 = vld [vmem:[%s6216_s8 + $0xc8] sm:$0xff]  ;;  %v4422_v35 = vld [vmem:[%s6216_s8 + $0x98] sm:$0xff] }
0x222e   :  { %v3271_v30 = vor.u32 1.1754944e-38, %v3270_v20  ;;  %vm3269_vm1 = vcmp.eq.f32.partialorder %v3268_v6, 8.507059e+37  ;;  %v4425_v9 = vld [vmem:[%s6216_s8 + $0x8] sm:$0xff]  ;;  %v4428_v6 = vld [vmem:[%s6216_s8 + $0x80] sm:$0xff] }
0x222f   :  { %v4426_v20 = vld [vmem:[%s6216_s8 + $0x88] sm:$0xff] }
0x2231   :  { %v4300_v27 = vpop.eup %4299 }
0x2232   :  { %v4302_v52 = vpop.eup %4301  ;;  %v3245_v54 = vmul.f32 %v4300_v27, %v3242_v55  ;;  %vm3250_vm4 = vweird.f32 %v4300_v27  ;;  %v4415_v55 = vld [vmem:[%s6216_s8 + $0x30] sm:$0xff] }
0x2233   :  { %v3260_v21 = vmul.f32 %v4302_v52, %v3243_v4  ;;  %vm3265_vm7 = vweird.f32 %v4302_v52  ;;  %vm3251_vm12 = vmor %vm3249_vm9, %vm3250_vm4  ;;  %v4304_v7 = vpop.eup %4303  ;;  %v4416_v4 = vld [vmem:[%s6216_s8 + $0xb0] sm:$0xff] }
0x2234   :  { %v3246_v59 = vsub.f32 1.0, %v3245_v54  ;;  %vm3266_vm14 = vmor %vm3264_vm10, %vm3265_vm7  ;;  %v4419_v54 = vld [vmem:[%s6216_s8 + $0x20] sm:$0xff] }
0x2235   :  { %v3261_v24 = vsub.f32 1.0, %v3260_v21  ;;  %v4420_v21 = vld [vmem:[%s6216_s8 + $0xa0] sm:$0xff] }
0x2236   :  { %v3247_v51 = vmul.f32 %v4300_v27, %v3246_v59  ;;  %v4421_v59 = vld [vmem:[%s6216_s8 + $0x18] sm:$0xff] }
0x2237   :  { %v3262_v28 = vmul.f32 %v4302_v52, %v3261_v24  ;;  %v4423_v24 = vld [vmem:[%s6216_s8 + $0x10] sm:$0xff] }
0x2238   :  { %v3248_v17 = vadd.f32 %v4300_v27, %v3247_v51  ;;  %v4424_v51 = vld [vmem:[%s6216_s8 + $0x90] sm:$0xff] }
0x2239   :  { %v3263_v58 = vadd.f32 %v4302_v52, %v3262_v28  ;;  %v4427_v28 = vld [vmem:[%s6216_s8] sm:$0xff] }
0x223a   :  { %v3252_v1 = vsel %vm3251_vm12, %v4300_v27, %v3248_v17  ;;  %v4417_v27 = vld [vmem:[%s6216_s8 + $0x28] sm:$0xff]  ;;  %v6087_v17 = vadd.f32 %v5892_v19, %v5199_v63 }
0x223b   :  { %v3257_v8 = vsel %vm3254_vm11, %v3256_v53, %v3252_v1  ;;  %v3267_v0 = vsel %vm3266_vm14, %v4302_v52, %v3263_v58  ;;  %v4418_v52 = vld [vmem:[%s6216_s8 + $0xa8] sm:$0xff]  ;;  %v6091_v53 = vadd.f32 %v5894_v44, %v5201_v41 }
0x223c   :  { %v3272_v5 = vsel %vm3269_vm1, %v3271_v30, %v3267_v0  ;;  %v3279_v39 = vmul.f32 %v3277_v29, %v3257_v8 }
0x223d   :  { %v3275_v18 = vsel %vm313_vm13, %v4304_v7, %v3272_v5 }
0x223e   :  { %v3280_v11 = vmul.f32 %v3275_v18, %v3257_v8 }
0x2240   :  { %3282 = vrot.lane.b32.xlu1 %v3280_v11, %s4515_s4 }
0x22b2   :  { %v3283_v60 = vpop.permute.xlu1 %3282 }
0x22b3   :  { %v5976_v25 = vadd.f32 %v3283_v60, %v3279_v39 }
0x22b5   :  { %4305 = vtanh.f32 %v5976_v25 }
0x22bb   :  { %v4306_v36 = vpop.eup %4305 }
0x22bc   :  { %v5979_v46 = vmul.f32 %v4306_v36, %v3275_v18 }
0x22be   :  { %v3289_v10 = vrot.slane %v5979_v46, 4 }
0x22c0   :  { %3290 = vrot.lane.b32.xlu2 %v3289_v10, %s4515_s4 }
0x231a   :  { %v5983_v62 = vpop.permute.xlu2 %3290 }
0x231b   :  { %3996 = vmatmul.msk.f32.vlgmr.msra.gmra.mxu2 %vm256_vm6, %v5983_v62  ;;  %3997 = vmatmul.msk.f32.vlgmr.msra.gmra.mxu3 %vm256_vm6, %v5983_v62 }
0x231c   :  { %3798 = vmatpush.msra.mxu2 %v4397_v3  ;;  %3818 = vmatpush.msra.mxu3 %v4398_v61 }
0x231e   :  { %3799 = vmatpush.msra.mxu2 %v4399_v26  ;;  %3819 = vmatpush.msra.mxu3 %v4400_v47 }
0x2320   :  { %3800 = vmatpush.msra.mxu2 %v4401_v34  ;;  %3820 = vmatpush.msra.mxu3 %v4402_v57 }
0x2322   :  { %3801 = vmatpush.msra.mxu2 %v4403_v33  ;;  %3821 = vmatpush.msra.mxu3 %v4404_v31 }
0x2324   :  { %3802 = vmatpush.msra.mxu2 %v4405_v15  ;;  %3822 = vmatpush.msra.mxu3 %v4406_v43  ;;  %v3379_v43 = vrot.slane %v5976_v25, 4 }
0x2326   :  { %3803 = vmatpush.msra.mxu2 %v4407_v12  ;;  %3823 = vmatpush.msra.mxu3 %v4408_v38 }
0x2328   :  { %3804 = vmatpush.msra.mxu2 %v4409_v50  ;;  %3824 = vmatpush.msra.mxu3 %v4410_v32 }
0x232a   :  { %3805 = vmatpush.msra.mxu2 %v4411_v49  ;;  %3825 = vmatpush.msra.mxu3 %v4412_v16 }
0x232c   :  { %3806 = vmatpush.msra.mxu2 %v4413_v37  ;;  %3826 = vmatpush.msra.mxu3 %v4414_v13 }
0x232e   :  { %3807 = vmatpush.msra.mxu2 %v4415_v55  ;;  %3827 = vmatpush.msra.mxu3 %v4416_v4 }
0x2330   :  { %3808 = vmatpush.msra.mxu2 %v4417_v27  ;;  %3828 = vmatpush.msra.mxu3 %v4418_v52 }
0x2332   :  { %3809 = vmatpush.msra.mxu2 %v4419_v54  ;;  %3829 = vmatpush.msra.mxu3 %v4420_v21 }
0x2334   :  { %3810 = vmatpush.msra.mxu2 %v4421_v59  ;;  %3830 = vmatpush.msra.mxu3 %v4422_v35 }
0x2336   :  { %3811 = vmatpush.msra.mxu2 %v4423_v24  ;;  %3831 = vmatpush.msra.mxu3 %v4424_v51 }
0x2338   :  { %3812 = vmatpush.msra.mxu2 %v4425_v9  ;;  %3832 = vmatpush.msra.mxu3 %v4426_v20 }
0x233a   :  { %3813 = vmatpush.msra.mxu2 %v4427_v28  ;;  %3833 = vmatpush.msra.mxu3 %v4428_v6 }
0x239e   :  { %v3311_v58 = vpop.f32.mrf.mxu2  ;;  %v3331_v29 = vpop.f32.mrf.mxu3 }
0x239f   :  { %v3334_v1 = vadd.f32 %v3311_v58, %v6087_v17  ;;  %v3335_v30 = vadd.f32 %v3331_v29, %v6091_v53 }
0x23a1   :  { %v3998_v7 = vmul.f32 -1.442695, %v3334_v1  ;;  %v3999_v8 = vmul.f32 -1.442695, %v3335_v30 }
0x23a3   :  { %4307 = vpow2.f32 %v3998_v7 }
0x23a4   :  { %4309 = vpow2.f32 %v3999_v8 }
0x23a9   :  { %v4308_v0 = vpop.eup %4307 }
0x23aa   :  { %v4310_v5 = vpop.eup %4309  ;;  %v3344_v39 = vadd.f32 1.0, %v4308_v0 }
0x23ab   :  { %v3345_v18 = vadd.f32 1.0, %v4310_v5 }
0x23ac   :  { %4311 = vrcp.f32 %v3344_v39  ;;  %v3357_v3 = vand.u32 2147483648, %v3344_v39  ;;  %v3355_v26 = vand.u32 2147483647, %v3344_v39  ;;  %vm3351_vm8 = vweird.f32 %v3344_v39 }
0x23ad   :  { %4313 = vrcp.f32 %v3345_v18  ;;  %v3372_v47 = vand.u32 2147483648, %v3345_v18  ;;  %v3370_v57 = vand.u32 2147483647, %v3345_v18  ;;  %vm3366_vm4 = vweird.f32 %v3345_v18 }
0x23ae   :  { %4315 = vtanh.f32 %v3335_v30  ;;  %v3358_v31 = vor.u32 1.1754944e-38, %v3357_v3  ;;  %vm3356_vm7 = vcmp.eq.f32.partialorder %v3355_v26, 8.507059e+37 }
0x23af   :  { %v3373_v38 = vor.u32 1.1754944e-38, %v3372_v47  ;;  %vm3371_vm12 = vcmp.eq.f32.partialorder %v3370_v57, 8.507059e+37 }
0x23b2   :  { %v4312_v19 = vpop.eup %4311 }
0x23b3   :  { %v4314_v11 = vpop.eup %4313  ;;  %v3347_v44 = vmul.f32 %v4312_v19, %v3344_v39  ;;  %vm3352_vm2 = vweird.f32 %v4312_v19 }
0x23b4   :  { %v3362_v60 = vmul.f32 %v4314_v11, %v3345_v18  ;;  %vm3367_vm0 = vweird.f32 %v4314_v11  ;;  %vm3353_vm15 = vmor %vm3351_vm8, %vm3352_vm2  ;;  %v4316_v50 = vpop.eup %4315 }
0x23b5   :  { %v3348_v36 = vsub.f32 1.0, %v3347_v44  ;;  %vm3368_vm9 = vmor %vm3366_vm4, %vm3367_vm0 }
0x23b6   :  { %v3363_v10 = vsub.f32 1.0, %v3362_v60 }
0x23b7   :  { %v3349_v61 = vmul.f32 %v4312_v19, %v3348_v36 }
0x23b8   :  { %v3364_v34 = vmul.f32 %v4314_v11, %v3363_v10 }
0x23b9   :  { %v3350_v33 = vadd.f32 %v4312_v19, %v3349_v61 }
0x23ba   :  { %v3365_v15 = vadd.f32 %v4314_v11, %v3364_v34 }
0x23bb   :  { %v3354_v12 = vsel %vm3353_vm15, %v4312_v19, %v3350_v33 }
0x23bc   :  { %v3359_v32 = vsel %vm3356_vm7, %v3358_v31, %v3354_v12  ;;  %v3369_v49 = vsel %vm3368_vm9, %v4314_v11, %v3365_v15 }
0x23bd   :  { %v3374_v16 = vsel %vm3371_vm12, %v3373_v38, %v3369_v49  ;;  %v3381_v37 = vmul.f32 %v3379_v43, %v3359_v32 }
0x23be   :  { %v3377_v13 = vsel %vm313_vm13, %v4316_v50, %v3374_v16 }
0x23bf   :  { %v3382_v55 = vmul.f32 %v3377_v13, %v3359_v32 }
0x23c1   :  { %3384 = vrot.lane.b32.xlu0 %v3382_v55, %s4515_s4 }
0x2433   :  { %v3385_v4 = vpop.permute.xlu0 %3384 }
0x2434   :  { %v3387_v27 = vadd.f32 %v3385_v4, %v3381_v37  ;;  %v6126_v37 = vadd.f32 %v5896_v22, %v5199_v63 }
0x2436   :  { %4317 = vtanh.f32 %v3387_v27  ;;  %v3486_v3 = vrot.slane %v3387_v27, 4 }
0x243c   :  { %v4318_v25 = vpop.eup %4317 }
0x243d   :  { %v6099_v52 = vmul.f32 %v4318_v25, %v3377_v13  ;;  %v6130_v13 = vadd.f32 %v5898_v56, %v5201_v41 }
0x243f   :  { %3391 = vrot.lane.b32.xlu1 %v6099_v52, %s4515_s4 }
0x24b1   :  { %v6103_v54 = vpop.permute.xlu1 %3391 }
0x24b2   :  { %4000 = vmatmul.msk.f32.vlgmr.msra.gmra.mxu0 %vm256_vm6, %v6103_v54  ;;  %4001 = vmatmul.msk.f32.vlgmr.msrb.gmra.mxu1 %vm256_vm6, %v6103_v54 }
0x252f   :  { %v3412_v21 = vpop.f32.mrf.mxu0  ;;  %v3432_v59 = vpop.f32.mrf.mxu1 }
0x2530   :  { %v3437_v35 = vrot.slane %v3412_v21, 4  ;;  %v3438_v24 = vrot.slane %v3432_v59, 4 }
0x2532   :  { %v3441_v51 = vadd.f32 %v3437_v35, %v6087_v17  ;;  %v3442_v9 = vadd.f32 %v3438_v24, %v6091_v53 }
0x2534   :  { %v4002_v20 = vmul.f32 -1.442695, %v3441_v51  ;;  %v4003_v28 = vmul.f32 -1.442695, %v3442_v9 }
0x2536   :  { %4319 = vpow2.f32 %v4002_v20 }
0x2537   :  { %4321 = vpow2.f32 %v4003_v28 }
0x253c   :  { %v4320_v6 = vpop.eup %4319 }
0x253d   :  { %v4322_v58 = vpop.eup %4321  ;;  %v3451_v29 = vadd.f32 1.0, %v4320_v6 }
0x253e   :  { %v3452_v1 = vadd.f32 1.0, %v4322_v58 }
0x253f   :  { %4323 = vrcp.f32 %v3451_v29  ;;  %v3464_v39 = vand.u32 2147483648, %v3451_v29  ;;  %v3462_v53 = vand.u32 2147483647, %v3451_v29  ;;  %vm3458_vm14 = vweird.f32 %v3451_v29 }
0x2540   :  { %4325 = vrcp.f32 %v3452_v1  ;;  %v3479_v19 = vand.u32 2147483648, %v3452_v1  ;;  %v3477_v44 = vand.u32 2147483647, %v3452_v1  ;;  %vm3473_vm2 = vweird.f32 %v3452_v1 }
0x2541   :  { %4327 = vtanh.f32 %v3442_v9  ;;  %v3465_v36 = vor.u32 1.1754944e-38, %v3464_v39  ;;  %vm3463_vm0 = vcmp.eq.f32.partialorder %v3462_v53, 8.507059e+37 }
0x2542   :  { %v3480_v26 = vor.u32 1.1754944e-38, %v3479_v19  ;;  %vm3478_vm15 = vcmp.eq.f32.partialorder %v3477_v44, 8.507059e+37 }
0x2545   :  { %v4324_v30 = vpop.eup %4323 }
0x2546   :  { %v4326_v7 = vpop.eup %4325  ;;  %v3454_v8 = vmul.f32 %v4324_v30, %v3451_v29  ;;  %vm3459_vm10 = vweird.f32 %v4324_v30 }
0x2547   :  { %v3469_v0 = vmul.f32 %v4326_v7, %v3452_v1  ;;  %vm3474_vm11 = vweird.f32 %v4326_v7  ;;  %vm3460_vm1 = vmor %vm3458_vm14, %vm3459_vm10  ;;  %v4328_v47 = vpop.eup %4327 }
0x2548   :  { %v3455_v5 = vsub.f32 1.0, %v3454_v8  ;;  %vm3475_vm8 = vmor %vm3473_vm2, %vm3474_vm11 }
0x2549   :  { %v3470_v17 = vsub.f32 1.0, %v3469_v0 }
0x254a   :  { %v3456_v18 = vmul.f32 %v4324_v30, %v3455_v5 }
0x254b   :  { %v3471_v11 = vmul.f32 %v4326_v7, %v3470_v17 }
0x254c   :  { %v3457_v60 = vadd.f32 %v4324_v30, %v3456_v18 }
0x254d   :  { %v3472_v10 = vadd.f32 %v4326_v7, %v3471_v11 }
0x254e   :  { %v3461_v61 = vsel %vm3460_vm1, %v4324_v30, %v3457_v60 }
0x254f   :  { %v3466_v34 = vsel %vm3463_vm0, %v3465_v36, %v3461_v61  ;;  %v3476_v57 = vsel %vm3475_vm8, %v4326_v7, %v3472_v10 }
0x2550   :  { %v3481_v33 = vsel %vm3478_vm15, %v3480_v26, %v3476_v57  ;;  %v3488_v31 = vmul.f32 %v3486_v3, %v3466_v34 }
0x2551   :  { %v3484_v15 = vsel %vm313_vm13, %v4328_v47, %v3481_v33 }
0x2552   :  { %v3489_v43 = vmul.f32 %v3484_v15, %v3466_v34  ;;  %v3727_v34 = vrot.slane %v6099_v52, 4 }
0x2554   :  { %3491 = vrot.lane.b32.xlu2 %v3489_v43, %s4515_s4 }
0x25ae   :  { %v3492_v12 = vpop.permute.xlu2 %3491 }
0x25af   :  { %v3494_v38 = vadd.f32 %v3492_v12, %v3488_v31 }
0x25b1   :  { %4329 = vtanh.f32 %v3494_v38  ;;  %v3588_v39 = vrot.slane %v3494_v38, 4 }
0x25b7   :  { %v4330_v50 = vpop.eup %4329 }
0x25b8   :  { %v6114_v32 = vmul.f32 %v4330_v50, %v3484_v15 }
0x25ba   :  { %v3498_v49 = vrot.slane %v6114_v32, 4 }
0x25bc   :  { %3499 = vrot.lane.b32.xlu0 %v3498_v49, %s4515_s4 }
0x262e   :  { %v6118_v16 = vpop.permute.xlu0 %3499 }
0x262f   :  { %4004 = vmatmul.msk.f32.vlgmr.msrb.gmra.mxu2 %vm256_vm6, %v6118_v16  ;;  %4005 = vmatmul.msk.f32.vlgmr.msrb.gmra.mxu3 %vm256_vm6, %v6118_v16 }
0x26b2   :  { %v3520_v55 = vpop.f32.mrf.mxu2  ;;  %v3540_v4 = vpop.f32.mrf.mxu3 }
0x26b3   :  { %v3543_v27 = vadd.f32 %v3520_v55, %v6126_v37  ;;  %v3544_v25 = vadd.f32 %v3540_v4, %v6130_v13 }
0x26b5   :  { %v4006_v21 = vmul.f32 -1.442695, %v3543_v27  ;;  %v4007_v59 = vmul.f32 -1.442695, %v3544_v25 }
0x26b7   :  { %4331 = vpow2.f32 %v4006_v21 }
0x26b8   :  { %4333 = vpow2.f32 %v4007_v59 }
0x26bd   :  { %v4332_v35 = vpop.eup %4331 }
0x26be   :  { %v4334_v24 = vpop.eup %4333  ;;  %v3553_v51 = vadd.f32 1.0, %v4332_v35 }
0x26bf   :  { %v3554_v9 = vadd.f32 1.0, %v4334_v24 }
0x26c0   :  { %4335 = vrcp.f32 %v3553_v51  ;;  %v3566_v6 = vand.u32 2147483648, %v3553_v51  ;;  %v3564_v29 = vand.u32 2147483647, %v3553_v51  ;;  %vm3560_vm9 = vweird.f32 %v3553_v51 }
0x26c1   :  { %4337 = vrcp.f32 %v3554_v9  ;;  %v3581_v1 = vand.u32 2147483648, %v3554_v9  ;;  %v3579_v7 = vand.u32 2147483647, %v3554_v9  ;;  %vm3575_vm10 = vweird.f32 %v3554_v9 }
0x26c2   :  { %4339 = vtanh.f32 %v3544_v25  ;;  %v3567_v0 = vor.u32 1.1754944e-38, %v3566_v6  ;;  %vm3565_vm11 = vcmp.eq.f32.partialorder %v3564_v29, 8.507059e+37 }
0x26c3   :  { %v3582_v18 = vor.u32 1.1754944e-38, %v3581_v1  ;;  %vm3580_vm1 = vcmp.eq.f32.partialorder %v3579_v7, 8.507059e+37 }
0x26c6   :  { %v4336_v63 = vpop.eup %4335 }
0x26c7   :  { %v4338_v22 = vpop.eup %4337  ;;  %v3556_v41 = vmul.f32 %v4336_v63, %v3553_v51  ;;  %vm3561_vm4 = vweird.f32 %v4336_v63 }
0x26c8   :  { %v3571_v56 = vmul.f32 %v4338_v22, %v3554_v9  ;;  %vm3576_vm7 = vweird.f32 %v4338_v22  ;;  %vm3562_vm12 = vmor %vm3560_vm9, %vm3561_vm4  ;;  %v4340_v53 = vpop.eup %4339 }
0x26c9   :  { %v3557_v20 = vsub.f32 1.0, %v3556_v41  ;;  %vm3577_vm14 = vmor %vm3575_vm10, %vm3576_vm7 }
0x26ca   :  { %v3572_v28 = vsub.f32 1.0, %v3571_v56 }
0x26cb   :  { %v3558_v58 = vmul.f32 %v4336_v63, %v3557_v20 }
0x26cc   :  { %v3573_v30 = vmul.f32 %v4338_v22, %v3572_v28 }
0x26cd   :  { %v3559_v8 = vadd.f32 %v4336_v63, %v3558_v58 }
0x26ce   :  { %v3574_v5 = vadd.f32 %v4338_v22, %v3573_v30 }
0x26cf   :  { %v3563_v17 = vsel %vm3562_vm12, %v4336_v63, %v3559_v8 }
0x26d0   :  { %v3568_v19 = vsel %vm3565_vm11, %v3567_v0, %v3563_v17  ;;  %v3578_v11 = vsel %vm3577_vm14, %v4338_v22, %v3574_v5 }
0x26d1   :  { %v3583_v44 = vsel %vm3580_vm1, %v3582_v18, %v3578_v11  ;;  %v3590_v60 = vmul.f32 %v3588_v39, %v3568_v19  ;;  %v3749_v39 = vrot.slane %v5854_v40, 4  ;;  %v3738_v11 = vrot.slane %v5952_v2, 4 }
0x26d2   :  { %v3586_v36 = vsel %vm313_vm13, %v4340_v53, %v3583_v44  ;;  %v3723_v2 = vsel %vm224_vm3, %v5956_v14, %v6118_v16 }
0x26d3   :  { %v3591_v10 = vmul.f32 %v3586_v36, %v3568_v19 }
0x26d5   :  { %3593 = vrot.lane.b32.xlu1 %v3591_v10, %s4515_s4 }
0x26dd   :  { %3724 = vrot.lane.b32.xlu1 %v5979_v46, %s4515_s4 }
0x2747   :  { %v3594_v3 = vpop.permute.xlu1 %3593 }
0x2748   :  { %v3596_v61 = vadd.f32 %v3594_v3, %v3590_v60 }
0x274a   :  { %4341 = vtanh.f32 %v3596_v61  ;;  %v3695_v20 = vrot.slane %v3596_v61, 4 }
0x274f   :  { %v3725_v60 = vpop.permute.xlu1 %3724 }
0x2750   :  { %v4342_v26 = vpop.eup %4341 }
0x2751   :  { %v3598_v47 = vmul.f32 %v4342_v26, %v3586_v36 }
0x2753   :  { %3600 = vrot.lane.b32.xlu2 %v3598_v47, %s4515_s4  ;;  %v3716_v5 = vrot.slane %v3598_v47, 4 }
0x275b   :  { %3713 = vrot.lane.b32.xlu2 %v5909_v45, %s4515_s4 }
0x2763   :  { %3728 = vrot.lane.b32.xlu2 %v3727_v34, %s4515_s4 }
0x27ad   :  { %v6144_v57 = vpop.permute.xlu2 %3600 }
0x27ae   :  { %4008 = vmatmul.msk.f32.vlgmr.msrb.gmra.mxu0 %vm256_vm6, %v6144_v57  ;;  %4009 = vmatmul.msk.f32.vlgmr.msra.gmra.mxu1 %vm256_vm6, %v6144_v57 }
0x27b5   :  { %v3714_v44 = vpop.permute.xlu2 %3713 }
0x27bd   :  { %v3729_v40 = vpop.permute.xlu2 %3728 }
0x27be   :  { %v3731_v3 = vsel %vm224_vm3, %v3725_v60, %v3729_v40 }
0x282b   :  { %v3621_v46 = vpop.f32.mrf.mxu0  ;;  %v3641_v33 = vpop.f32.mrf.mxu1 }
0x282c   :  { %v3646_v31 = vrot.slane %v3621_v46, 4  ;;  %v3647_v15 = vrot.slane %v3641_v33, 4  ;;  %v3755_v46 = vsel %vm244_vm5, %v3723_v2, %v3731_v3 }
0x282e   :  { %v3650_v43 = vadd.f32 %v3646_v31, %v6126_v37  ;;  %v3651_v45 = vadd.f32 %v3647_v15, %v6130_v13 }
0x2830   :  { %v4010_v12 = vmul.f32 -1.442695, %v3650_v43  ;;  %v4011_v52 = vmul.f32 -1.442695, %v3651_v45  ;;  %v3766_v43 = vrot.slane %v3755_v46, 4 }
0x2832   :  { %4343 = vpow2.f32 %v4010_v12 }
0x2833   :  { %4345 = vpow2.f32 %v4011_v52  ;;  %v3734_v52 = vsel %vm224_vm3, %v6103_v54, %v5983_v62 }
0x2838   :  { %v4344_v38 = vpop.eup %4343 }
0x2839   :  { %v4346_v50 = vpop.eup %4345  ;;  %v3660_v49 = vadd.f32 1.0, %v4344_v38 }
0x283a   :  { %v3661_v55 = vadd.f32 1.0, %v4346_v50 }
0x283b   :  { %4347 = vrcp.f32 %v3660_v49  ;;  %v3673_v35 = vand.u32 2147483648, %v3660_v49  ;;  %v3671_v13 = vand.u32 2147483647, %v3660_v49  ;;  %vm3667_vm8 = vweird.f32 %v3660_v49 }
0x283c   :  { %4349 = vrcp.f32 %v3661_v55  ;;  %v3688_v51 = vand.u32 2147483648, %v3661_v55  ;;  %v3686_v63 = vand.u32 2147483647, %v3661_v55  ;;  %vm3682_vm4 = vweird.f32 %v3661_v55 }
0x283d   :  { %4351 = vtanh.f32 %v3651_v45  ;;  %v3674_v41 = vor.u32 1.1754944e-38, %v3673_v35  ;;  %vm3672_vm7 = vcmp.eq.f32.partialorder %v3671_v13, 8.507059e+37 }
0x283e   :  { %v3689_v6 = vor.u32 1.1754944e-38, %v3688_v51  ;;  %vm3687_vm12 = vcmp.eq.f32.partialorder %v3686_v63, 8.507059e+37 }
0x2841   :  { %v4348_v4 = vpop.eup %4347 }
0x2842   :  { %v4350_v27 = vpop.eup %4349  ;;  %v3663_v25 = vmul.f32 %v4348_v4, %v3660_v49  ;;  %vm3668_vm2 = vweird.f32 %v4348_v4 }
0x2843   :  { %v3678_v21 = vmul.f32 %v4350_v27, %v3661_v55  ;;  %vm3683_vm0 = vweird.f32 %v4350_v27  ;;  %vm3669_vm15 = vmor %vm3667_vm8, %vm3668_vm2  ;;  %v4352_v58 = vpop.eup %4351 }
0x2844   :  { %v3664_v59 = vsub.f32 1.0, %v3663_v25  ;;  %vm3684_vm9 = vmor %vm3682_vm4, %vm3683_vm0 }
0x2845   :  { %v3679_v37 = vsub.f32 1.0, %v3678_v21 }
0x2846   :  { %v3665_v24 = vmul.f32 %v4348_v4, %v3664_v59 }
0x2847   :  { %v3680_v9 = vmul.f32 %v4350_v27, %v3679_v37 }
0x2848   :  { %v3666_v22 = vadd.f32 %v4348_v4, %v3665_v24 }
0x2849   :  { %v3681_v56 = vadd.f32 %v4350_v27, %v3680_v9 }
0x284a   :  { %v3670_v28 = vsel %vm3669_vm15, %v4348_v4, %v3666_v22  ;;  %v3745_v4 = vsel %vm224_vm3, %v6144_v57, %v5913_v23 }
0x284b   :  { %v3675_v29 = vsel %vm3672_vm7, %v3674_v41, %v3670_v28  ;;  %v3685_v1 = vsel %vm3684_vm9, %v4350_v27, %v3681_v56 }
0x284c   :  { %v3690_v30 = vsel %vm3687_vm12, %v3689_v6, %v3685_v1  ;;  %v3697_v7 = vmul.f32 %v3695_v20, %v3675_v29  ;;  %v3842_v6 = vld [vmem:[%s6218_s10 + $0x18] sm:$0xff]  ;;  %v3839_v1 = vld [vmem:[%s6218_s10] sm:$0xff] }
0x284d   :  { %v3693_v8 = vsel %vm313_vm13, %v4352_v58, %v3690_v30  ;;  %3862 = vmatpush.msra.mxu0 %v3842_v6  ;;  %v3841_v58 = vld [vmem:[%s6218_s10 + $0x10] sm:$0xff] }
0x284e   :  { %v3698_v0 = vmul.f32 %v3693_v8, %v3675_v29  ;;  %v3840_v29 = vld [vmem:[%s6218_s10 + $0x8] sm:$0xff]  ;;  %s3877_s10 = sshll.u32 %s4516_s15, 4  ;;  %s3878_s10 = int_to_ptr.vmem [resolvable:$true] %s3877_s10 }
0x284f   :  { %3863 = vmatpush.msra.mxu0 %v3841_v58 }
0x2850   :  { %3700 = vrot.lane.b32.xlu0 %v3698_v0, %s4515_s4 }
0x2851   :  { %3864 = vmatpush.msra.mxu0 %v3840_v29 }
0x2853   :  { %3865 = vmatpush.msra.mxu0 %v3839_v1 }
0x2858   :  { %3717 = vrot.lane.b32.xlu0 %v3716_v5, %s4515_s4 }
0x2860   :  { %3735 = vrot.lane.b32.xlu0 %v6114_v32, %s4515_s4 }
0x2868   :  { %3750 = vrot.lane.b32.xlu0 %v3749_v39, %s4515_s4 }
0x28c2   :  { %v3701_v17 = vpop.permute.xlu0 %3700 }
0x28c3   :  { %v3703_v18 = vadd.f32 %v3701_v17, %v3697_v7  ;;  %v4429_v7 = vld [vmem:[%s6217_s9] ss:$0 sm:$0xff] }
0x28c4   :  { %v4050_v17 = vld [vmem:[%s6219_s11] ss:$0 sm:$0xff] }
0x28c5   :  { %4353 = vtanh.f32 %v3703_v18 }
0x28ca   :  { %v3718_v32 = vpop.permute.xlu0 %3717 }
0x28cb   :  { %v4354_v53 = vpop.eup %4353  ;;  %v3720_v61 = vsel %vm224_vm3, %v3714_v44, %v3718_v32 }
0x28cc   :  { %v3705_v19 = vmul.f32 %v4354_v53, %v3693_v8 }
0x28ce   :  { %3746 = vrot.lane.b32.xlu2 %v3705_v19, %s4515_s4  ;;  %v3708_v42 = vrot.slane %v3705_v19, 4 }
0x28d0   :  { %3709 = vrot.lane.b32.xlu1 %v3708_v42, %s4515_s4 }
0x28d2   :  { %v3736_v36 = vpop.permute.xlu0 %3735 }
0x28d8   :  { %3739 = vrot.lane.b32.xlu1 %v3738_v11, %s4515_s4 }
0x2928   :  { %v3747_v15 = vpop.permute.xlu2 %3746 }
0x2942   :  { %v3710_v10 = vpop.permute.xlu1 %3709 }
0x2943   :  { %v3712_v26 = vsel %vm224_vm3, %v5866_v48, %v3710_v10  ;;  %v3751_v48 = vpop.permute.xlu0 %3750 }
0x2944   :  { %v3754_v47 = vsel %vm244_vm5, %v3712_v26, %v3720_v61  ;;  %v3753_v50 = vsel %vm224_vm3, %v3747_v15, %v3751_v48 }
0x2945   :  { %v3759_v34 = vrot.slane %v3754_v47, 4  ;;  %v3757_v59 = vsel %vm244_vm5, %v3745_v4, %v3753_v50 }
0x2946   :  { %v3780_v35 = vrot.slane %v3757_v59, 4 }
0x2947   :  { %v3761_v33 = vadd.f32 %v3759_v34, %v3754_v47  ;;  %v3762_v31 = vmax.f32 %v3754_v47, %v3759_v34 }
0x2949   :  { %v3763_v45 = vadd.f32 %v3761_v33, %v3755_v46  ;;  %v3764_v12 = vmax.f32 %v3762_v31, %v3755_v46 }
0x294a   :  { %v3740_v38 = vpop.permute.xlu1 %3739 }
0x294b   :  { %v3768_v49 = vadd.f32 %v3766_v43, %v3763_v45  ;;  %v3769_v55 = vmax.f32 %v3764_v12, %v3766_v43  ;;  %v3742_v14 = vsel %vm224_vm3, %v3736_v36, %v3740_v38 }
0x294c   :  { %v3756_v16 = vsel %vm244_vm5, %v3734_v52, %v3742_v14  ;;  %vm3870_vm5 = vcmask 17408  }
0x294d   :  { %v3770_v27 = vadd.f32 %v3768_v49, %v3756_v16  ;;  %v3771_v25 = vmax.f32 %v3769_v55, %v3756_v16  ;;  %v3773_v21 = vrot.slane %v3756_v16, 4 }
0x294f   :  { %v3775_v62 = vadd.f32 %v3773_v21, %v3770_v27  ;;  %v3776_v54 = vmax.f32 %v3771_v25, %v3773_v21 }
0x2951   :  { %v3777_v37 = vadd.f32 %v3775_v62, %v3757_v59  ;;  %v3778_v24 = vmax.f32 %v3776_v54, %v3757_v59 }
0x2953   :  { %v3783_v13 = vmax.f32 %v3778_v24, %v3780_v35  ;;  %v3782_v51 = vadd.f32 %v3780_v35, %v3777_v37 }
0x2955   :  { %v3792_v9 = vrot.slane %v3783_v13, 2  ;;  %v3784_v22 = vmul.f32 0.125, %v3782_v51 }
0x2957   :  { %v4044_v63 = vpack.i.bf16 %v3792_v9, %v3783_v13  ;;  %v3790_v57 = vrot.slane %v3784_v22, 2 }
0x2959   :  { %4045 = vrot.lane.b32.xlu1 %v4044_v63, %s4515_s4 }
0x29cb   :  { %v4046_v41 = vpop.permute.xlu1 %4045 }
0x29cc   :  { %v4048_v56 = vunpack.i.h.bf16 %v4046_v41  ;;  %v4047_v23 = vunpack.i.l.bf16 %v4046_v41 }
0x29ce   :  { %v3796_v20 = vsel %vm256_vm6, %v3784_v22, %v4047_v23  ;;  %v3797_v28 = vsel %vm256_vm6, %v3790_v57, %v4048_v56 }
0x29cf   :  { %3814 = vmatmul.f32.vlgmr.msra.gmra.mxu2 %v3796_v20  ;;  %3834 = vmatmul.f32.vlgmr.msra.gmra.mxu3 %v3797_v28 }
0x2a52   :  { %v3815_v30 = vpop.f32.mrf.mxu2  ;;  %v3835_v0 = vpop.f32.mrf.mxu3 }
0x2a53   :  { %v3816_v8 = vadd.f32 %v4429_v7, %v3815_v30 }
0x2a55   :  { %v3836_v5 = vadd.f32 %v3835_v0, %v3816_v8 }
0x2a57   :  { %4355 = vtanh.f32 %v3836_v5 }
0x2a5d   :  { %v4356_v39 = vpop.eup %4355 }
0x2a5e   :  { %4012 = vmatmul.msk.f32.vlgmr.msra.gmra.mxu0 %vm224_vm3, %v4356_v39 }
0x2adb   :  { %v3867_v18 = vpop.f32.mrf.mxu0 }
0x2adc   :  { %v3868_v53 = vadd.f32 %v4050_v17, %v3867_v18 }
0x2ade   :  { %3871 = vst.msk [vmem:[#allocation7] sm:$0x3] %vm3870_vm5, %v3868_v53 }
0x2adf   :  { %3882 = dma.vmem_to_hbm [thread:$0]  %s3878_s10, 32, %s3880_s16, [#allocation4]  }
0x2ae0   :  { %4506 = dma.done.wait [#allocation4], 32  }
0x2ae1   :  { %4507 = vsyncadd [#allocation4], 4294967264 }
0x2ae2   :  { %3887 = vsyncpa [#allocation3], 1 }
0x2ae3   :  { %3888 = vsyncpa [#allocation6], 1 }
0x2ae4   :  { %3889 = vsyncpa [#allocation4], 1 }

</bundles_post_ra>
